<compile_context>
chip_gen: v5e
topology: v5e:2x2
jax: 0.10.0
libtpu: 0.0.40
codegen_flags: <defaults>
</compile_context>

<pallas_src>
import functools

import jax
import jax.numpy as jnp
from jax import lax
from jax.experimental import pallas as pl
from jax.experimental.pallas import tpu as pltpu


def _round_up(x, m):
    return ((x + m - 1) // m) * m


# ----------------------------------------------------------------------------
# Kernel 1: 1x1 conv == matmul, BN folded into weights, bias + SiLU fused.
# ----------------------------------------------------------------------------
def _pointwise_kernel(x_ref, w_ref, b_ref, o_ref, *, act):
    y = jnp.dot(x_ref[...], w_ref[...], preferred_element_type=jnp.float32)
    y = y + b_ref[...]
    if act:
        y = y * jax.nn.sigmoid(y)          # SiLU
    o_ref[...] = y.astype(o_ref.dtype)


def pointwise_conv(x2d, w_bf16, bias_f32, *, act=True, out_dtype=jnp.float32):
    """(M, K) x (K, N) + bias (+ SiLU).  BN scale already folded into w."""
    M, K = x2d.shape
    N = w_bf16.shape[1]

    Mp = _round_up(M, 128)                 # lane/sublane friendly, TM >= 128
    if Mp != M:
        x2d = jnp.pad(x2d, ((0, Mp - M), (0, 0)))

    # N tiling (MXU-native 256/128 tiles) only when N is large.
    TN = N
    if N > 512:
        for cand in (512, 256, 128):
            if N % cand == 0:
                TN = cand
                break

    def _vmem_ok(tm):
        # double-buffered act/out tiles + weight/bias tile, bf16 inputs.
        return (2 * (tm * K * 2 + tm * TN * 4) + K * TN * 2 + TN * 4) < 12 * 1024 * 1024

    TM = 128
    for cand in (1024, 512, 256):
        if Mp % cand == 0 and Mp // cand >= 2 and _vmem_ok(cand):
            TM = cand
            break

    out = pl.pallas_call(
        functools.partial(_pointwise_kernel, act=act),
        out_shape=jax.ShapeDtypeStruct((Mp, N), out_dtype),
        grid=(Mp // TM, N // TN),
        in_specs=[
            pl.BlockSpec((TM, K), lambda i, j: (i, 0)),
            pl.BlockSpec((K, TN), lambda i, j: (0, j)),
            pl.BlockSpec((1, TN), lambda i, j: (0, j)),
        ],
        out_specs=pl.BlockSpec((TM, TN), lambda i, j: (i, j)),
        compiler_params=pltpu.CompilerParams(
            dimension_semantics=("parallel", "parallel")),
    )(x2d.astype(jnp.bfloat16), w_bf16, bias_f32)
    return out[:M]


# ----------------------------------------------------------------------------
# Kernel 2: 3x3 stride-1 conv as 9 shifted dots in VMEM + bias + SiLU + residual.
# ----------------------------------------------------------------------------
def _conv3x3_kernel(r0_ref, r1_ref, r2_ref, w_ref, b_ref, *rest, act, add_res):
    if add_res:
        res_ref, o_ref = rest
    else:
        (o_ref,) = rest
    TH, W, Cout = o_ref.shape
    C = w_ref.shape[1]

    acc = jnp.zeros((TH * W, Cout), jnp.float32)
    rows = (r0_ref, r1_ref, r2_ref)
    for dy in range(3):
        x_rows = rows[dy][...]                              # (TH, W + 2, C) bf16
        for dx in range(3):
            xs = x_rows[:, dx:dx + W, :].reshape(TH * W, C)
            acc = acc + jnp.dot(xs, w_ref[3 * dy + dx],
                                preferred_element_type=jnp.float32)

    y = acc + b_ref[...].reshape(1, Cout)
    if act:
        y = y * jax.nn.sigmoid(y)                           # SiLU
    y = y.reshape(TH, W, Cout)
    if add_res:
        y = y + res_ref[...]                                # fused shortcut add
    o_ref[...] = y.astype(o_ref.dtype)


def conv3x3_fused(x_nhwc, w9_bf16, bias_f32, residual=None, *, act=True,
                  out_dtype=jnp.float32):
    """3x3 'same' conv + bias (+ SiLU) (+ residual), single Pallas kernel.

    x_nhwc:   (B, H, W, C) activation (cast to bf16 for the MXU).
    w9_bf16:  (9, C, Cout) weights with BN scale folded, tap order (dy, dx).
    residual: optional (B, H, W, Cout) f32 tensor added after the activation.
    """
    B, H, W, C = x_nhwc.shape
    Cout = w9_bf16.shape[2]
    add_res = residual is not None

    xp = jnp.pad(x_nhwc.astype(jnp.bfloat16), ((0, 0), (1, 1), (1, 1), (0, 0)))
    # Three row-shifted views (one per dy tap): 3x activation traffic vs 9x im2col.
    rows = [xp[:, dy:dy + H, :, :].reshape(B * H, W + 2, C) for dy in range(3)]

    Mr = B * H
    Mrp = _round_up(Mr, 8)

    def _vmem_ok(th):
        inp = 3 * th * (W + 2) * C * 2
        outb = th * W * Cout * 4 * (2 if add_res else 1)
        wgt = 9 * C * Cout * 2 + Cout * 4
        return 2 * (inp + outb) + wgt < 12 * 1024 * 1024

    TH = 8
    for cand in (64, 32, 16):
        if Mrp % cand == 0 and cand * W <= 512 and Mrp // cand >= 2 and _vmem_ok(cand):
            TH = cand
            break

    if Mrp != Mr:
        rows = [jnp.pad(r, ((0, Mrp - Mr), (0, 0), (0, 0))) for r in rows]

    args = rows + [w9_bf16, bias_f32]
    in_specs = [pl.BlockSpec((TH, W + 2, C), lambda i: (i, 0, 0)) for _ in range(3)]
    in_specs += [pl.BlockSpec((9, C, Cout), lambda i: (0, 0, 0)),
                 pl.BlockSpec((1, 1, Cout), lambda i: (0, 0, 0))]
    if add_res:
        res = residual.astype(jnp.float32).reshape(Mr, W, Cout)
        if Mrp != Mr:
            res = jnp.pad(res, ((0, Mrp - Mr), (0, 0), (0, 0)))
        args.append(res)
        in_specs.append(pl.BlockSpec((TH, W, Cout), lambda i: (i, 0, 0)))

    out = pl.pallas_call(
        functools.partial(_conv3x3_kernel, act=act, add_res=add_res),
        out_shape=jax.ShapeDtypeStruct((Mrp, W, Cout), out_dtype),
        grid=(Mrp // TH,),
        in_specs=in_specs,
        out_specs=pl.BlockSpec((TH, W, Cout), lambda i: (i, 0, 0)),
        compiler_params=pltpu.CompilerParams(dimension_semantics=("parallel",)),
    )(*args)
    return out[:Mr].reshape(B, H, W, Cout)


# ----------------------------------------------------------------------------
# Parameters (deterministic) + BN folding.
# ----------------------------------------------------------------------------
class ParamGen:
    def __init__(self, key):
        self.key = key
        self.cnt = 0

    def normal(self, shape, scale=1.0):
        self.cnt += 1
        return scale * jax.random.normal(jax.random.fold_in(self.key, self.cnt),
                                         shape, jnp.float32)


def _bn_fold(pg, cout, eps=1e-3):
    gamma = 1.0 + pg.normal((cout,), 0.1)
    beta = pg.normal((cout,), 0.1)
    mean = pg.normal((cout,), 0.1)
    var = 1.0 + jnp.abs(pg.normal((cout,), 0.1))
    scale = gamma * lax.rsqrt(var + eps)       # BatchNorm2d(eps=0.001), eval mode
    bias = beta - mean * scale
    return scale, bias


# ----------------------------------------------------------------------------
# Bottleneck module.
# ----------------------------------------------------------------------------
class Bottleneck:
    """YOLOX Bottleneck: BaseConv(1x1) -> BaseConv(3x3) [+ residual add]."""

    def __init__(self, key, in_channels, out_channels, shortcut=True,
                 expansion=0.5):
        hidden = int(out_channels * expansion)
        self.cin, self.cout, self.hidden = in_channels, out_channels, hidden
        self.use_add = shortcut and in_channels == out_channels
        pg = ParamGen(key)

        # conv1: 1x1, BN scale folded into the weight columns.
        w1 = pg.normal((in_channels, hidden), 0.05)
        s1, b1 = _bn_fold(pg, hidden)
        self.w1_f32 = w1 * s1[None, :]
        self.w1 = self.w1_f32.astype(jnp.bfloat16)
        self.b1 = b1.reshape(1, hidden)

        # conv2: 3x3, stored tap-major (dy, dx) as (9, hidden, cout).
        w2 = pg.normal((3, 3, hidden, out_channels), 0.05)
        s2, b2 = _bn_fold(pg, out_channels)
        self.w2_f32 = w2 * s2[None, None, None, :]
        self.w2 = self.w2_f32.reshape(9, hidden, out_channels).astype(jnp.bfloat16)
        self.b2 = b2.reshape(1, 1, out_channels)

        self._fwd = jax.jit(self._forward)

    def _forward(self, x_nchw):
        x = jnp.transpose(x_nchw, (0, 2, 3, 1))            # NCHW -> NHWC (f32)
        B, H, W, Cin = x.shape
        h = pointwise_conv(x.reshape(B * H * W, Cin), self.w1, self.b1,
                           act=True, out_dtype=jnp.bfloat16)
        h = h.reshape(B, H, W, self.hidden)
        y = conv3x3_fused(h, self.w2, self.b2,
                          residual=x if self.use_add else None,
                          act=True, out_dtype=jnp.float32)
        return jnp.transpose(y, (0, 3, 1, 2))              # NHWC -> NCHW

    def __call__(self, x_nchw):
        return self._fwd(x_nchw)

    def reference(self, x_nchw):
        """Plain-JAX f32 reference of the same forward pass."""
        x = jnp.transpose(x_nchw, (0, 2, 3, 1))
        h = jnp.einsum('bhwc,cn->bhwn', x, self.w1_f32) + self.b1.reshape(-1)
        h = h * jax.nn.sigmoid(h)
        y = lax.conv_general_dilated(
            h, self.w2_f32, window_strides=(1, 1), padding='SAME',
            dimension_numbers=('NHWC', 'HWIO', 'NHWC'))
        y = y + self.b2.reshape(-1)
        y = y * jax.nn.sigmoid(y)
        if self.use_add:
            y = y + x
        return jnp.transpose(y, (0, 3, 1, 2))


# ----------------------------------------------------------------------------
if __name__ == "__main__":
    key = jax.random.PRNGKey(0)
    B, C, H, W = 2, 128, 16, 16                 # lane-dense (128) channel count
    model = Bottleneck(key, C, C, shortcut=True, expansion=0.5)

    x = jax.random.normal(jax.random.fold_in(key, 12345), (B, C, H, W),
                          jnp.float32)          # NCHW like PyTorch

    y = jax.block_until_ready(model(x))
    assert y.shape == (B, C, H, W), y.shape
    assert bool(jnp.all(jnp.isfinite(y)))

    # Correctness vs. plain-JAX f32 reference (bf16 MXU inputs -> loose tolerance).
    ref = jax.block_until_ready(model.reference(x))
    err = float(jnp.max(jnp.abs(y - ref)))
    scl = float(jnp.max(jnp.abs(ref))) + 1e-6
    assert err <= 0.05 * scl + 5e-2, (err, scl)

    print("KERNEL_OK")
</pallas_src>

<mosaic_0001>
module attributes {stable_mosaic.version = 11 : i64} {
  func.func @_pointwise_kernel(%arg0: i32, %arg1: i32, %arg2: memref<256x128xbf16, #tpu.memory_space<vmem>>, %arg3: memref<128x64xbf16, #tpu.memory_space<vmem>>, %arg4: memref<1x64xf32, #tpu.memory_space<vmem>>, %arg5: memref<256x64xbf16, #tpu.memory_space<vmem>>) attributes {dimension_semantics = [#tpu.dimension_semantics<parallel>, #tpu.dimension_semantics<parallel>], iteration_bounds = array<i64: 2, 1>, scalar_prefetch = 0 : i64, scratch_operands = 0 : i64, tpu.core_type = #tpu.core_type<tc>, window_params = [{transform_indices = @transform_0, window_bounds = array<i64: 256, 128>}, {transform_indices = @transform_1, window_bounds = array<i64: 128, 64>}, {transform_indices = @transform_2, window_bounds = array<i64: 1, 64>}, {transform_indices = @transform_3, window_bounds = array<i64: 256, 64>}]} {
    %c0 = arith.constant 0 : index
    %c0_0 = arith.constant 0 : index
    %0 = vector.load %arg2[%c0, %c0_0] : memref<256x128xbf16, #tpu.memory_space<vmem>>, vector<256x128xbf16>
    %c0_1 = arith.constant 0 : index
    %c0_2 = arith.constant 0 : index
    %1 = vector.load %arg3[%c0_1, %c0_2] : memref<128x64xbf16, #tpu.memory_space<vmem>>, vector<128x64xbf16>
    %cst = arith.constant dense<0.000000e+00> : vector<256x64xf32>
    %2 = tpu.matmul %0, %1, %cst {dimension_numbers = #tpu.dot_dimension_numbers<[1], [0], [0], [1], [0, 0, 1, 1], [], []>} : vector<256x128xbf16>, vector<128x64xbf16>, vector<256x64xf32> -> vector<256x64xf32>
    %c0_3 = arith.constant 0 : index
    %c0_4 = arith.constant 0 : index
    %3 = vector.load %arg4[%c0_3, %c0_4] : memref<1x64xf32, #tpu.memory_space<vmem>>, vector<1x64xf32>
    %4 = vector.broadcast %3 : vector<1x64xf32> to vector<256x64xf32>
    %5 = arith.addf %2, %4 : vector<256x64xf32>
    %6 = arith.negf %5 : vector<256x64xf32>
    %7 = math.exp %6 : vector<256x64xf32>
    %cst_5 = arith.constant 1.000000e+00 : f32
    %8 = vector.broadcast %cst_5 : f32 to vector<256x64xf32>
    %9 = arith.addf %8, %7 : vector<256x64xf32>
    %10 = arith.divf %8, %9 : vector<256x64xf32>
    %11 = arith.mulf %5, %10 : vector<256x64xf32>
    %12 = arith.truncf %11 : vector<256x64xf32> to vector<256x64xbf16>
    %c0_6 = arith.constant 0 : index
    %c0_7 = arith.constant 0 : index
    %13 = vector.load %arg5[%c0_6, %c0_7] : memref<256x64xbf16, #tpu.memory_space<vmem>>, vector<256x64xbf16>
    tpu.vector_store %arg5[%c0_6, %c0_7], %12 {strides = array<i32>} : memref<256x64xbf16, #tpu.memory_space<vmem>>, vector<256x64xbf16>,
    return
  }
  func.func @transform_0(%arg0: i32, %arg1: i32) -> (i32, i32) {
    %c0_i32 = arith.constant 0 : i32
    %c0_i32_0 = arith.constant 0 : i32
    return %arg0, %c0_i32 : i32, i32
  }
  func.func @transform_1(%arg0: i32, %arg1: i32) -> (i32, i32) {
    %c0_i32 = arith.constant 0 : i32
    %c0_i32_0 = arith.constant 0 : i32
    return %c0_i32, %arg1 : i32, i32
  }
  func.func @transform_2(%arg0: i32, %arg1: i32) -> (i32, i32) {
    %c0_i32 = arith.constant 0 : i32
    %c0_i32_0 = arith.constant 0 : i32
    return %c0_i32, %arg1 : i32, i32
  }
  func.func @transform_3(%arg0: i32, %arg1: i32) -> (i32, i32) {
    %c0_i32 = arith.constant 0 : i32
    return %arg0, %arg1 : i32, i32
  }
}

module attributes {stable_mosaic.version = 11 : i64} {
  func.func @_conv3x3_kernel(%arg0: i32, %arg1: memref<16x18x64xbf16, #tpu.memory_space<vmem>>, %arg2: memref<16x18x64xbf16, #tpu.memory_space<vmem>>, %arg3: memref<16x18x64xbf16, #tpu.memory_space<vmem>>, %arg4: memref<9x64x128xbf16, #tpu.memory_space<vmem>>, %arg5: memref<1x1x128xf32, #tpu.memory_space<vmem>>, %arg6: memref<16x16x128xf32, #tpu.memory_space<vmem>>, %arg7: memref<16x16x128xf32, #tpu.memory_space<vmem>>) attributes {dimension_semantics = [#tpu.dimension_semantics<parallel>], iteration_bounds = array<i64: 2>, scalar_prefetch = 0 : i64, scratch_operands = 0 : i64, tpu.core_type = #tpu.core_type<tc>, window_params = [{transform_indices = @transform_0, window_bounds = array<i64: 16, 18, 64>}, {transform_indices = @transform_1, window_bounds = array<i64: 16, 18, 64>}, {transform_indices = @transform_2, window_bounds = array<i64: 16, 18, 64>}, {pipeline_mode = #tpu.pipeline_mode<synchronous>, transform_indices = @transform_3, window_bounds = array<i64: 9, 64, 128>}, {pipeline_mode = #tpu.pipeline_mode<synchronous>, transform_indices = @transform_4, window_bounds = array<i64: 1, 1, 128>}, {transform_indices = @transform_5, window_bounds = array<i64: 16, 16, 128>}, {transform_indices = @transform_6, window_bounds = array<i64: 16, 16, 128>}]} {
    %cst = arith.constant 0.000000e+00 : f32
    %0 = vector.broadcast %cst : f32 to vector<256x128xf32>
    %c0 = arith.constant 0 : index
    %c0_0 = arith.constant 0 : index
    %c0_1 = arith.constant 0 : index
    %1 = vector.load %arg1[%c0, %c0_0, %c0_1] : memref<16x18x64xbf16, #tpu.memory_space<vmem>>, vector<16x18x64xbf16>
    %2 = vector.extract_strided_slice %1 {offsets = [0, 0, 0], sizes = [16, 16, 64], strides = [1, 1, 1]} : vector<16x18x64xbf16> to vector<16x16x64xbf16>
    %3 = vector.shape_cast %2 : vector<16x16x64xbf16> to vector<256x64xbf16>
    %c0_2 = arith.constant 0 : index
    %c0_3 = arith.constant 0 : index
    %c0_4 = arith.constant 0 : index
    %4 = vector.load %arg4[%c0_2, %c0_3, %c0_4] : memref<9x64x128xbf16, #tpu.memory_space<vmem>>, vector<1x64x128xbf16>
    %5 = vector.shape_cast %4 : vector<1x64x128xbf16> to vector<64x128xbf16>
    %cst_5 = arith.constant dense<0.000000e+00> : vector<256x128xf32>
    %6 = tpu.matmul %3, %5, %cst_5 {dimension_numbers = #tpu.dot_dimension_numbers<[1], [0], [0], [1], [0, 0, 1, 1], [], []>} : vector<256x64xbf16>, vector<64x128xbf16>, vector<256x128xf32> -> vector<256x128xf32>
    %7 = arith.addf %0, %6 : vector<256x128xf32>
    %8 = vector.extract_strided_slice %1 {offsets = [0, 1, 0], sizes = [16, 16, 64], strides = [1, 1, 1]} : vector<16x18x64xbf16> to vector<16x16x64xbf16>
    %9 = vector.shape_cast %8 : vector<16x16x64xbf16> to vector<256x64xbf16>
    %c1 = arith.constant 1 : index
    %c0_6 = arith.constant 0 : index
    %c0_7 = arith.constant 0 : index
    %10 = vector.load %arg4[%c1, %c0_6, %c0_7] : memref<9x64x128xbf16, #tpu.memory_space<vmem>>, vector<1x64x128xbf16>
    %11 = vector.shape_cast %10 : vector<1x64x128xbf16> to vector<64x128xbf16>
    %cst_8 = arith.constant dense<0.000000e+00> : vector<256x128xf32>
    %12 = tpu.matmul %9, %11, %cst_8 {dimension_numbers = #tpu.dot_dimension_numbers<[1], [0], [0], [1], [0, 0, 1, 1], [], []>} : vector<256x64xbf16>, vector<64x128xbf16>, vector<256x128xf32> -> vector<256x128xf32>
    %13 = arith.addf %7, %12 : vector<256x128xf32>
    %14 = vector.extract_strided_slice %1 {offsets = [0, 2, 0], sizes = [16, 16, 64], strides = [1, 1, 1]} : vector<16x18x64xbf16> to vector<16x16x64xbf16>
    %15 = vector.shape_cast %14 : vector<16x16x64xbf16> to vector<256x64xbf16>
    %c2 = arith.constant 2 : index
    %c0_9 = arith.constant 0 : index
    %c0_10 = arith.constant 0 : index
    %16 = vector.load %arg4[%c2, %c0_9, %c0_10] : memref<9x64x128xbf16, #tpu.memory_space<vmem>>, vector<1x64x128xbf16>
    %17 = vector.shape_cast %16 : vector<1x64x128xbf16> to vector<64x128xbf16>
    %cst_11 = arith.constant dense<0.000000e+00> : vector<256x128xf32>
    %18 = tpu.matmul %15, %17, %cst_11 {dimension_numbers = #tpu.dot_dimension_numbers<[1], [0], [0], [1], [0, 0, 1, 1], [], []>} : vector<256x64xbf16>, vector<64x128xbf16>, vector<256x128xf32> -> vector<256x128xf32>
    %19 = arith.addf %13, %18 : vector<256x128xf32>
    %c0_12 = arith.constant 0 : index
    %c0_13 = arith.constant 0 : index
    %c0_14 = arith.constant 0 : index
    %20 = vector.load %arg2[%c0_12, %c0_13, %c0_14] : memref<16x18x64xbf16, #tpu.memory_space<vmem>>, vector<16x18x64xbf16>
    %21 = vector.extract_strided_slice %20 {offsets = [0, 0, 0], sizes = [16, 16, 64], strides = [1, 1, 1]} : vector<16x18x64xbf16> to vector<16x16x64xbf16>
    %22 = vector.shape_cast %21 : vector<16x16x64xbf16> to vector<256x64xbf16>
    %c3 = arith.constant 3 : index
    %c0_15 = arith.constant 0 : index
    %c0_16 = arith.constant 0 : index
    %23 = vector.load %arg4[%c3, %c0_15, %c0_16] : memref<9x64x128xbf16, #tpu.memory_space<vmem>>, vector<1x64x128xbf16>
    %24 = vector.shape_cast %23 : vector<1x64x128xbf16> to vector<64x128xbf16>
    %cst_17 = arith.constant dense<0.000000e+00> : vector<256x128xf32>
    %25 = tpu.matmul %22, %24, %cst_17 {dimension_numbers = #tpu.dot_dimension_numbers<[1], [0], [0], [1], [0, 0, 1, 1], [], []>} : vector<256x64xbf16>, vector<64x128xbf16>, vector<256x128xf32> -> vector<256x128xf32>
    %26 = arith.addf %19, %25 : vector<256x128xf32>
    %27 = vector.extract_strided_slice %20 {offsets = [0, 1, 0], sizes = [16, 16, 64], strides = [1, 1, 1]} : vector<16x18x64xbf16> to vector<16x16x64xbf16>
    %28 = vector.shape_cast %27 : vector<16x16x64xbf16> to vector<256x64xbf16>
    %c4 = arith.constant 4 : index
    %c0_18 = arith.constant 0 : index
    %c0_19 = arith.constant 0 : index
    %29 = vector.load %arg4[%c4, %c0_18, %c0_19] : memref<9x64x128xbf16, #tpu.memory_space<vmem>>, vector<1x64x128xbf16>
    %30 = vector.shape_cast %29 : vector<1x64x128xbf16> to vector<64x128xbf16>
    %cst_20 = arith.constant dense<0.000000e+00> : vector<256x128xf32>
    %31 = tpu.matmul %28, %30, %cst_20 {dimension_numbers = #tpu.dot_dimension_numbers<[1], [0], [0], [1], [0, 0, 1, 1], [], []>} : vector<256x64xbf16>, vector<64x128xbf16>, vector<256x128xf32> -> vector<256x128xf32>
    %32 = arith.addf %26, %31 : vector<256x128xf32>
    %33 = vector.extract_strided_slice %20 {offsets = [0, 2, 0], sizes = [16, 16, 64], strides = [1, 1, 1]} : vector<16x18x64xbf16> to vector<16x16x64xbf16>
    %34 = vector.shape_cast %33 : vector<16x16x64xbf16> to vector<256x64xbf16>
    %c5 = arith.constant 5 : index
    %c0_21 = arith.constant 0 : index
    %c0_22 = arith.constant 0 : index
    %35 = vector.load %arg4[%c5, %c0_21, %c0_22] : memref<9x64x128xbf16, #tpu.memory_space<vmem>>, vector<1x64x128xbf16>
    %36 = vector.shape_cast %35 : vector<1x64x128xbf16> to vector<64x128xbf16>
    %cst_23 = arith.constant dense<0.000000e+00> : vector<256x128xf32>
    %37 = tpu.matmul %34, %36, %cst_23 {dimension_numbers = #tpu.dot_dimension_numbers<[1], [0], [0], [1], [0, 0, 1, 1], [], []>} : vector<256x64xbf16>, vector<64x128xbf16>, vector<256x128xf32> -> vector<256x128xf32>
    %38 = arith.addf %32, %37 : vector<256x128xf32>
    %c0_24 = arith.constant 0 : index
    %c0_25 = arith.constant 0 : index
    %c0_26 = arith.constant 0 : index
    %39 = vector.load %arg3[%c0_24, %c0_25, %c0_26] : memref<16x18x64xbf16, #tpu.memory_space<vmem>>, vector<16x18x64xbf16>
    %40 = vector.extract_strided_slice %39 {offsets = [0, 0, 0], sizes = [16, 16, 64], strides = [1, 1, 1]} : vector<16x18x64xbf16> to vector<16x16x64xbf16>
    %41 = vector.shape_cast %40 : vector<16x16x64xbf16> to vector<256x64xbf16>
    %c6 = arith.constant 6 : index
    %c0_27 = arith.constant 0 : index
    %c0_28 = arith.constant 0 : index
    %42 = vector.load %arg4[%c6, %c0_27, %c0_28] : memref<9x64x128xbf16, #tpu.memory_space<vmem>>, vector<1x64x128xbf16>
    %43 = vector.shape_cast %42 : vector<1x64x128xbf16> to vector<64x128xbf16>
    %cst_29 = arith.constant dense<0.000000e+00> : vector<256x128xf32>
    %44 = tpu.matmul %41, %43, %cst_29 {dimension_numbers = #tpu.dot_dimension_numbers<[1], [0], [0], [1], [0, 0, 1, 1], [], []>} : vector<256x64xbf16>, vector<64x128xbf16>, vector<256x128xf32> -> vector<256x128xf32>
    %45 = arith.addf %38, %44 : vector<256x128xf32>
    %46 = vector.extract_strided_slice %39 {offsets = [0, 1, 0], sizes = [16, 16, 64], strides = [1, 1, 1]} : vector<16x18x64xbf16> to vector<16x16x64xbf16>
    %47 = vector.shape_cast %46 : vector<16x16x64xbf16> to vector<256x64xbf16>
    %c7 = arith.constant 7 : index
    %c0_30 = arith.constant 0 : index
    %c0_31 = arith.constant 0 : index
    %48 = vector.load %arg4[%c7, %c0_30, %c0_31] : memref<9x64x128xbf16, #tpu.memory_space<vmem>>, vector<1x64x128xbf16>
    %49 = vector.shape_cast %48 : vector<1x64x128xbf16> to vector<64x128xbf16>
    %cst_32 = arith.constant dense<0.000000e+00> : vector<256x128xf32>
    %50 = tpu.matmul %47, %49, %cst_32 {dimension_numbers = #tpu.dot_dimension_numbers<[1], [0], [0], [1], [0, 0, 1, 1], [], []>} : vector<256x64xbf16>, vector<64x128xbf16>, vector<256x128xf32> -> vector<256x128xf32>
    %51 = arith.addf %45, %50 : vector<256x128xf32>
    %52 = vector.extract_strided_slice %39 {offsets = [0, 2, 0], sizes = [16, 16, 64], strides = [1, 1, 1]} : vector<16x18x64xbf16> to vector<16x16x64xbf16>
    %53 = vector.shape_cast %52 : vector<16x16x64xbf16> to vector<256x64xbf16>
    %c8 = arith.constant 8 : index
    %c0_33 = arith.constant 0 : index
    %c0_34 = arith.constant 0 : index
    %54 = vector.load %arg4[%c8, %c0_33, %c0_34] : memref<9x64x128xbf16, #tpu.memory_space<vmem>>, vector<1x64x128xbf16>
    %55 = vector.shape_cast %54 : vector<1x64x128xbf16> to vector<64x128xbf16>
    %cst_35 = arith.constant dense<0.000000e+00> : vector<256x128xf32>
    %56 = tpu.matmul %53, %55, %cst_35 {dimension_numbers = #tpu.dot_dimension_numbers<[1], [0], [0], [1], [0, 0, 1, 1], [], []>} : vector<256x64xbf16>, vector<64x128xbf16>, vector<256x128xf32> -> vector<256x128xf32>
    %57 = arith.addf %51, %56 : vector<256x128xf32>
    %c0_36 = arith.constant 0 : index
    %c0_37 = arith.constant 0 : index
    %c0_38 = arith.constant 0 : index
    %58 = vector.load %arg5[%c0_36, %c0_37, %c0_38] : memref<1x1x128xf32, #tpu.memory_space<vmem>>, vector<1x1x128xf32>
    %59 = vector.shape_cast %58 : vector<1x1x128xf32> to vector<1x128xf32>
    %60 = vector.broadcast %59 : vector<1x128xf32> to vector<256x128xf32>
    %61 = arith.addf %57, %60 : vector<256x128xf32>
    %62 = arith.negf %61 : vector<256x128xf32>
    %63 = math.exp %62 : vector<256x128xf32>
    %cst_39 = arith.constant 1.000000e+00 : f32
    %64 = vector.broadcast %cst_39 : f32 to vector<256x128xf32>
    %65 = arith.addf %64, %63 : vector<256x128xf32>
    %66 = arith.divf %64, %65 : vector<256x128xf32>
    %67 = arith.mulf %61, %66 : vector<256x128xf32>
    %68 = vector.shape_cast %67 : vector<256x128xf32> to vector<16x16x128xf32>
    %c0_40 = arith.constant 0 : index
    %c0_41 = arith.constant 0 : index
    %c0_42 = arith.constant 0 : index
    %69 = vector.load %arg6[%c0_40, %c0_41, %c0_42] : memref<16x16x128xf32, #tpu.memory_space<vmem>>, vector<16x16x128xf32>
    %70 = arith.addf %68, %69 : vector<16x16x128xf32>
    %c0_43 = arith.constant 0 : index
    %c0_44 = arith.constant 0 : index
    %c0_45 = arith.constant 0 : index
    %71 = vector.load %arg7[%c0_43, %c0_44, %c0_45] : memref<16x16x128xf32, #tpu.memory_space<vmem>>, vector<16x16x128xf32>
    tpu.vector_store %arg7[%c0_43, %c0_44, %c0_45], %70 {strides = array<i32>} : memref<16x16x128xf32, #tpu.memory_space<vmem>>, vector<16x16x128xf32>,
    return
  }
  func.func @transform_0(%arg0: i32) -> (i32, i32, i32) {
    %c0_i32 = arith.constant 0 : i32
    %c0_i32_0 = arith.constant 0 : i32
    %c0_i32_1 = arith.constant 0 : i32
    return %arg0, %c0_i32, %c0_i32_0 : i32, i32, i32
  }
  func.func @transform_1(%arg0: i32) -> (i32, i32, i32) {
    %c0_i32 = arith.constant 0 : i32
    %c0_i32_0 = arith.constant 0 : i32
    %c0_i32_1 = arith.constant 0 : i32
    return %arg0, %c0_i32, %c0_i32_0 : i32, i32, i32
  }
  func.func @transform_2(%arg0: i32) -> (i32, i32, i32) {
    %c0_i32 = arith.constant 0 : i32
    %c0_i32_0 = arith.constant 0 : i32
    %c0_i32_1 = arith.constant 0 : i32
    return %arg0, %c0_i32, %c0_i32_0 : i32, i32, i32
  }
  func.func @transform_3(%arg0: i32) -> (i32, i32, i32) {
    %c0_i32 = arith.constant 0 : i32
    %c0_i32_0 = arith.constant 0 : i32
    %c0_i32_1 = arith.constant 0 : i32
    %c0_i32_2 = arith.constant 0 : i32
    return %c0_i32, %c0_i32_0, %c0_i32_1 : i32, i32, i32
  }
  func.func @transform_4(%arg0: i32) -> (i32, i32, i32) {
    %c0_i32 = arith.constant 0 : i32
    %c0_i32_0 = arith.constant 0 : i32
    %c0_i32_1 = arith.constant 0 : i32
    %c0_i32_2 = arith.constant 0 : i32
    return %c0_i32, %c0_i32_0, %c0_i32_1 : i32, i32, i32
  }
  func.func @transform_5(%arg0: i32) -> (i32, i32, i32) {
    %c0_i32 = arith.constant 0 : i32
    %c0_i32_0 = arith.constant 0 : i32
    %c0_i32_1 = arith.constant 0 : i32
    return %arg0, %c0_i32, %c0_i32_0 : i32, i32, i32
  }
  func.func @transform_6(%arg0: i32) -> (i32, i32, i32) {
    %c0_i32 = arith.constant 0 : i32
    %c0_i32_0 = arith.constant 0 : i32
    %c0_i32_1 = arith.constant 0 : i32
    return %arg0, %c0_i32, %c0_i32_0 : i32, i32, i32
  }
}

</mosaic_0001>

<bundles_post_ra>
// kernel: _forward.2
= control target key start
LH: loop header
LB: loop body
LE: loop exit
PB: predicated region body
PF: predicated region fallthrough
CT: control target
= control target key end

     0   :  { %s1704_s12 = smov 0   ;;  %s1706_s13 = smov 0   ;;  %s2434_s0 = inlined_call_operand.vmem [shape: bf16[512,128], index: 0, kind: input, shape index: {}]   ;;  %s2435_s1 = inlined_call_operand.vmem [shape: bf16[128,64], index: 1, kind: input, shape index: {}]   ;;  %s2436_s2 = inlined_call_operand.vmem [shape: f32[1,64], index: 2, kind: input, shape index: {}]   ;;  %s2437_s3 = inlined_call_operand.vmem [shape: bf16[512,64], index: 3, kind: output, shape index: {}]  }
   0x1   :  { %s1708_s14 = smov 0  }
   0x2 LB: > { %s25_s15 = sadd.s32 1, %s1678_s13  ;;  %p1323_p0 = scmp.ge.s32.totalorder %s1682_s14, 1  ;;  %s1682_s14 = sphi %s1708_s14, %s13_s14   ;;  %s1678_s13 = sphi %s1706_s13, %s2481_s13   ;;  %s1674_s12 = sphi %s1704_s12, %s2480_s12  }
   0x3   : > { %p27_p1 = scmp.ge.s32.totalorder %s25_s15, 2  ;;  %p169_p2 = scmp.lt.s32.totalorder %s1682_s14, 3 }
   0x5   : > { %s2483_s15 = smov (%p27_p1, %s25_s15), 0  ;;  %p170_p3 = pnand %p1323_p0, %p169_p2 }
   0x6   : > { %s1324_s24 = sshll.u32 (!%p170_p3), %s1674_s12, 5 }
   0x7   : > { %173 = sbr.rel (%p170_p3) target bundleno = 343 (0x157), region = 32  ;;  %p204_p4 = scmp.lt.s32.totalorder (!%p170_p3), %s1324_s24, 63 }
   0xc   : > { %v1481_v0 = vld [vmem:[%s2435_s1 + $0x38] sm:$0xff]  ;;  %v1480_v1 = vld [vmem:[%s2435_s1 + $0x30] sm:$0xff]  ;;  %v1479_v2 = vld [vmem:[%s2435_s1 + $0x28] sm:$0xff]  ;;  %s2485_s24 = smov (!%p204_p4, %s1324_s24), 63  ;;  %vm1182_vm5 = vcmask 519168  }
   0xd   : > { %421 = vmatpush.bf16.msra.mxu0 %v1481_v0  ;;  %1482 = vmatpush.bf16.msra.mxu1 %v1481_v0  ;;  %v1478_v3 = vld [vmem:[%s2435_s1 + $0x20] sm:$0xff]  ;;  %v1477_v4 = vld [vmem:[%s2435_s1 + $0x18] sm:$0xff]  ;;  %v1476_v5 = vld [vmem:[%s2435_s1 + $0x10] sm:$0xff]  ;;  %s1325_s4 = sshll.u32 %s2485_s24, 2 }
   0xe   : > { %1483 = vmatpush.bf16.msra.mxu2 %v1481_v0  ;;  %1484 = vmatpush.bf16.msra.mxu3 %v1481_v0  ;;  %v1475_v6 = vld [vmem:[%s2435_s1 + $0x8] sm:$0xff]  ;;  %v1474_v7 = vld [vmem:[%s2435_s1] sm:$0xff]  ;;  %s1757_s9 = scalar_lea.vmem %s2434_s0, %s1325_s4  ;;  %s1894_s17 = scalar_lea.vmem %s2437_s3, %s1325_s4 }
   0xf   : > { %v1458_v8 = vld [vmem:[%s1757_s9] sm:$0xff]  ;;  %v1459_v12 = vld [vmem:[%s1757_s9 + $0x8] sm:$0xff]  ;;  %v1460_v16 = vld [vmem:[%s1757_s9 + $0x10] sm:$0xff] }
  0x10   : > { %v1462_v9 = vld [vmem:[%s1757_s9 + $0x20] sm:$0xff]  ;;  %v1463_v13 = vld [vmem:[%s1757_s9 + $0x28] sm:$0xff]  ;;  %v1464_v17 = vld [vmem:[%s1757_s9 + $0x30] sm:$0xff] }
  0x11   : > { %422 = vmatpush.bf16.msra.mxu0 %v1480_v1  ;;  %1485 = vmatpush.bf16.msra.mxu1 %v1480_v1  ;;  %v1466_v10 = vld [vmem:[%s1757_s9 + $0x40] sm:$0xff]  ;;  %v1467_v14 = vld [vmem:[%s1757_s9 + $0x48] sm:$0xff]  ;;  %v1468_v18 = vld [vmem:[%s1757_s9 + $0x50] sm:$0xff] }
  0x12   : > { %1486 = vmatpush.bf16.msra.mxu2 %v1480_v1  ;;  %1487 = vmatpush.bf16.msra.mxu3 %v1480_v1  ;;  %v1470_v11 = vld [vmem:[%s1757_s9 + $0x60] sm:$0xff]  ;;  %v1471_v15 = vld [vmem:[%s1757_s9 + $0x68] sm:$0xff]  ;;  %v1472_v19 = vld [vmem:[%s1757_s9 + $0x70] sm:$0xff] }
  0x13   : > { %v1461_v20 = vld [vmem:[%s1757_s9 + $0x18] sm:$0xff]  ;;  %v1778_v24 = vld [vmem:[%s2436_s2] ss:$0 sm:$0xff] }
  0x14   : > { %v1465_v21 = vld [vmem:[%s1757_s9 + $0x38] sm:$0xff] }
  0x15   : > { %423 = vmatpush.bf16.msra.mxu0 %v1479_v2  ;;  %1488 = vmatpush.bf16.msra.mxu1 %v1479_v2  ;;  %v1469_v22 = vld [vmem:[%s1757_s9 + $0x58] sm:$0xff] }
  0x16   : > { %1489 = vmatpush.bf16.msra.mxu2 %v1479_v2  ;;  %1490 = vmatpush.bf16.msra.mxu3 %v1479_v2  ;;  %v1473_v23 = vld [vmem:[%s1757_s9 + $0x78] sm:$0xff] }
  0x19   : > { %424 = vmatpush.bf16.msra.mxu0 %v1478_v3  ;;  %1491 = vmatpush.bf16.msra.mxu1 %v1478_v3 }
  0x1a   : > { %1492 = vmatpush.bf16.msra.mxu2 %v1478_v3  ;;  %1493 = vmatpush.bf16.msra.mxu3 %v1478_v3 }
  0x1d   : > { %425 = vmatpush.bf16.msra.mxu0 %v1477_v4  ;;  %1494 = vmatpush.bf16.msra.mxu1 %v1477_v4 }
  0x1e   : > { %1495 = vmatpush.bf16.msra.mxu2 %v1477_v4  ;;  %1496 = vmatpush.bf16.msra.mxu3 %v1477_v4 }
  0x21   : > { %426 = vmatpush.bf16.msra.mxu0 %v1476_v5  ;;  %1497 = vmatpush.bf16.msra.mxu1 %v1476_v5 }
  0x22   : > { %1498 = vmatpush.bf16.msra.mxu2 %v1476_v5  ;;  %1499 = vmatpush.bf16.msra.mxu3 %v1476_v5 }
  0x25   : > { %427 = vmatpush.bf16.msra.mxu0 %v1475_v6  ;;  %1500 = vmatpush.bf16.msra.mxu1 %v1475_v6 }
  0x26   : > { %1501 = vmatpush.bf16.msra.mxu2 %v1475_v6  ;;  %1502 = vmatpush.bf16.msra.mxu3 %v1475_v6 }
  0x29   : > { %428 = vmatpush.bf16.msra.mxu0 %v1474_v7  ;;  %1503 = vmatpush.bf16.msra.mxu1 %v1474_v7 }
  0x2a   : > { %1504 = vmatpush.bf16.msra.mxu2 %v1474_v7  ;;  %1505 = vmatpush.bf16.msra.mxu3 %v1474_v7 }
  0x2c   : > { %429 = vmatmul.bf16.vlgmr.msra.gmra.mxu0 %v1458_v8  ;;  %449 = vmatmul.bf16.vlgmr.msra.gmra.mxu1 %v1462_v9 }
  0x2d   : > { %469 = vmatmul.bf16.vlgmr.msra.gmra.mxu2 %v1466_v10  ;;  %489 = vmatmul.bf16.vlgmr.msra.gmra.mxu3 %v1470_v11 }
  0x3c   : > { %434 = vmatmul.bf16.gmra.mxu0 %v1459_v12  ;;  %454 = vmatmul.bf16.gmra.mxu1 %v1463_v13 }
  0x3d   : > { %474 = vmatmul.bf16.gmra.mxu2 %v1467_v14  ;;  %494 = vmatmul.bf16.gmra.mxu3 %v1471_v15 }
  0x4c   : > { %439 = vmatmul.bf16.gmra.mxu0 %v1460_v16  ;;  %459 = vmatmul.bf16.gmra.mxu1 %v1464_v17 }
  0x4d   : > { %479 = vmatmul.bf16.gmra.mxu2 %v1468_v18  ;;  %499 = vmatmul.bf16.gmra.mxu3 %v1472_v19 }
  0x5c   : > { %444 = vmatmul.bf16.gmra.mxu0 %v1461_v20  ;;  %464 = vmatmul.bf16.gmra.mxu1 %v1465_v21 }
  0x5d   : > { %484 = vmatmul.bf16.gmra.mxu2 %v1469_v22  ;;  %504 = vmatmul.bf16.gmra.mxu3 %v1473_v23 }
  0xa9   : > { %v430_v25 = vpop.f32.mrf.mxu0  ;;  %v450_v26 = vpop.f32.mrf.mxu1 }
  0xaa   : > { %v1781_v27 = vadd.f32 %v1778_v24, %v430_v25  ;;  %v1784_v28 = vadd.f32 %v1778_v24, %v450_v26 }
  0xac   : > { %v1424_v29 = vmul.f32 -1.442695, %v1781_v27  ;;  %v1432_v30 = vmul.f32 -1.442695, %v1784_v28 }
  0xae   : > { %1531 = vpow2.f32 %v1424_v29 }
  0xaf   : > { %1533 = vpow2.f32 %v1432_v30 }
  0xb0   : > { %v470_v31 = vpop.f32.mrf.mxu2  ;;  %v490_v32 = vpop.f32.mrf.mxu3 }
  0xb1   : > { %v1789_v33 = vadd.f32 %v1778_v24, %v470_v31  ;;  %v1792_v34 = vadd.f32 %v1778_v24, %v490_v32  ;;  %v432_v35 = vpop.f32.mrf.mxu0  ;;  %v452_v36 = vpop.f32.mrf.mxu1 }
  0xb2   : > { %v1795_v37 = vadd.f32 %v1778_v24, %v432_v35  ;;  %v1798_v38 = vadd.f32 %v1778_v24, %v452_v36 }
  0xb3   : > { %v1440_v39 = vmul.f32 -1.442695, %v1789_v33  ;;  %v1448_v40 = vmul.f32 -1.442695, %v1792_v34 }
  0xb4   : > { %v1532_v41 = vpop.eup %1531  ;;  %v1425_v44 = vmul.f32 -1.442695, %v1795_v37  ;;  %v1433_v46 = vmul.f32 -1.442695, %v1798_v38 }
  0xb5   : > { %v1534_v42 = vpop.eup %1533  ;;  %v1802_v43 = vadd.f32 1.0, %v1532_v41  ;;  %1535 = vpow2.f32 %v1440_v39 }
  0xb6   : > { %v1805_v45 = vadd.f32 1.0, %v1534_v42  ;;  %1537 = vpow2.f32 %v1448_v40 }
  0xb7   : > { %1539 = vrcp.f32 %v1802_v43  ;;  %v647_v51 = vand.u32 2147483647, %v1802_v43  ;;  %v649_v52 = vand.u32 2147483648, %v1802_v43  ;;  %vm643_vm0 = vweird.f32 %v1802_v43 }
  0xb8   : > { %1541 = vrcp.f32 %v1805_v45  ;;  %v472_v47 = vpop.f32.mrf.mxu2  ;;  %v492_v48 = vpop.f32.mrf.mxu3  ;;  %v767_v55 = vand.u32 2147483647, %v1805_v45  ;;  %v769_v59 = vand.u32 2147483648, %v1805_v45  ;;  %vm763_vm1 = vweird.f32 %v1805_v45 }
  0xb9   : > { %1543 = vpow2.f32 %v1425_v44  ;;  %v1811_v49 = vadd.f32 %v1778_v24, %v472_v47  ;;  %v435_v50 = vpop.f32.mrf.mxu0  ;;  %v455_v53 = vpop.f32.mrf.mxu1  ;;  %v1818_v57 = vadd.f32 %v1778_v24, %v492_v48  ;;  %vm1834_vm2 = vcmp.eq.f32.partialorder %v647_v51, 8.507059e+37 }
  0xba   : > { %1545 = vpow2.f32 %v1433_v46  ;;  %v1824_v61 = vadd.f32 %v1778_v24, %v435_v50  ;;  %v1831_v0 = vadd.f32 %v1778_v24, %v455_v53  ;;  %v650_v4 = vor.u32 1.1754944e-38, %v649_v52 }
  0xbb   : > { %v1536_v54 = vpop.eup %1535  ;;  %v1441_v56 = vmul.f32 -1.442695, %v1811_v49  ;;  %vm1840_vm3 = vcmp.eq.f32.partialorder %v767_v55, 8.507059e+37  ;;  %v1449_v8 = vmul.f32 -1.442695, %v1818_v57  ;;  %v770_v11 = vor.u32 1.1754944e-38, %v769_v59 }
  0xbc   : > { %v1538_v58 = vpop.eup %1537  ;;  %v1821_v60 = vadd.f32 1.0, %v1536_v54  ;;  %v1847_v12 = vmul.f32 -1.442695, %v1824_v61  ;;  %v1851_v15 = vmul.f32 -1.442695, %v1831_v0 }
  0xbd   : > { %v1540_v62 = vpop.eup %1539  ;;  %v1828_v63 = vadd.f32 1.0, %v1538_v58 }
  0xbe   : > { %v1542_v1 = vpop.eup %1541  ;;  %v639_v2 = vmul.f32 %v1540_v62, %v1802_v43  ;;  %1547 = vrcp.f32 %v1821_v60  ;;  %vm644_vm4 = vweird.f32 %v1540_v62  ;;  %v887_v14 = vand.u32 2147483647, %v1821_v60 }
  0xbf   : > { %v1544_v5 = vpop.eup %1543  ;;  %v759_v6 = vmul.f32 %v1542_v1, %v1805_v45  ;;  %1549 = vpow2.f32 %v1441_v56  ;;  %v889_v17 = vand.u32 2147483648, %v1821_v60  ;;  %vm764_vm6 = vweird.f32 %v1542_v1  ;;  %vm645_vm8 = vmor %vm643_vm0, %vm644_vm4 }
  0xc0   : > { %v1546_v9 = vpop.eup %1545  ;;  %v640_v10 = vsub.f32 1.0, %v639_v2  ;;  %1551 = vrcp.f32 %v1828_v63  ;;  %v1854_v18 = vadd.f32 1.0, %v1544_v5  ;;  %v1007_v21 = vand.u32 2147483647, %v1828_v63  ;;  %v475_v32 = vpop.f32.mrf.mxu2  ;;  %vm765_vm11 = vmor %vm763_vm1, %vm764_vm6 }
  0xc1   : > { %v760_v13 = vsub.f32 1.0, %v759_v6  ;;  %v1856_v19 = vadd.f32 1.0, %v1546_v9  ;;  %1553 = vpow2.f32 %v1449_v8  ;;  %vm883_vm7 = vweird.f32 %v1821_v60 }
  0xc2   : > { %v641_v16 = vmul.f32 %v1540_v62, %v640_v10  ;;  %v1009_v25 = vand.u32 2147483648, %v1828_v63  ;;  %1555 = vrcp.f32 %v1854_v18  ;;  %vm1866_vm9 = vcmp.eq.f32.partialorder %v887_v14, 8.507059e+37 }
  0xc3   : > { %v761_v20 = vmul.f32 %v1542_v1, %v760_v13  ;;  %vm1003_vm10 = vweird.f32 %v1828_v63  ;;  %v890_v39 = vor.u32 1.1754944e-38, %v889_v17  ;;  %v662_v40 = vand.u32 2147483647, %v1854_v18 }
  0xc4   : > { %v1548_v22 = vpop.eup %1547  ;;  %v642_v23 = vadd.f32 %v1540_v62, %v641_v16  ;;  %1557 = vrcp.f32 %v1856_v19  ;;  %vm1879_vm12 = vcmp.eq.f32.partialorder %v1007_v21, 8.507059e+37  ;;  %v1010_v48 = vor.u32 1.1754944e-38, %v1009_v25 }
  0xc5   : > { %v1550_v26 = vpop.eup %1549  ;;  %v762_v29 = vadd.f32 %v1542_v1, %v761_v20  ;;  %v879_v30 = vmul.f32 %v1548_v22, %v1821_v60  ;;  %v1887_v50 = vadd.f32 %v1778_v24, %v475_v32  ;;  %vm884_vm13 = vweird.f32 %v1548_v22 }
  0xc6   : > { %v1552_v35 = vpop.eup %1551  ;;  %v646_v36 = vsel %vm645_vm8, %v1540_v62, %v642_v23  ;;  %vm658_vm14 = vweird.f32 %v1854_v18  ;;  %v664_v56 = vand.u32 2147483648, %v1854_v18  ;;  %v1899_v58 = vadd.f32 1.0, %v1550_v26  ;;  %vm885_vm1 = vmor %vm883_vm7, %vm884_vm13 }
  0xc7   : > { %v651_v41 = vsel %vm1834_vm2, %v650_v4, %v646_v36  ;;  %v766_v42 = vsel %vm765_vm11, %v1542_v1, %v762_v29  ;;  %v880_v43 = vsub.f32 1.0, %v879_v30  ;;  %v999_v44 = vmul.f32 %v1552_v35, %v1828_v63  ;;  %v1554_v51 = vpop.eup %1553  ;;  %v495_v36 = vpop.f32.mrf.mxu3 }
  0xc8   : > { %v1118_v47 = vmul.f32 %v651_v41, %v1781_v27  ;;  %v771_v45 = vsel %vm1840_vm3, %v770_v11, %v766_v42  ;;  %v1556_v54 = vpop.eup %1555  ;;  %vm1004_vm15 = vweird.f32 %v1552_v35  ;;  %vm1902_vm0 = vcmp.eq.f32.partialorder %v662_v40, 8.507059e+37 }
  0xc9   : > { %v1126_v52 = vmul.f32 %v771_v45, %v1784_v28  ;;  %v881_v53 = vmul.f32 %v1548_v22, %v880_v43  ;;  %v1000_v27 = vsub.f32 1.0, %v999_v44  ;;  %v654_v2 = vmul.f32 %v1556_v54, %v1854_v18  ;;  %vm1005_vm3 = vmor %vm1003_vm10, %vm1004_vm15  ;;  %v437_v44 = vpop.f32.mrf.mxu0 }
  0xca   : > { %v1150_v55 = vpack.c.bf16 %v1118_v47, %v1118_v47  ;;  %v1558_v3 = vpop.eup %1557  ;;  %vm778_vm2 = vweird.f32 %v1856_v19  ;;  %v782_v4 = vand.u32 2147483647, %v1856_v19  ;;  %1559 = vrcp.f32 %v1899_v58 }
  0xcb   : > { %v1158_v59 = vpack.c.bf16 %v1126_v52, %v1126_v52  ;;  %v882_v62 = vadd.f32 %v1548_v22, %v881_v53  ;;  %v1001_v1 = vmul.f32 %v1552_v35, %v1000_v27  ;;  %v1914_v5 = vadd.f32 1.0, %v1554_v51 }
  0xcc   : > { %1183 = vst.msk [vmem:[%s1894_s17] sm:$0xf] %vm1182_vm5, %v1150_v55  ;;  %v655_v8 = vsub.f32 1.0, %v654_v2  ;;  %v774_v9 = vmul.f32 %v1558_v3, %v1856_v19  ;;  %vm659_vm4 = vweird.f32 %v1556_v54  ;;  %vm779_vm6 = vweird.f32 %v1558_v3 }
  0xcd   : > { %1191 = vst.msk [vmem:[%s1894_s17 + $0x20] sm:$0xf] %vm1182_vm5, %v1158_v59  ;;  %v886_v6 = vsel %vm885_vm1, %v1548_v22, %v882_v62  ;;  %v1002_v7 = vadd.f32 %v1552_v35, %v1001_v1  ;;  %v784_v60 = vand.u32 2147483648, %v1856_v19  ;;  %v902_v20 = vand.u32 2147483647, %v1899_v58  ;;  %vm660_vm7 = vmor %vm658_vm14, %vm659_vm4 }
  0xce   : > { %v891_v10 = vsel %vm1866_vm9, %v890_v39, %v886_v6  ;;  %v656_v14 = vmul.f32 %v1556_v54, %v655_v8  ;;  %v775_v16 = vsub.f32 1.0, %v774_v9  ;;  %v904_v21 = vand.u32 2147483648, %v1899_v58  ;;  %vm780_vm10 = vmor %vm778_vm2, %vm779_vm6 }
  0xcf   : > { %v1134_v11 = vmul.f32 %v891_v10, %v1789_v33  ;;  %v1006_v13 = vsel %vm1005_vm3, %v1552_v35, %v1002_v7  ;;  %1561 = vrcp.f32 %v1914_v5  ;;  %v665_v33 = vor.u32 1.1754944e-38, %v664_v56 }
  0xd0   : > { %v1011_v17 = vsel %vm1879_vm12, %v1010_v48, %v1006_v13  ;;  %v657_v23 = vadd.f32 %v1556_v54, %v656_v14  ;;  %v776_v25 = vmul.f32 %v1558_v3, %v775_v16  ;;  %v1560_v26 = vpop.eup %1559  ;;  %vm1935_vm8 = vcmp.eq.f32.partialorder %v782_v4, 8.507059e+37  ;;  %v457_v48 = vpop.f32.mrf.mxu1 }
  0xd1   : > { %v1166_v63 = vpack.c.bf16 %v1134_v11, %v1134_v11  ;;  %v1142_v22 = vmul.f32 %v1011_v17, %v1792_v34  ;;  %v785_v30 = vor.u32 1.1754944e-38, %v784_v60  ;;  %vm898_vm9 = vweird.f32 %v1899_v58  ;;  %v497_v11 = vpop.f32.mrf.mxu3 }
  0xd2   : > { %v661_v34 = vsel %vm660_vm7, %v1556_v54, %v657_v23  ;;  %v777_v32 = vadd.f32 %v1558_v3, %v776_v25  ;;  %v894_v35 = vmul.f32 %v1560_v26, %v1899_v58  ;;  %vm899_vm11 = vweird.f32 %v1560_v26 }
  0xd3   : > { %1199 = vst.msk [vmem:[%s1894_s17 + $0x40] sm:$0xf] %vm1182_vm5, %v1166_v63  ;;  %v1174_v31 = vpack.c.bf16 %v1142_v22, %v1142_v22  ;;  %v666_v18 = vsel %vm1902_vm0, %v665_v33, %v661_v34  ;;  %vm1948_vm12 = vcmp.eq.f32.partialorder %v902_v20, 8.507059e+37  ;;  %v905_v40 = vor.u32 1.1754944e-38, %v904_v21  ;;  %vm900_vm14 = vmor %vm898_vm9, %vm899_vm11  ;;  %v440_v20 = vpop.f32.mrf.mxu0 }
  0xd4   : > { %v1119_v41 = vmul.f32 %v666_v18, %v1795_v37  ;;  %v781_v42 = vsel %vm780_vm10, %v1558_v3, %v777_v32  ;;  %v895_v43 = vsub.f32 1.0, %v894_v35  ;;  %1563 = vpow2.f32 %v1847_v12 }
  0xd5   : > { %1207 = vst.msk [vmem:[%s1894_s17 + $0x60] sm:$0xf] %vm1182_vm5, %v1174_v31  ;;  %v1562_v46 = vpop.eup %1561  ;;  %v786_v19 = vsel %vm1935_vm8, %v785_v30, %v781_v42  ;;  %1565 = vpow2.f32 %v1851_v15  ;;  %v1442_v47 = vmul.f32 -1.442695, %v1887_v50  ;;  %v1961_v45 = vadd.f32 %v1778_v24, %v495_v36 }
  0xd6   : > { %v1151_v51 = vpack.c.bf16 %v1119_v41, %v1119_v41  ;;  %v1127_v37 = vmul.f32 %v786_v19, %v1798_v38  ;;  %v896_v52 = vmul.f32 %v1560_v26, %v895_v43  ;;  %v1014_v12 = vmul.f32 %v1562_v46, %v1914_v5  ;;  %v477_v38 = vpop.f32.mrf.mxu2 }
  0xd7   : > { %vm1018_vm13 = vweird.f32 %v1914_v5  ;;  %1567 = vpow2.f32 %v1442_v47  ;;  %v1450_v53 = vmul.f32 -1.442695, %v1961_v45  ;;  %v1968_v15 = vadd.f32 %v1778_v24, %v437_v44 }
  0xd8   : > { %1184 = vst.msk [vmem:[%s1894_s17 + $0x4] sm:$0xf] %vm1182_vm5, %v1151_v51  ;;  %v1159_v27 = vpack.c.bf16 %v1127_v37, %v1127_v37  ;;  %v897_v54 = vadd.f32 %v1560_v26, %v896_v52  ;;  %v1015_v55 = vsub.f32 1.0, %v1014_v12  ;;  %v1973_v56 = vadd.f32 %v1778_v24, %v457_v48 }
  0xd9   : > { %v1022_v59 = vand.u32 2147483647, %v1914_v5  ;;  %v1024_v62 = vand.u32 2147483648, %v1914_v5  ;;  %1569 = vpow2.f32 %v1450_v53  ;;  %v1427_v1 = vmul.f32 -1.442695, %v1968_v15 }
  0xda   : > { %v1564_v2 = vpop.eup %1563  ;;  %1192 = vst.msk [vmem:[%s1894_s17 + $0x24] sm:$0xf] %vm1182_vm5, %v1159_v27  ;;  %v901_v28 = vsel %vm900_vm14, %v1560_v26, %v897_v54  ;;  %v1016_v3 = vmul.f32 %v1562_v46, %v1015_v55  ;;  %vm1019_vm15 = vweird.f32 %v1562_v46  ;;  %v1435_v4 = vmul.f32 -1.442695, %v1973_v56 }
  0xdb   : > { %v1566_v6 = vpop.eup %1565  ;;  %v906_v58 = vsel %vm1948_vm12, %v905_v40, %v901_v28  ;;  %v1986_v7 = vadd.f32 1.0, %v1564_v2  ;;  %1571 = vpow2.f32 %v1427_v1  ;;  %v1989_v8 = vadd.f32 %v1778_v24, %v477_v38  ;;  %vm1020_vm0 = vmor %vm1018_vm13, %vm1019_vm15 }
  0xdc   : > { %v1135_v9 = vmul.f32 %v906_v58, %v1811_v49  ;;  %v1017_v10 = vadd.f32 %v1562_v46, %v1016_v3  ;;  %v1992_v60 = vadd.f32 1.0, %v1566_v6  ;;  %1573 = vpow2.f32 %v1435_v4 }
  0xdd   : > { %v1568_v13 = vpop.eup %1567  ;;  %v1025_v14 = vor.u32 1.1754944e-38, %v1024_v62  ;;  %1575 = vrcp.f32 %v1986_v7  ;;  %vm1023_vm1 = vcmp.eq.f32.partialorder %v1022_v59, 8.507059e+37  ;;  %v677_v63 = vand.u32 2147483647, %v1986_v7  ;;  %v500_v62 = vpop.f32.mrf.mxu3 }
  0xde   : > { %v1167_v16 = vpack.c.bf16 %v1135_v9, %v1135_v9  ;;  %v1021_v17 = vsel %vm1020_vm0, %v1562_v46, %v1017_v10  ;;  %1577 = vrcp.f32 %v1992_v60  ;;  %v1443_v22 = vmul.f32 -1.442695, %v1989_v8 }
  0xdf   : > { %v1570_v49 = vpop.eup %1569  ;;  %v1026_v21 = vsel %vm1023_vm1, %v1025_v14, %v1021_v17  ;;  %v2001_v23 = vadd.f32 %v1778_v24, %v497_v11  ;;  %v679_v25 = vand.u32 2147483648, %v1986_v7  ;;  %v2007_v26 = vadd.f32 1.0, %v1568_v13 }
  0xe0   : > { %1200 = vst.msk [vmem:[%s1894_s17 + $0x44] sm:$0xf] %vm1182_vm5, %v1167_v16  ;;  %v1143_v5 = vmul.f32 %v1026_v21, %v1818_v57  ;;  %v2009_v33 = vadd.f32 1.0, %v1570_v49  ;;  %v797_v30 = vand.u32 2147483647, %v1992_v60  ;;  %v799_v31 = vand.u32 2147483648, %v1992_v60 }
  0xe1   : > { %v1572_v29 = vpop.eup %1571  ;;  %v2014_v34 = vadd.f32 %v1778_v24, %v440_v20  ;;  %1579 = vrcp.f32 %v2007_v26  ;;  %vm673_vm2 = vweird.f32 %v1986_v7  ;;  %vm793_vm3 = vweird.f32 %v1992_v60 }
  0xe2   : > { %v1574_v32 = vpop.eup %1573  ;;  %v1175_v35 = vpack.c.bf16 %v1143_v5, %v1143_v5  ;;  %1581 = vrcp.f32 %v2009_v33  ;;  %v1451_v36 = vmul.f32 -1.442695, %v2001_v23  ;;  %vm2024_vm4 = vcmp.eq.f32.partialorder %v677_v63, 8.507059e+37 }
  0xe3   : > { %v1576_v57 = vpop.eup %1575  ;;  %v680_v41 = vor.u32 1.1754944e-38, %v679_v25  ;;  %1583 = vpow2.f32 %v1443_v22  ;;  %vm2029_vm6 = vcmp.eq.f32.partialorder %v797_v30, 8.507059e+37  ;;  %v800_v44 = vor.u32 1.1754944e-38, %v799_v31 }
  0xe4   : > { %v1578_v18 = vpop.eup %1577  ;;  %1208 = vst.msk [vmem:[%s1894_s17 + $0x64] sm:$0xf] %vm1182_vm5, %v1175_v35  ;;  %v669_v39 = vmul.f32 %v1576_v57, %v1986_v7  ;;  %v917_v46 = vand.u32 2147483647, %v2007_v26  ;;  %v2035_v19 = vmul.f32 -1.442695, %v2014_v34  ;;  %vm913_vm7 = vweird.f32 %v2007_v26  ;;  %v460_v35 = vpop.f32.mrf.mxu1 }
  0xe5   : > { %v789_v42 = vmul.f32 %v1578_v18, %v1992_v60  ;;  %v919_v48 = vand.u32 2147483648, %v2007_v26  ;;  %v1037_v51 = vand.u32 2147483647, %v2009_v33  ;;  %v2039_v37 = vadd.f32 1.0, %v1572_v29 }
  0xe6   : > { %v670_v47 = vsub.f32 1.0, %v669_v39  ;;  %v1039_v12 = vand.u32 2147483648, %v2009_v33  ;;  %v2043_v53 = vadd.f32 1.0, %v1574_v32  ;;  %1585 = vpow2.f32 %v1451_v36 }
  0xe7   : > { %v790_v52 = vsub.f32 1.0, %v789_v42  ;;  %v1580_v27 = vpop.eup %1579  ;;  %vm674_vm8 = vweird.f32 %v1576_v57  ;;  %vm1033_vm9 = vweird.f32 %v2009_v33  ;;  %1587 = vrcp.f32 %v2039_v37 }
  0xe8   : > { %v671_v54 = vmul.f32 %v1576_v57, %v670_v47  ;;  %v1582_v55 = vpop.eup %1581  ;;  %vm794_vm10 = vweird.f32 %v1578_v18  ;;  %v909_v59 = vmul.f32 %v1580_v27, %v2007_v26  ;;  %vm2048_vm11 = vcmp.eq.f32.partialorder %v917_v46, 8.507059e+37  ;;  %vm675_vm13 = vmor %vm673_vm2, %vm674_vm8 }
  0xe9   : > { %v791_v38 = vmul.f32 %v1578_v18, %v790_v52  ;;  %v1584_v1 = vpop.eup %1583  ;;  %v920_v28 = vor.u32 1.1754944e-38, %v919_v48  ;;  %v1029_v3 = vmul.f32 %v1582_v55, %v2009_v33  ;;  %vm2053_vm12 = vcmp.eq.f32.partialorder %v1037_v51, 8.507059e+37  ;;  %vm795_vm14 = vmor %vm793_vm3, %vm794_vm10 }
  0xea   : > { %v672_v2 = vadd.f32 %v1576_v57, %v671_v54  ;;  %v910_v58 = vsub.f32 1.0, %v909_v59  ;;  %v1040_v9 = vor.u32 1.1754944e-38, %v1039_v12  ;;  %1589 = vrcp.f32 %v2043_v53 }
  0xeb   : > { %v792_v6 = vadd.f32 %v1578_v18, %v791_v38  ;;  %vm914_vm15 = vweird.f32 %v1580_v27  ;;  %v1030_v11 = vsub.f32 1.0, %v1029_v3  ;;  %v692_v13 = vand.u32 2147483647, %v2039_v37 }
  0xec   : > { %v676_v10 = vsel %vm675_vm13, %v1576_v57, %v672_v2  ;;  %v1586_v14 = vpop.eup %1585  ;;  %v911_v7 = vmul.f32 %v1580_v27, %v910_v58  ;;  %v694_v20 = vand.u32 2147483648, %v2039_v37  ;;  %vm1034_vm0 = vweird.f32 %v1582_v55  ;;  %vm915_vm1 = vmor %vm913_vm7, %vm914_vm15  ;;  %v442_v58 = vpop.f32.mrf.mxu0 }
  0xed   : > { %v681_v16 = vsel %vm2024_vm4, %v680_v41, %v676_v10  ;;  %v796_v17 = vsel %vm795_vm14, %v1578_v18, %v792_v6  ;;  %v1588_v49 = vpop.eup %1587  ;;  %v1031_v60 = vmul.f32 %v1582_v55, %v1030_v11  ;;  %v812_v29 = vand.u32 2147483647, %v2043_v53  ;;  %vm1035_vm2 = vmor %vm1033_vm9, %vm1034_vm0 }
  0xee   : > { %v1120_v21 = vmul.f32 %v681_v16, %v1824_v61  ;;  %v801_v63 = vsel %vm2029_vm6, %v800_v44, %v796_v17  ;;  %v912_v5 = vadd.f32 %v1580_v27, %v911_v7  ;;  %v684_v25 = vmul.f32 %v1588_v49, %v2039_v37  ;;  %v480_v44 = vpop.f32.mrf.mxu2 }
  0xef   : > { %v1128_v22 = vmul.f32 %v801_v63, %v1831_v0  ;;  %v1032_v61 = vadd.f32 %v1582_v55, %v1031_v60  ;;  %v814_v31 = vand.u32 2147483648, %v2043_v53  ;;  %v2076_v32 = vadd.f32 1.0, %v1584_v1 }
  0xf0   : > { %v1152_v30 = vpack.c.bf16 %v1120_v21, %v1120_v21  ;;  %v1590_v57 = vpop.eup %1589  ;;  %v916_v36 = vsel %vm915_vm1, %v1580_v27, %v912_v5  ;;  %v685_v18 = vsub.f32 1.0, %v684_v25  ;;  %v2080_v39 = vadd.f32 1.0, %v1586_v14 }
  0xf1   : > { %v1160_v0 = vpack.c.bf16 %v1128_v22, %v1128_v22  ;;  %v921_v26 = vsel %vm2048_vm11, %v920_v28, %v916_v36  ;;  %v1036_v40 = vsel %vm1035_vm2, %v1582_v55, %v1032_v61  ;;  %vm689_vm3 = vweird.f32 %v1588_v49 }
  0xf2   : > { %1185 = vst.msk [vmem:[%s1894_s17 + $0x8] sm:$0xf] %vm1182_vm5, %v1152_v30  ;;  %v804_v41 = vmul.f32 %v1590_v57, %v2043_v53  ;;  %v1136_v42 = vmul.f32 %v921_v26, %v1887_v50  ;;  %v1041_v33 = vsel %vm2053_vm12, %v1040_v9, %v1036_v40  ;;  %v686_v43 = vmul.f32 %v1588_v49, %v685_v18  ;;  %v462_v9 = vpop.f32.mrf.mxu1 }
  0xf3   : > { %1193 = vst.msk [vmem:[%s1894_s17 + $0x28] sm:$0xf] %vm1182_vm5, %v1160_v0  ;;  %1591 = vrcp.f32 %v2076_v32  ;;  %v1144_v46 = vmul.f32 %v1041_v33, %v1961_v45  ;;  %vm688_vm4 = vweird.f32 %v2039_v37  ;;  %v2096_v48 = vadd.f32 %v1778_v24, %v460_v35 }
  0xf4   : > { %v805_v47 = vsub.f32 1.0, %v804_v41  ;;  %v1168_v51 = vpack.c.bf16 %v1136_v42, %v1136_v42  ;;  %v687_v52 = vadd.f32 %v1588_v49, %v686_v43  ;;  %vm693_vm6 = vcmp.eq.f32.partialorder %v692_v13, 8.507059e+37  ;;  %vm690_vm7 = vmor %vm688_vm4, %vm689_vm3 }
  0xf5   : > { %1593 = vrcp.f32 %v2080_v39  ;;  %v1176_v50 = vpack.c.bf16 %v1144_v46, %v1144_v46  ;;  %v695_v12 = vor.u32 1.1754944e-38, %v694_v20  ;;  %vm809_vm8 = vweird.f32 %v1590_v57 }
  0xf6   : > { %v806_v27 = vmul.f32 %v1590_v57, %v805_v47  ;;  %1201 = vst.msk [vmem:[%s1894_s17 + $0x48] sm:$0xf] %vm1182_vm5, %v1168_v51  ;;  %v691_v45 = vsel %vm690_vm7, %v1588_v49, %v687_v52  ;;  %vm808_vm9 = vweird.f32 %v2043_v53  ;;  %vm2103_vm10 = vcmp.eq.f32.partialorder %v812_v29, 8.507059e+37  ;;  %v482_v60 = vpop.f32.mrf.mxu2 }
  0xf7   : > { %v815_v54 = vor.u32 1.1754944e-38, %v814_v31  ;;  %1209 = vst.msk [vmem:[%s1894_s17 + $0x68] sm:$0xf] %vm1182_vm5, %v1176_v50  ;;  %v696_v55 = vsel %vm693_vm6, %v695_v12, %v691_v45  ;;  %vm928_vm11 = vweird.f32 %v2076_v32  ;;  %1595 = vpow2.f32 %v2035_v19  ;;  %vm810_vm12 = vmor %vm808_vm9, %vm809_vm8 }
  0xf8   : > { %v807_v38 = vadd.f32 %v1590_v57, %v806_v27  ;;  %v1436_v59 = vmul.f32 -1.442695, %v2096_v48  ;;  %v1121_v2 = vmul.f32 %v696_v55, %v1968_v15  ;;  %v932_v53 = vand.u32 2147483647, %v2076_v32 }
  0xf9   : > { %v1592_v1 = vpop.eup %1591  ;;  %v934_v28 = vand.u32 2147483648, %v2076_v32  ;;  %v2117_v3 = vadd.f32 %v1778_v24, %v480_v44  ;;  %v1052_v19 = vand.u32 2147483647, %v2080_v39  ;;  %v2125_v14 = vadd.f32 %v1778_v24, %v500_v62  ;;  %v502_v44 = vpop.f32.mrf.mxu3 }
  0xfa   : > { %v811_v4 = vsel %vm810_vm12, %v1590_v57, %v807_v38  ;;  %v924_v6 = vmul.f32 %v1592_v1, %v2076_v32  ;;  %1597 = vpow2.f32 %v1436_v59  ;;  %v1153_v15 = vpack.c.bf16 %v1121_v2, %v1121_v2 }
  0xfb   : > { %v1594_v10 = vpop.eup %1593  ;;  %v816_v11 = vsel %vm2103_vm10, %v815_v54, %v811_v4  ;;  %v1444_v13 = vmul.f32 -1.442695, %v2117_v3  ;;  %v1054_v20 = vand.u32 2147483648, %v2080_v39  ;;  %v1452_v49 = vmul.f32 -1.442695, %v2125_v14 }
  0xfc   : > { %v1129_v16 = vmul.f32 %v816_v11, %v1973_v56  ;;  %v925_v17 = vsub.f32 1.0, %v924_v6  ;;  %v1044_v7 = vmul.f32 %v1594_v10, %v2080_v39  ;;  %1186 = vst.msk [vmem:[%s1894_s17 + $0xc] sm:$0xf] %vm1182_vm5, %v1153_v15  ;;  %v2134_v21 = vadd.f32 %v1778_v24, %v442_v58 }
  0xfd   : > { %1599 = vpow2.f32 %v1444_v13  ;;  %v2137_v63 = vadd.f32 %v1778_v24, %v462_v9  ;;  %v1596_v22 = vpop.eup %1595  ;;  %vm929_vm13 = vweird.f32 %v1592_v1  ;;  %vm1049_vm14 = vweird.f32 %v1594_v10 }
  0xfe   : > { %v1161_v56 = vpack.c.bf16 %v1129_v16, %v1129_v16  ;;  %v926_v5 = vmul.f32 %v1592_v1, %v925_v17  ;;  %v1045_v25 = vsub.f32 1.0, %v1044_v7  ;;  %v2139_v29 = vadd.f32 1.0, %v1596_v22  ;;  %vm930_vm15 = vmor %vm928_vm11, %vm929_vm13 }
  0xff   : > { %1601 = vpow2.f32 %v1452_v49  ;;  %v1429_v30 = vmul.f32 -1.442695, %v2134_v21  ;;  %v1437_v61 = vmul.f32 -1.442695, %v2137_v63  ;;  %v2146_v0 = vadd.f32 %v1778_v24, %v482_v60 }
 0x100   : > { %v1598_v31 = vpop.eup %1597  ;;  %1194 = vst.msk [vmem:[%s1894_s17 + $0x2c] sm:$0xf] %vm1182_vm5, %v1161_v56  ;;  %v927_v35 = vadd.f32 %v1592_v1, %v926_v5  ;;  %v1046_v57 = vmul.f32 %v1594_v10, %v1045_v25  ;;  %vm933_vm0 = vcmp.eq.f32.partialorder %v932_v53, 8.507059e+37  ;;  %v935_v36 = vor.u32 1.1754944e-38, %v934_v28 }
 0x101   : > { %vm1048_vm1 = vweird.f32 %v2080_v39  ;;  %1603 = vrcp.f32 %v2139_v29  ;;  %v2152_v40 = vadd.f32 1.0, %v1598_v31  ;;  %vm1053_vm3 = vcmp.eq.f32.partialorder %v1052_v19, 8.507059e+37 }
 0x102   : > { %v931_v18 = vsel %vm930_vm15, %v1592_v1, %v927_v35  ;;  %v1047_v26 = vadd.f32 %v1594_v10, %v1046_v57  ;;  %1605 = vpow2.f32 %v1429_v30  ;;  %vm1050_vm2 = vmor %vm1048_vm1, %vm1049_vm14  ;;  %v1055_v33 = vor.u32 1.1754944e-38, %v1054_v20 }
 0x103   : > { %v1600_v41 = vpop.eup %1599  ;;  %v936_v42 = vsel %vm933_vm0, %v935_v36, %v931_v18  ;;  %1607 = vpow2.f32 %v1437_v61  ;;  %v1445_v39 = vmul.f32 -1.442695, %v2146_v0  ;;  %v707_v51 = vand.u32 2147483647, %v2139_v29 }
 0x104   : > { %v1137_v32 = vmul.f32 %v936_v42, %v1989_v8  ;;  %v1051_v43 = vsel %vm1050_vm2, %v1594_v10, %v1047_v26  ;;  %1609 = vrcp.f32 %v2152_v40  ;;  %v709_v52 = vand.u32 2147483648, %v2139_v29 }
 0x105   : > { %v1602_v46 = vpop.eup %1601  ;;  %v1056_v47 = vsel %vm1053_vm3, %v1055_v33, %v1051_v43  ;;  %v2159_v50 = vadd.f32 1.0, %v1600_v41  ;;  %v827_v37 = vand.u32 2147483647, %v2152_v40  ;;  %v829_v54 = vand.u32 2147483648, %v2152_v40 }
 0x106   : > { %v1169_v12 = vpack.c.bf16 %v1137_v32, %v1137_v32  ;;  %v1145_v27 = vmul.f32 %v1056_v47, %v2001_v23  ;;  %v2162_v45 = vadd.f32 1.0, %v1602_v46  ;;  %v2168_v55 = vadd.f32 %v1778_v24, %v502_v44 }
 0x107   : > { %v1604_v8 = vpop.eup %1603  ;;  %1611 = vrcp.f32 %v2159_v50  ;;  %vm703_vm4 = vweird.f32 %v2139_v29  ;;  %vm2174_vm6 = vcmp.eq.f32.partialorder %v707_v51, 8.507059e+37  ;;  %v710_v2 = vor.u32 1.1754944e-38, %v709_v52 }
 0x108   : > { %v1606_v38 = vpop.eup %1605  ;;  %1202 = vst.msk [vmem:[%s1894_s17 + $0x4c] sm:$0xf] %vm1182_vm5, %v1169_v12  ;;  %v1177_v59 = vpack.c.bf16 %v1145_v27, %v1145_v27  ;;  %v699_v62 = vmul.f32 %v1604_v8, %v2139_v29  ;;  %1613 = vpow2.f32 %v1445_v39  ;;  %v947_v53 = vand.u32 2147483647, %v2159_v50  ;;  %v445_v27 = vpop.f32.mrf.mxu0 }
 0x109   : > { %v1608_v23 = vpop.eup %1607  ;;  %1615 = vrcp.f32 %v2162_v45  ;;  %vm823_vm7 = vweird.f32 %v2152_v40  ;;  %v949_v4 = vand.u32 2147483648, %v2159_v50  ;;  %v2184_v6 = vadd.f32 1.0, %v1606_v38 }
 0x10a   : > { %v1610_v24 = vpop.eup %1609  ;;  %1210 = vst.msk [vmem:[%s1894_s17 + $0x6c] sm:$0xf] %vm1182_vm5, %v1177_v59  ;;  %v700_v28 = vsub.f32 1.0, %v699_v62  ;;  %vm2187_vm8 = vcmp.eq.f32.partialorder %v827_v37, 8.507059e+37  ;;  %v830_v9 = vor.u32 1.1754944e-38, %v829_v54  ;;  %v1069_v10 = vand.u32 2147483648, %v2162_v45 }
 0x10b   : > { %v819_v19 = vmul.f32 %v1610_v24, %v2152_v40  ;;  %vm704_vm9 = vweird.f32 %v1604_v8  ;;  %v1067_v11 = vand.u32 2147483647, %v2162_v45  ;;  %1617 = vrcp.f32 %v2184_v6 }
 0x10c   : > { %v701_v15 = vmul.f32 %v1604_v8, %v700_v28  ;;  %vm943_vm10 = vweird.f32 %v2159_v50  ;;  %v724_v17 = vand.u32 2147483648, %v2184_v6  ;;  %v2196_v7 = vadd.f32 1.0, %v1608_v23  ;;  %vm705_vm14 = vmor %vm703_vm4, %vm704_vm9 }
 0x10d   : > { %v1612_v13 = vpop.eup %1611  ;;  %v820_v16 = vsub.f32 1.0, %v819_v19  ;;  %vm824_vm11 = vweird.f32 %v1610_v24  ;;  %vm2199_vm12 = vcmp.eq.f32.partialorder %v947_v53, 8.507059e+37  ;;  %v950_v56 = vor.u32 1.1754944e-38, %v949_v4  ;;  %v485_v53 = vpop.f32.mrf.mxu2 }
 0x10e   : > { %v1614_v20 = vpop.eup %1613  ;;  %v702_v49 = vadd.f32 %v1604_v8, %v701_v15  ;;  %v939_v60 = vmul.f32 %v1612_v13, %v2159_v50  ;;  %vm1063_vm13 = vweird.f32 %v2162_v45  ;;  %v1070_v30 = vor.u32 1.1754944e-38, %v1069_v10  ;;  %vm825_vm2 = vmor %vm823_vm7, %vm824_vm11 }
 0x10f   : > { %v1616_v5 = vpop.eup %1615  ;;  %v821_v25 = vmul.f32 %v1610_v24, %v820_v16  ;;  %v722_v61 = vand.u32 2147483647, %v2184_v6  ;;  %1619 = vrcp.f32 %v2196_v7  ;;  %vm944_vm15 = vweird.f32 %v1612_v13 }
 0x110   : > { %v706_v31 = vsel %vm705_vm14, %v1604_v8, %v702_v49  ;;  %v940_v35 = vsub.f32 1.0, %v939_v60  ;;  %v1059_v57 = vmul.f32 %v1616_v5, %v2162_v45  ;;  %vm2210_vm0 = vcmp.eq.f32.partialorder %v1067_v11, 8.507059e+37  ;;  %v465_v8 = vpop.f32.mrf.mxu1  ;;  %v1659_v49 = vld [vmem:[%s2436_s2] ss:$0 sm:$0xff]  ;;  %v447_v36 = vpop.f32.mrf.mxu0 }
 0x111   : > { %v711_v18 = vsel %vm2174_vm6, %v710_v2, %v706_v31  ;;  %v822_v29 = vadd.f32 %v1610_v24, %v821_v25  ;;  %vm718_vm1 = vweird.f32 %v2184_v6  ;;  %v725_v26 = vor.u32 1.1754944e-38, %v724_v17  ;;  %v1618_v42 = vpop.eup %1617  ;;  %vm945_vm6 = vmor %vm943_vm10, %vm944_vm15 }
 0x112   : > { %v2217_v41 = vadd.f32 1.0, %v1614_v20  ;;  %v1122_v33 = vmul.f32 %v711_v18, %v2014_v34  ;;  %v941_v32 = vmul.f32 %v1612_v13, %v940_v35  ;;  %v1060_v43 = vsub.f32 1.0, %v1059_v57 }
 0x113   : > { %vm1064_vm3 = vweird.f32 %v1616_v5  ;;  %v826_v39 = vsel %vm825_vm2, %v1610_v24, %v822_v29  ;;  %v714_v44 = vmul.f32 %v1618_v42, %v2184_v6  ;;  %vm2224_vm4 = vcmp.eq.f32.partialorder %v722_v61, 8.507059e+37 }
 0x114   : > { %v842_v47 = vand.u32 2147483647, %v2196_v7  ;;  %v844_v51 = vand.u32 2147483648, %v2196_v7  ;;  %v1154_v34 = vpack.c.bf16 %v1122_v33, %v1122_v33  ;;  %v831_v40 = vsel %vm2187_vm8, %v830_v9, %v826_v39  ;;  %vm1065_vm9 = vmor %vm1063_vm13, %vm1064_vm3 }
 0x115   : > { %v942_v52 = vadd.f32 %v1612_v13, %v941_v32  ;;  %v1061_v12 = vmul.f32 %v1616_v5, %v1060_v43  ;;  %v1620_v37 = vpop.eup %1619  ;;  %v1130_v54 = vmul.f32 %v831_v40, %v2096_v48  ;;  %v715_v38 = vsub.f32 1.0, %v714_v44  ;;  %v487_v46 = vpop.f32.mrf.mxu2 }
 0x116   : > { %vm838_vm7 = vweird.f32 %v2196_v7  ;;  %1621 = vrcp.f32 %v2217_v41  ;;  %1187 = vst.msk [vmem:[%s1894_s17 + $0x10] sm:$0xf] %vm1182_vm5, %v1154_v34  ;;  %vm719_vm8 = vweird.f32 %v1618_v42  ;;  %v834_v23 = vmul.f32 %v1620_v37, %v2196_v7 }
 0x117   : > { %v946_v59 = vsel %vm945_vm6, %v1612_v13, %v942_v52  ;;  %v1062_v62 = vadd.f32 %v1616_v5, %v1061_v12  ;;  %v1162_v1 = vpack.c.bf16 %v1130_v54, %v1130_v54  ;;  %v716_v50 = vmul.f32 %v1618_v42, %v715_v38  ;;  %v505_v13 = vpop.f32.mrf.mxu3 }
 0x118   : > { %v951_v48 = vsel %vm2199_vm12, %v950_v56, %v946_v59  ;;  %vm2246_vm10 = vcmp.eq.f32.partialorder %v842_v47, 8.507059e+37  ;;  %v835_v4 = vsub.f32 1.0, %v834_v23  ;;  %v845_v19 = vor.u32 1.1754944e-38, %v844_v51  ;;  %vm720_vm12 = vmor %vm718_vm1, %vm719_vm8 }
 0x119   : > { %v1138_v24 = vmul.f32 %v951_v48, %v2117_v3  ;;  %v1066_v28 = vsel %vm1065_vm9, %v1616_v5, %v1062_v62  ;;  %1195 = vst.msk [vmem:[%s1894_s17 + $0x30] sm:$0xf] %vm1182_vm5, %v1162_v1  ;;  %v717_v9 = vadd.f32 %v1618_v42, %v716_v50  ;;  %vm839_vm11 = vweird.f32 %v1620_v37 }
 0x11a   : > { %v1071_v58 = vsel %vm2210_vm0, %v1070_v30, %v1066_v28  ;;  %v1453_v45 = vmul.f32 -1.442695, %v2168_v55  ;;  %v836_v3 = vmul.f32 %v1620_v37, %v835_v4  ;;  %v962_v11 = vand.u32 2147483647, %v2217_v41  ;;  %vm840_vm13 = vmor %vm838_vm7, %vm839_vm11 }
 0x11b   : > { %v1170_v10 = vpack.c.bf16 %v1138_v24, %v1138_v24  ;;  %v1146_v15 = vmul.f32 %v1071_v58, %v2125_v14  ;;  %v721_v17 = vsel %vm720_vm12, %v1618_v42, %v717_v9  ;;  %v964_v20 = vand.u32 2147483648, %v2217_v41 }
 0x11c   : > { %v1622_v16 = vpop.eup %1621  ;;  %1623 = vpow2.f32 %v1453_v45  ;;  %v2265_v60 = vadd.f32 %v1659_v49, %v445_v27  ;;  %v726_v6 = vsel %vm2224_vm4, %v725_v26, %v721_v17  ;;  %v837_v22 = vadd.f32 %v1620_v37, %v836_v3 }
 0x11d   : > { %1203 = vst.msk [vmem:[%s1894_s17 + $0x50] sm:$0xf] %vm1182_vm5, %v1170_v10  ;;  %v1178_v14 = vpack.c.bf16 %v1146_v15, %v1146_v15  ;;  %v954_v56 = vmul.f32 %v1622_v16, %v2217_v41  ;;  %v1123_v5 = vmul.f32 %v726_v6, %v2134_v21  ;;  %vm959_vm14 = vweird.f32 %v1622_v16  ;;  %v467_v21 = vpop.f32.mrf.mxu1 }
 0x11e   : > { %v1430_v25 = vmul.f32 -1.442695, %v2265_v60  ;;  %v2277_v30 = vadd.f32 %v1659_v49, %v465_v8  ;;  %v841_v61 = vsel %vm840_vm13, %v1620_v37, %v837_v22  ;;  %v2281_v35 = vadd.f32 %v1659_v49, %v485_v53 }
 0x11f   : > { %1211 = vst.msk [vmem:[%s1894_s17 + $0x70] sm:$0xf] %vm1182_vm5, %v1178_v14  ;;  %v955_v31 = vsub.f32 1.0, %v954_v56  ;;  %v2283_v57 = vadd.f32 %v1659_v49, %v505_v13  ;;  %v1155_v18 = vpack.c.bf16 %v1123_v5, %v1123_v5  ;;  %v846_v7 = vsel %vm2246_vm10, %v845_v19, %v841_v61  ;;  %v507_v12 = vpop.f32.mrf.mxu3 }
 0x120   : > { %1625 = vpow2.f32 %v1430_v25  ;;  %v1438_v29 = vmul.f32 -1.442695, %v2277_v30  ;;  %v1131_v26 = vmul.f32 %v846_v7, %v2137_v63  ;;  %v1446_v33 = vmul.f32 -1.442695, %v2281_v35 }
 0x121   : > { %v956_v42 = vmul.f32 %v1622_v16, %v955_v31  ;;  %v1454_v32 = vmul.f32 -1.442695, %v2283_v57  ;;  %1188 = vst.msk [vmem:[%s1894_s17 + $0x14] sm:$0xf] %vm1182_vm5, %v1155_v18  ;;  %vm958_vm15 = vweird.f32 %v2217_v41  ;;  %v2294_v39 = vadd.f32 %v1659_v49, %v447_v36 }
 0x122   : > { %v1624_v43 = vpop.eup %1623  ;;  %1627 = vpow2.f32 %v1438_v29  ;;  %v2296_v44 = vadd.f32 %v1659_v49, %v467_v21  ;;  %v1163_v47 = vpack.c.bf16 %v1131_v26, %v1131_v26  ;;  %vm960_vm0 = vmor %vm958_vm15, %vm959_vm14  ;;  %v965_v34 = vor.u32 1.1754944e-38, %v964_v20 }
 0x123   : > { %v957_v51 = vadd.f32 %v1622_v16, %v956_v42  ;;  %v2298_v63 = vadd.f32 1.0, %v1624_v43  ;;  %1629 = vpow2.f32 %v1446_v33  ;;  %v1431_v40 = vmul.f32 -1.442695, %v2294_v39 }
 0x124   : > { %1631 = vpow2.f32 %v1454_v32  ;;  %1196 = vst.msk [vmem:[%s1894_s17 + $0x34] sm:$0xf] %vm1182_vm5, %v1163_v47  ;;  %vm963_vm1 = vcmp.eq.f32.partialorder %v962_v11, 8.507059e+37  ;;  %v2305_v52 = vadd.f32 %v1659_v49, %v487_v46  ;;  %v1439_v38 = vmul.f32 -1.442695, %v2296_v44 }
 0x125   : > { %v961_v41 = vsel %vm960_vm0, %v1622_v16, %v957_v51  ;;  %1633 = vrcp.f32 %v2298_v63  ;;  %v2311_v62 = vadd.f32 %v1659_v49, %v507_v12  ;;  %v1082_v2 = vand.u32 2147483647, %v2298_v63 }
 0x126   : > { %v1626_v27 = vpop.eup %1625  ;;  %v966_v8 = vsel %vm963_vm1, %v965_v34, %v961_v41  ;;  %1635 = vpow2.f32 %v1431_v40  ;;  %v1447_v48 = vmul.f32 -1.442695, %v2305_v52  ;;  %vm1078_vm2 = vweird.f32 %v2298_v63 }
 0x127   : > { %v1139_v37 = vmul.f32 %v966_v8, %v2146_v0  ;;  %v2308_v54 = vadd.f32 1.0, %v1626_v27  ;;  %v1084_v0 = vand.u32 2147483648, %v2298_v63  ;;  %v1455_v58 = vmul.f32 -1.442695, %v2311_v62 }
 0x128   : > { %v1628_v59 = vpop.eup %1627  ;;  %vm2332_vm3 = vcmp.eq.f32.partialorder %v1082_v2, 8.507059e+37 }
 0x129   : > { %v1630_v23 = vpop.eup %1629  ;;  %v1171_v1 = vpack.c.bf16 %v1139_v37, %v1139_v37  ;;  %1637 = vrcp.f32 %v2308_v54  ;;  %v2317_v53 = vadd.f32 1.0, %v1628_v59  ;;  %v737_v9 = vand.u32 2147483647, %v2308_v54 }
 0x12a   : > { %v1632_v50 = vpop.eup %1631  ;;  %v2319_v24 = vadd.f32 1.0, %v1630_v23  ;;  %1639 = vpow2.f32 %v1439_v38  ;;  %v739_v45 = vand.u32 2147483648, %v2308_v54  ;;  %v1085_v11 = vor.u32 1.1754944e-38, %v1084_v0 }
 0x12b   : > { %v1634_v28 = vpop.eup %1633  ;;  %1204 = vst.msk [vmem:[%s1894_s17 + $0x54] sm:$0xf] %vm1182_vm5, %v1171_v1  ;;  %v2323_v4 = vadd.f32 1.0, %v1632_v50  ;;  %1641 = vrcp.f32 %v2317_v53  ;;  %vm733_vm4 = vweird.f32 %v2308_v54  ;;  %v857_v16 = vand.u32 2147483647, %v2317_v53 }
 0x12c   : > { %v1074_v19 = vmul.f32 %v1634_v28, %v2298_v63  ;;  %1643 = vrcp.f32 %v2319_v24  ;;  %v1636_v10 = vpop.eup %1635  ;;  %v859_v17 = vand.u32 2147483648, %v2317_v53  ;;  %vm1079_vm6 = vweird.f32 %v1634_v28 }
 0x12d   : > { %1645 = vpow2.f32 %v1447_v48  ;;  %vm2341_vm7 = vcmp.eq.f32.partialorder %v737_v9, 8.507059e+37  ;;  %v740_v22 = vor.u32 1.1754944e-38, %v739_v45  ;;  %vm853_vm8 = vweird.f32 %v2317_v53  ;;  %vm1080_vm10 = vmor %vm1078_vm2, %vm1079_vm6 }
 0x12e   : > { %v1075_v15 = vsub.f32 1.0, %v1074_v19  ;;  %1647 = vrcp.f32 %v2323_v4  ;;  %v2346_v56 = vadd.f32 1.0, %v1636_v10  ;;  %vm973_vm9 = vweird.f32 %v2319_v24 }
 0x12f   : > { %v1638_v13 = vpop.eup %1637  ;;  %1649 = vpow2.f32 %v1455_v58  ;;  %v977_v31 = vand.u32 2147483647, %v2319_v24  ;;  %vm2353_vm11 = vcmp.eq.f32.partialorder %v857_v16, 8.507059e+37  ;;  %v860_v7 = vor.u32 1.1754944e-38, %v859_v17 }
 0x130   : > { %v1076_v20 = vmul.f32 %v1634_v28, %v1075_v15  ;;  %v729_v49 = vmul.f32 %v1638_v13, %v2308_v54  ;;  %v1640_v14 = vpop.eup %1639  ;;  %v979_v29 = vand.u32 2147483648, %v2319_v24  ;;  %vm734_vm12 = vweird.f32 %v1638_v13 }
 0x131   : > { %v1642_v5 = vpop.eup %1641  ;;  %vm1093_vm13 = vweird.f32 %v2323_v4  ;;  %1651 = vrcp.f32 %v2346_v56  ;;  %v2363_v51 = vadd.f32 1.0, %v1640_v14  ;;  %vm735_vm14 = vmor %vm733_vm4, %vm734_vm12  ;;  %v1097_v8 = vand.u32 2147483647, %v2323_v4 }
 0x132   : > { %v1077_v25 = vadd.f32 %v1634_v28, %v1076_v20  ;;  %v730_v61 = vsub.f32 1.0, %v729_v49  ;;  %v1644_v36 = vpop.eup %1643  ;;  %v849_v21 = vmul.f32 %v1642_v5, %v2317_v53  ;;  %vm854_vm15 = vweird.f32 %v1642_v5 }
 0x133   : > { %v1646_v26 = vpop.eup %1645  ;;  %v969_v32 = vmul.f32 %v1644_v36, %v2319_v24  ;;  %vm974_vm0 = vweird.f32 %v1644_v36  ;;  %v1099_v48 = vand.u32 2147483648, %v2323_v4  ;;  %vm855_vm2 = vmor %vm853_vm8, %vm854_vm15  ;;  %1653 = vrcp.f32 %v2363_v51 }
 0x134   : > { %v1081_v42 = vsel %vm1080_vm10, %v1634_v28, %v1077_v25  ;;  %v731_v33 = vmul.f32 %v1638_v13, %v730_v61  ;;  %v1648_v43 = vpop.eup %1647  ;;  %v850_v47 = vsub.f32 1.0, %v849_v21  ;;  %vm978_vm4 = vcmp.eq.f32.partialorder %v977_v31, 8.507059e+37 }
 0x135   : > { %v1086_v46 = vsel %vm2332_vm3, %v1085_v11, %v1081_v42  ;;  %v1650_v63 = vpop.eup %1649  ;;  %v970_v41 = vsub.f32 1.0, %v969_v32  ;;  %v1089_v12 = vmul.f32 %v1648_v43, %v2323_v4  ;;  %vm1094_vm1 = vweird.f32 %v1648_v43  ;;  %vm975_vm3 = vmor %vm973_vm9, %vm974_vm0 }
 0x136   : > { %v1147_v34 = vmul.f32 %v1086_v46, %v2168_v55  ;;  %v732_v40 = vadd.f32 %v1638_v13, %v731_v33  ;;  %v851_v27 = vmul.f32 %v1642_v5, %v850_v47  ;;  %v980_v19 = vor.u32 1.1754944e-38, %v979_v29  ;;  %vm1095_vm6 = vmor %vm1093_vm13, %vm1094_vm1 }
 0x137   : > { %v971_v59 = vmul.f32 %v1644_v36, %v970_v41  ;;  %v1090_v23 = vsub.f32 1.0, %v1089_v12  ;;  %v1652_v0 = vpop.eup %1651  ;;  %v2382_v58 = vadd.f32 1.0, %v1646_v26  ;;  %v1100_v24 = vor.u32 1.1754944e-38, %v1099_v48 }
 0x138   : > { %v1179_v37 = vpack.c.bf16 %v1147_v34, %v1147_v34  ;;  %v736_v38 = vsel %vm735_vm14, %v1638_v13, %v732_v40  ;;  %v852_v1 = vadd.f32 %v1642_v5, %v851_v27  ;;  %v744_v3 = vmul.f32 %v1652_v0, %v2346_v56 }
 0x139   : > { %v741_v55 = vsel %vm2341_vm7, %v740_v22, %v736_v38  ;;  %v972_v50 = vadd.f32 %v1644_v36, %v971_v59  ;;  %v1091_v2 = vmul.f32 %v1648_v43, %v1090_v23  ;;  %vm1098_vm7 = vcmp.eq.f32.partialorder %v1097_v8, 8.507059e+37 }
 0x13a   : > { %1212 = vst.msk [vmem:[%s1894_s17 + $0x74] sm:$0xf] %vm1182_vm5, %v1179_v37  ;;  %v1124_v54 = vmul.f32 %v741_v55, %v2265_v60  ;;  %v856_v28 = vsel %vm855_vm2, %v1642_v5, %v852_v1  ;;  %v745_v20 = vsub.f32 1.0, %v744_v3  ;;  %1655 = vrcp.f32 %v2382_v58 }
 0x13b   : > { %v861_v60 = vsel %vm2353_vm11, %v860_v7, %v856_v28  ;;  %v976_v53 = vsel %vm975_vm3, %v1644_v36, %v972_v50  ;;  %v1092_v45 = vadd.f32 %v1648_v43, %v1091_v2  ;;  %v752_v14 = vand.u32 2147483647, %v2346_v56 }
 0x13c   : > { %v1156_v9 = vpack.c.bf16 %v1124_v54, %v1124_v54  ;;  %v1132_v10 = vmul.f32 %v861_v60, %v2277_v30  ;;  %v981_v15 = vsel %vm978_vm4, %v980_v19, %v976_v53  ;;  %v1654_v30 = vpop.eup %1653  ;;  %v754_v6 = vand.u32 2147483648, %v2346_v56 }
 0x13d   : > { %v1140_v11 = vmul.f32 %v981_v15, %v2281_v35  ;;  %v1096_v13 = vsel %vm1095_vm6, %v1648_v43, %v1092_v45  ;;  %v746_v35 = vmul.f32 %v1652_v0, %v745_v20  ;;  %vm749_vm8 = vweird.f32 %v1652_v0 }
 0x13e   : > { %1189 = vst.msk [vmem:[%s1894_s17 + $0x18] sm:$0xf] %vm1182_vm5, %v1156_v9  ;;  %v1164_v16 = vpack.c.bf16 %v1132_v10, %v1132_v10  ;;  %v1101_v17 = vsel %vm1098_vm7, %v1100_v24, %v1096_v13  ;;  %v864_v22 = vmul.f32 %v1654_v30, %v2363_v51  ;;  %v637_v25 = vadd.f32 1.0, %v1650_v63 }
 0x13f   : > { %v1172_v4 = vpack.c.bf16 %v1140_v11, %v1140_v11  ;;  %v1148_v49 = vmul.f32 %v1101_v17, %v2283_v57  ;;  %v747_v61 = vadd.f32 %v1652_v0, %v746_v35  ;;  %vm748_vm9 = vweird.f32 %v2346_v56 }
 0x140   : > { %1197 = vst.msk [vmem:[%s1894_s17 + $0x38] sm:$0xf] %vm1182_vm5, %v1164_v16  ;;  %v865_v31 = vsub.f32 1.0, %v864_v22  ;;  %vm750_vm10 = vmor %vm748_vm9, %vm749_vm8  ;;  %vm753_vm11 = vcmp.eq.f32.partialorder %v752_v14, 8.507059e+37  ;;  %v755_v57 = vor.u32 1.1754944e-38, %v754_v6  ;;  %v874_v36 = vand.u32 2147483648, %v2363_v51  ;;  %v1656_v21 = vpop.eup %1655 }
 0x141   : > { %1205 = vst.msk [vmem:[%s1894_s17 + $0x58] sm:$0xf] %vm1182_vm5, %v1172_v4  ;;  %v1180_v5 = vpack.c.bf16 %v1148_v49, %v1148_v49  ;;  %1657 = vrcp.f32 %v637_v25  ;;  %v751_v18 = vsel %vm750_vm10, %v1652_v0, %v747_v61  ;;  %vm869_vm12 = vweird.f32 %v1654_v30 }
 0x142   : > { %v866_v7 = vmul.f32 %v1654_v30, %v865_v31  ;;  %v872_v29 = vand.u32 2147483647, %v2363_v51  ;;  %v756_v26 = vsel %vm753_vm11, %v755_v57, %v751_v18  ;;  %v984_v42 = vmul.f32 %v1656_v21, %v2382_v58 }
 0x143   : > { %1213 = vst.msk [vmem:[%s1894_s17 + $0x78] sm:$0xf] %vm1182_vm5, %v1180_v5  ;;  %v1125_v56 = vmul.f32 %v756_v26, %v2294_v39  ;;  %vm868_vm13 = vweird.f32 %v2363_v51  ;;  %v875_v32 = vor.u32 1.1754944e-38, %v874_v36  ;;  %v994_v63 = vand.u32 2147483648, %v2382_v58 }
 0x144   : > { %v867_v33 = vadd.f32 %v1654_v30, %v866_v7  ;;  %vm870_vm14 = vmor %vm868_vm13, %vm869_vm12  ;;  %v985_v43 = vsub.f32 1.0, %v984_v42  ;;  %vm873_vm15 = vcmp.eq.f32.partialorder %v872_v29, 8.507059e+37  ;;  %vm989_vm0 = vweird.f32 %v1656_v21 }
 0x145   : > { %v1157_v46 = vpack.c.bf16 %v1125_v56, %v1125_v56  ;;  %v992_v12 = vand.u32 2147483647, %v2382_v58  ;;  %vm988_vm1 = vweird.f32 %v2382_v58  ;;  %v995_v37 = vor.u32 1.1754944e-38, %v994_v63 }
 0x146   : > { %v871_v47 = vsel %vm870_vm14, %v1654_v30, %v867_v33  ;;  %v986_v41 = vmul.f32 %v1656_v21, %v985_v43  ;;  %vm990_vm2 = vmor %vm988_vm1, %vm989_vm0  ;;  %v1114_v23 = vand.u32 2147483648, %v637_v25  ;;  %v1112_v48 = vand.u32 2147483647, %v637_v25 }
 0x147   : > { %v1658_v34 = vpop.eup %1657  ;;  %v876_v40 = vsel %vm873_vm15, %v875_v32, %v871_v47  ;;  %1190 = vst.msk [vmem:[%s1894_s17 + $0x1c] sm:$0xf] %vm1182_vm5, %v1157_v46  ;;  %vm993_vm3 = vcmp.eq.f32.partialorder %v992_v12, 8.507059e+37  ;;  %vm1108_vm6 = vweird.f32 %v637_v25 }
 0x148   : > { %v1133_v39 = vmul.f32 %v876_v40, %v2296_v44  ;;  %v1104_v51 = vmul.f32 %v1658_v34, %v637_v25  ;;  %v987_v27 = vadd.f32 %v1656_v21, %v986_v41  ;;  %vm1109_vm4 = vweird.f32 %v1658_v34 }
 0x149   : > { %vm1110_vm7 = vmor %vm1108_vm6, %vm1109_vm4  ;;  %v1115_v2 = vor.u32 1.1754944e-38, %v1114_v23  ;;  %vm1113_vm8 = vcmp.eq.f32.partialorder %v1112_v48, 8.507059e+37 }
 0x14a   : > { %v1165_v8 = vpack.c.bf16 %v1133_v39, %v1133_v39  ;;  %v1105_v38 = vsub.f32 1.0, %v1104_v51  ;;  %v991_v59 = vsel %vm990_vm2, %v1656_v21, %v987_v27 }
 0x14b   : > { %v996_v55 = vsel %vm993_vm3, %v995_v37, %v991_v59 }
 0x14c   : > { %1198 = vst.msk [vmem:[%s1894_s17 + $0x3c] sm:$0xf] %vm1182_vm5, %v1165_v8  ;;  %v1106_v1 = vmul.f32 %v1658_v34, %v1105_v38  ;;  %v1141_v44 = vmul.f32 %v996_v55, %v2305_v52 }
 0x14e   : > { %v1107_v54 = vadd.f32 %v1658_v34, %v1106_v1  ;;  %v1173_v50 = vpack.c.bf16 %v1141_v44, %v1141_v44 }
 0x150   : > { %v1111_v0 = vsel %vm1110_vm7, %v1658_v34, %v1107_v54  ;;  %1206 = vst.msk [vmem:[%s1894_s17 + $0x5c] sm:$0xf] %vm1182_vm5, %v1173_v50 }
 0x151   : > { %v1116_v28 = vsel %vm1113_vm8, %v1115_v2, %v1111_v0 }
 0x152   : > { %v1149_v19 = vmul.f32 %v1116_v28, %v2311_v62 }
 0x154   : > { %v1181_v58 = vpack.c.bf16 %v1149_v19, %v1149_v19 }
 0x156   : > { %1214 = vst.msk [vmem:[%s1894_s17 + $0x7c] sm:$0xf] %vm1182_vm5, %v1181_v58 }
 0x157 PF: > { %s13_s14 = sadd.s32 1, %s1682_s14   ;;  %s2480_s12 = smov %s1678_s13 }
 0x158   : > { %p10_p5 = scmp.ge.s32.totalorder %s13_s14, 4   ;;  %s2481_s13 = smov %s2483_s15 }
 0x15a   :  { %12 = sbr.rel (!%p10_p5) target bundleno = 2 (0x2), region = 68 }

// kernel: _forward.3
= control target key start
LH: loop header
LB: loop body
LE: loop exit
PB: predicated region body
PF: predicated region fallthrough
CT: control target
= control target key end

     0   :  { %11 = vsyncpa [#allocation3], 0  ;;  %s8478_s0 = inlined_call_operand.vmem [shape: bf16[32,18,64], index: 0, kind: input, shape index: {}]   ;;  %s8479_s1 = inlined_call_operand.vmem [shape: bf16[32,18,64], index: 1, kind: input, shape index: {}]   ;;  %s8480_s2 = inlined_call_operand.vmem [shape: bf16[32,18,64], index: 2, kind: input, shape index: {}]   ;;  %s8481_s3 = inlined_call_operand.vmem [shape: bf16[9,64,128], index: 3, kind: input, shape index: {}]   ;;  %s8482_s4 = inlined_call_operand.vmem [shape: f32[1,1,128], index: 4, kind: input, shape index: {}]   ;;  %s8483_s5 = inlined_call_operand.vmem [shape: f32[32,16,128], index: 5, kind: input, shape index: {}]   ;;  %s8484_s6 = inlined_call_operand.hbm [shape: f32[32,16,128], index: 6, kind: output, shape index: {}]  }
   0x1   :  { %13 = vsyncpa [#allocation3 + $0x1], 0  ;;  %s6282_s21 = smov 0   ;;  %s6284_s22 = smov 0  }
   0x2   :  { %s6286_s23 = smov 0   ;;  %s6288_s24 = smov 0  }
   0x3 LB: > { %s6303_s25 = sadd.s32 4294967295, %s6243_s24   ;;  %s5187_s26 = sadd.s32 4294967294, %s6243_s24   ;;  %s6243_s24 = sphi %s6288_s24, %s8545_s24   ;;  %s6239_s23 = sphi %s6286_s23, %s8544_s23   ;;  %s6235_s22 = sphi %s6284_s22, %s8543_s22   ;;  %s6231_s21 = sphi %s6282_s21, %s8542_s21  }
   0x4   : > { %s6307_s27 = sadd.s32 1, %s6243_s24   ;;  %s172_s28 = sadd.s32 1, %s6239_s23 }
   0x5   : > { %s169_s29 = ssub.s32 %s6243_s24, %s6307_s27  ;;  %p182_p0 = scmp.ne.s32.totalorder %s6239_s23, %s6235_s22 }
   0x6   : > { %p170_p1 = scmp.eq.s32.totalorder %s169_s29, 0  ;;  %p183_p2 = scmp.eq.s32.totalorder %s6303_s25, 1 }
   0x7   : > { %p188_p3 = scmp.ne.s32.totalorder %s6235_s22, %s6231_s21  ;;  %p189_p4 = scmp.eq.s32.totalorder %s5187_s26, 1 }
   0x8   : > { %s6318_s30 = scalar_select %p170_p1, %s6239_s23, %s172_s28  }
   0x9   : > { %p6320_p5 = por %p183_p2, %p182_p0  ;;  %p6324_p6 = por %p189_p4, %p188_p3 }
   0xa   : > { %p5190_p7 = scmp.ge.s32.totalorder %s6243_s24, 1  ;;  %p253_p8 = scmp.lt.s32.totalorder %s6243_s24, 3 }
   0xc   : > { %p254_p9 = pnand %p5190_p7, %p253_p8 }
   0xe   : > { %257 = sbr.rel (%p254_p9) target bundleno = 822 (0x336), region = 44 }
  0x13   : > { %v5855_v0 = vld [vmem:[%s8481_s3 + $0x38] sm:$0xff]  ;;  %s5192_s11 = sshll.u32 %s6303_s25, 4  ;;  %v5854_v1 = vld [vmem:[%s8481_s3 + $0x30] sm:$0xff]  ;;  %v5853_v2 = vld [vmem:[%s8481_s3 + $0x28] sm:$0xff]  ;;  %vm388_vm0 = vsmask.f32 3328 }
  0x14   : > { %p303_p10 = scmp.lt.s32.totalorder %s5192_s11, 31  ;;  %5918 = vmatpush.bf16.msra.mxu1 %v5855_v0  ;;  %5919 = vmatpush.bf16.msra.mxu2 %v5855_v0  ;;  %vm389_vm1 = vsmask.f32 7440  ;;  %v5852_v3 = vld [vmem:[%s8481_s3 + $0x20] sm:$0xff]  ;;  %v5859_v25 = vld [vmem:[%s8481_s3 + $0x58] sm:$0xff]  ;;  %vm856_vm3 = vcmask 523264  }
  0x15   : > { %5920 = vmatpush.bf16.msra.mxu3 %v5855_v0  ;;  %909 = vmatpush.bf16.msra.mxu0 %v5855_v0  ;;  %v5879_v26 = vld [vmem:[%s8481_s3 + $0x78] sm:$0xff]  ;;  %vm6376_vm2 = vmor %vm388_vm0, %vm389_vm1  ;;  %vm1251_vm4 = vcmask 1042432   ;;  %vm1252_vm5 = vcmask 1046532   ;;  %s299_s29 = sand.u32 1, %s6235_s22   ;;  %s5917_s20 = sshll.u32 %s6303_s25, 8 }
  0x16   : > { %s8547_s11 = smov (!%p303_p10, %s5192_s11), 31  ;;  %v5851_v32 = vld [vmem:[%s8481_s3 + $0x18] sm:$0xff]  ;;  %vm6618_vm6 = vmor %vm1251_vm4, %vm1252_vm5  ;;  %s7725_s12 = sshll.u32 %s299_s29, 8 }
  0x17   : > { %s6340_s14 = smul.u32 12, %s8547_s11  ;;  %v5883_v33 = vld [vmem:[%s8481_s3 + $0x98] sm:$0xff]  ;;  %s5831_s28 = sshll.u32 %s8547_s11, 4 }
  0x18   : > { %5921 = vmatpush.bf16.msra.mxu1 %v5854_v1  ;;  %5922 = vmatpush.bf16.msra.mxu2 %v5854_v1  ;;  %s7706_s10 = scalar_lea.vmem %s8483_s5, %s5831_s28  ;;  %s7759_s13 = scalar_lea.vmem [#allocation2], %s7725_s12 }
  0x19   : > { %5923 = vmatpush.bf16.msra.mxu3 %v5854_v1  ;;  %910 = vmatpush.bf16.msra.mxu0 %v5854_v1  ;;  %s6349_s19 = scalar_lea.vmem %s8478_s0, %s6340_s14  ;;  %v5858_v1 = vld [vmem:[%s8481_s3 + $0x50] sm:$0xff]  ;;  %s6606_s15 = scalar_lea.vmem %s8479_s1, %s6340_s14 }
  0x1a   : > { %v344_v4 = vld [vmem:[%s6349_s19 + $0x30] sm:$0xf]  ;;  %v345_v5 = vld [vmem:[%s6349_s19 + $0x34] sm:$0xf]  ;;  %v346_v6 = vld [vmem:[%s6349_s19 + $0x38] sm:$0x1]  ;;  %s7070_s26 = scalar_lea.vmem %s8480_s2, %s6340_s14 }
  0x1b   : > { %v488_v7 = vshrl.u32 %v344_v4, 16  ;;  %v491_v8 = vshll.u32 %v344_v4, 16  ;;  %v497_v9 = vshll.u32 %v345_v5, 16  ;;  %v501_v10 = vshrl.u32 %v345_v5, 16  ;;  %v356_v11 = vld [vmem:[%s6349_s19 + $0x60] sm:$0xf] }
  0x1c   : > { %5924 = vmatpush.bf16.msra.mxu1 %v5853_v2  ;;  %5925 = vmatpush.bf16.msra.mxu2 %v5853_v2  ;;  %v507_v12 = vshll.u32 %v346_v6, 16  ;;  %v357_v13 = vld [vmem:[%s6349_s19 + $0x64] sm:$0xf]  ;;  %v358_v14 = vld [vmem:[%s6349_s19 + $0x68] sm:$0x1]  ;;  %v584_v15 = vshrl.u32 %v356_v11, 16 }
  0x1d   : > { %5926 = vmatpush.bf16.msra.mxu3 %v5853_v2  ;;  %911 = vmatpush.bf16.msra.mxu0 %v5853_v2  ;;  %v490_v16 = vrot.slane %v488_v7, 4  ;;  %v493_v17 = vrot.slane %v491_v8, 5  ;;  %v499_v18 = vrot.slane %v497_v9, 5  ;;  %v503_v19 = vrot.slane %v501_v10, 4  ;;  %v368_v20 = vld [vmem:[%s6349_s19 + $0x90] sm:$0xf] }
  0x1e   : > { %v509_v21 = vrot.slane %v507_v12, 5  ;;  %v586_v22 = vrot.slane %v584_v15, 4  ;;  %v587_v23 = vshll.u32 %v356_v11, 16  ;;  %v593_v24 = vshll.u32 %v357_v13, 16  ;;  %v369_v31 = vld [vmem:[%s6349_s19 + $0x94] sm:$0xf] }
  0x1f   : > { %v494_v27 = vor.u32 %v493_v17, %v490_v16  ;;  %v504_v28 = vor.u32 %v503_v19, %v499_v18  ;;  %v597_v29 = vshrl.u32 %v357_v13, 16  ;;  %v603_v30 = vshll.u32 %v358_v14, 16  ;;  %v370_v43 = vld [vmem:[%s6349_s19 + $0x98] sm:$0x1]  ;;  %v6386_v59 = vld [vmem:[%s6349_s19] sm:$0xf] }
  0x20   : > { %5927 = vmatpush.bf16.msra.mxu1 %v5852_v3  ;;  %5928 = vmatpush.bf16.msra.mxu2 %v5852_v3  ;;  %v589_v35 = vrot.slane %v587_v23, 5  ;;  %v595_v36 = vrot.slane %v593_v24, 5  ;;  %v680_v37 = vshrl.u32 %v368_v20, 16  ;;  %v683_v45 = vshll.u32 %v368_v20, 16  ;;  %v6391_v63 = vld [vmem:[%s6349_s19 + $0x4] sm:$0xf] }
  0x21   : > { %5929 = vmatpush.bf16.msra.mxu3 %v5852_v3  ;;  %912 = vmatpush.bf16.msra.mxu0 %v5852_v3  ;;  %v495_v38 = vrot.slane %v494_v27, 4  ;;  %v505_v39 = vrot.slane %v504_v28, 4  ;;  %v599_v40 = vrot.slane %v597_v29, 4  ;;  %v605_v41 = vrot.slane %v603_v30, 5  ;;  %v6394_v0 = vld [vmem:[%s6349_s19 + $0x8] sm:$0x1] }
  0x22   : > { %v590_v42 = vor.u32 %v589_v35, %v586_v22  ;;  %v682_v44 = vrot.slane %v680_v37, 4  ;;  %v689_v46 = vshll.u32 %v369_v31, 16  ;;  %v693_v50 = vshrl.u32 %v369_v31, 16  ;;  %v347_v10 = vld [vmem:[%s6349_s19 + $0x3c] sm:$0xf]  ;;  %v5878_v20 = vld [vmem:[%s8481_s3 + $0x70] sm:$0xff] }
  0x23   : > { %v500_v47 = vsel %vm6376_vm2, %v495_v38, %v499_v18  ;;  %v510_v48 = vsel %vm6376_vm2, %v505_v39, %v509_v21  ;;  %v600_v49 = vor.u32 %v599_v40, %v595_v36  ;;  %v685_v54 = vrot.slane %v683_v45, 5  ;;  %v348_v15 = vld [vmem:[%s6349_s19 + $0x40] sm:$0xf]  ;;  %v5850_v21 = vld [vmem:[%s8481_s3 + $0x10] sm:$0xff]  ;;  %v349_v27 = vld [vmem:[%s6349_s19 + $0x44] sm:$0x1] }
  0x24   : > { %1499 = vmatpush.bf16.msrb.mxu2 %v5859_v25  ;;  %1150 = vmatpush.bf16.msrb.mxu1 %v5851_v32  ;;  %v792_v51 = vunpack.c.l.b16 %v500_v47  ;;  %v793_v52 = vunpack.c.l.b16 %v510_v48  ;;  %v591_v53 = vrot.slane %v590_v42, 4  ;;  %v691_v56 = vrot.slane %v689_v46, 5  ;;  %v5882_v22 = vld [vmem:[%s8481_s3 + $0x90] sm:$0xff]  ;;  %s5086_s25 = sshll.u32 %s7759_s13, 4  ;;  %s5073_s11 = scalar_lea.sflag [#allocation3], %s299_s29  ;;  %s5087_s25 = int_to_ptr.vmem [resolvable:$true] %s5086_s25 }
  0x25   : > { %1829 = vmatpush.bf16.msrb.mxu3 %v5879_v26  ;;  %2463 = vmatpush.bf16.msrb.mxu0 %v5883_v33  ;;  %v601_v55 = vrot.slane %v600_v49, 4  ;;  %v695_v57 = vrot.slane %v693_v50, 4  ;;  %v699_v58 = vshll.u32 %v370_v43, 16  ;;  %v686_v62 = vor.u32 %v685_v54, %v682_v44  ;;  %v360_v45 = vld [vmem:[%s6349_s19 + $0x70] sm:$0xf] }
  0x26   : > { %v820_v60 = vpack.c.b16 %v793_v52, %v792_v51  ;;  %v596_v61 = vsel %vm6376_vm2, %v591_v53, %v595_v36  ;;  %v392_v8 = vshrl.u32 %v6386_v59, 16  ;;  %v395_v9 = vshll.u32 %v6386_v59, 16  ;;  %v359_v36 = vld [vmem:[%s6349_s19 + $0x6c] sm:$0xf]  ;;  %v361_v49 = vld [vmem:[%s6349_s19 + $0x74] sm:$0x1] }
  0x27   : > { %v606_v2 = vsel %vm6376_vm2, %v601_v55, %v605_v41  ;;  %v800_v3 = vunpack.c.l.b16 %v596_v61  ;;  %v696_v4 = vor.u32 %v695_v57, %v691_v56  ;;  %v701_v5 = vrot.slane %v699_v58, 5 }
  0x28   : > { %5229 = vmatmul.msk.bf16.vlgmr.msra.gmra.mxu1 %vm856_vm3, %v820_v60  ;;  %v801_v6 = vunpack.c.l.b16 %v606_v2  ;;  %v687_v7 = vrot.slane %v686_v62, 4  ;;  %1500 = vmatpush.bf16.msrb.mxu2 %v5858_v1  ;;  %v401_v12 = vshll.u32 %v6391_v63, 16  ;;  %v405_v13 = vshrl.u32 %v6391_v63, 16  ;;  %v371_v2 = vld [vmem:[%s6349_s19 + $0x9c] sm:$0xf] }
  0x29   : > { %v697_v11 = vrot.slane %v696_v4, 4  ;;  %v411_v14 = vshll.u32 %v6394_v0, 16  ;;  %v394_v18 = vrot.slane %v392_v8, 4  ;;  %v397_v19 = vrot.slane %v395_v9, 5  ;;  %1830 = vmatpush.bf16.msrb.mxu3 %v5878_v20  ;;  %1151 = vmatpush.bf16.msrb.mxu1 %v5850_v21  ;;  %v6441_v20 = vld [vmem:[%s6349_s19 + $0xc] sm:$0xf] }
  0x2a   : > { %v824_v16 = vpack.c.b16 %v801_v6, %v800_v3  ;;  %v692_v17 = vsel %vm6376_vm2, %v687_v7, %v691_v56  ;;  %v403_v25 = vrot.slane %v401_v12, 5  ;;  %v407_v26 = vrot.slane %v405_v13, 4  ;;  %2464 = vmatpush.bf16.msrb.mxu0 %v5882_v22  ;;  %v372_v6 = vld [vmem:[%s6349_s19 + $0xa0] sm:$0xf] }
  0x2b   : > { %v702_v23 = vsel %vm6376_vm2, %v697_v11, %v701_v5  ;;  %v808_v24 = vunpack.c.l.b16 %v692_v17  ;;  %v398_v29 = vor.u32 %v397_v19, %v394_v18  ;;  %v413_v30 = vrot.slane %v411_v14, 5  ;;  %v373_v11 = vld [vmem:[%s6349_s19 + $0xa4] sm:$0x1] }
  0x2c   : > { %5233 = vmatmul.msk.bf16.vlgmr.msra.gmra.mxu2 %vm856_vm3, %v824_v16  ;;  %v809_v28 = vunpack.c.l.b16 %v702_v23  ;;  %v408_v31 = vor.u32 %v407_v26, %v403_v25  ;;  %v512_v32 = vshrl.u32 %v347_v10, 16  ;;  %v515_v33 = vshll.u32 %v347_v10, 16 }
  0x2d   : > { %v521_v35 = vshll.u32 %v348_v15, 16  ;;  %v399_v38 = vrot.slane %v398_v29, 4  ;;  %v525_v39 = vshrl.u32 %v348_v15, 16  ;;  %v531_v40 = vshll.u32 %v349_v27, 16 }
  0x2e   : > { %v828_v37 = vpack.c.b16 %v809_v28, %v808_v24  ;;  %v409_v41 = vrot.slane %v408_v31, 4  ;;  %v514_v42 = vrot.slane %v512_v32, 4  ;;  %v517_v43 = vrot.slane %v515_v33, 5 }
  0x2f   : > { %v523_v44 = vrot.slane %v521_v35, 5  ;;  %v404_v46 = vsel %vm6376_vm2, %v399_v38, %v403_v25  ;;  %v527_v47 = vrot.slane %v525_v39, 4  ;;  %v533_v48 = vrot.slane %v531_v40, 5  ;;  %v5857_v25 = vld [vmem:[%s8481_s3 + $0x48] sm:$0xff]  ;;  %v6452_v35 = vld [vmem:[%s6349_s19 + $0x14] sm:$0x1] }
  0x30   : > { %5237 = vmatmul.msk.bf16.vlgmr.msra.gmra.mxu3 %vm856_vm3, %v828_v37  ;;  %v608_v50 = vshrl.u32 %v359_v36, 16  ;;  %v414_v51 = vsel %vm6376_vm2, %v409_v41, %v413_v30  ;;  %v784_v52 = vunpack.c.l.b16 %v404_v46  ;;  %v518_v53 = vor.u32 %v517_v43, %v514_v42  ;;  %v6449_v30 = vld [vmem:[%s6349_s19 + $0x10] sm:$0xf]  ;;  %1501 = vmatpush.bf16.msrb.mxu2 %v5857_v25 }
  0x31   : > { %v611_v54 = vshll.u32 %v359_v36, 16  ;;  %v785_v55 = vunpack.c.l.b16 %v414_v51  ;;  %v528_v56 = vor.u32 %v527_v47, %v523_v44  ;;  %v617_v58 = vshll.u32 %v360_v45, 16  ;;  %v5849_v51 = vld [vmem:[%s8481_s3 + $0x8] sm:$0xff] }
  0x32   : > { %v610_v57 = vrot.slane %v608_v50, 4  ;;  %v519_v60 = vrot.slane %v518_v53, 4  ;;  %v621_v62 = vshrl.u32 %v360_v45, 16  ;;  %v627_v1 = vshll.u32 %v361_v49, 16  ;;  %v6464_v45 = vld [vmem:[%s6349_s19 + $0x4c] sm:$0xf]  ;;  %1152 = vmatpush.bf16.msrb.mxu1 %v5849_v51 }
  0x33   : > { %v613_v61 = vrot.slane %v611_v54, 5  ;;  %v816_v3 = vpack.c.b16 %v785_v55, %v784_v52  ;;  %v529_v4 = vrot.slane %v528_v56, 4  ;;  %v619_v5 = vrot.slane %v617_v58, 5  ;;  %v5877_v50 = vld [vmem:[%s8481_s3 + $0x68] sm:$0xff] }
  0x34   : > { %v524_v7 = vsel %vm6376_vm2, %v519_v60, %v523_v44  ;;  %v623_v9 = vrot.slane %v621_v62, 4  ;;  %v629_v10 = vrot.slane %v627_v1, 5  ;;  %v704_v14 = vshrl.u32 %v371_v2, 16  ;;  %v6461_v44 = vld [vmem:[%s6349_s19 + $0x48] sm:$0xf]  ;;  %1831 = vmatpush.bf16.msrb.mxu3 %v5877_v50 }
  0x35   : > { %v614_v8 = vor.u32 %v613_v61, %v610_v57  ;;  %5225 = vmatmul.msk.bf16.vlgmr.msra.gmra.mxu0 %vm856_vm3, %v816_v3  ;;  %v534_v12 = vsel %vm6376_vm2, %v529_v4, %v533_v48  ;;  %v794_v13 = vunpack.c.l.b16 %v524_v7  ;;  %v707_v15 = vshll.u32 %v371_v2, 16  ;;  %v5881_v56 = vld [vmem:[%s8481_s3 + $0x88] sm:$0xff]  ;;  %v6480_v62 = vld [vmem:[%s6349_s19 + $0x50] sm:$0x1] }
  0x36   : > { %v795_v16 = vunpack.c.l.b16 %v534_v12  ;;  %v624_v18 = vor.u32 %v623_v9, %v619_v5  ;;  %v713_v19 = vshll.u32 %v372_v6, 16  ;;  %v706_v21 = vrot.slane %v704_v14, 4  ;;  %2465 = vmatpush.bf16.msrb.mxu0 %v5881_v56  ;;  %v362_v9 = vld [vmem:[%s6349_s19 + $0x78] sm:$0xf]  ;;  %v363_v14 = vld [vmem:[%s6349_s19 + $0x7c] sm:$0xf] }
  0x37   : > { %v615_v17 = vrot.slane %v614_v8, 4  ;;  %v709_v22 = vrot.slane %v707_v15, 5  ;;  %v717_v23 = vshrl.u32 %v372_v6, 16  ;;  %v723_v24 = vshll.u32 %v373_v11, 16 }
  0x38   : > { %v821_v26 = vpack.c.b16 %v795_v16, %v794_v13  ;;  %v625_v28 = vrot.slane %v624_v18, 4  ;;  %v715_v29 = vrot.slane %v713_v19, 5  ;;  %v416_v38 = vshrl.u32 %v6441_v20, 16 }
  0x39   : > { %v620_v27 = vsel %vm6376_vm2, %v615_v17, %v619_v5  ;;  %v710_v32 = vor.u32 %v709_v22, %v706_v21  ;;  %v719_v33 = vrot.slane %v717_v23, 4  ;;  %v725_v37 = vrot.slane %v723_v24, 5  ;;  %v364_v23 = vld [vmem:[%s6349_s19 + $0x80] sm:$0x1] }
  0x3a   : > { %v802_v31 = vunpack.c.l.b16 %v620_v27  ;;  %5230 = vmatmul.msk.bf16.gmra.mxu1 %vm856_vm3, %v821_v26  ;;  %v630_v36 = vsel %vm6376_vm2, %v625_v28, %v629_v10  ;;  %v419_v39 = vshll.u32 %v6441_v20, 16  ;;  %v425_v43 = vshll.u32 %v6449_v30, 16 }
  0x3b   : > { %v803_v40 = vunpack.c.l.b16 %v630_v36  ;;  %v711_v41 = vrot.slane %v710_v32, 4  ;;  %v720_v42 = vor.u32 %v719_v33, %v715_v29  ;;  %v418_v46 = vrot.slane %v416_v38, 4 }
  0x3c   : > { %v421_v47 = vrot.slane %v419_v39, 5  ;;  %v429_v48 = vshrl.u32 %v6449_v30, 16  ;;  %v435_v49 = vshll.u32 %v6452_v35, 16  ;;  %v427_v55 = vrot.slane %v425_v43, 5 }
  0x3d   : > { %v825_v52 = vpack.c.b16 %v803_v40, %v802_v31  ;;  %v716_v53 = vsel %vm6376_vm2, %v711_v41, %v715_v29  ;;  %v721_v54 = vrot.slane %v720_v42, 4  ;;  %v536_v2 = vshrl.u32 %v6461_v44, 16  ;;  %v374_v40 = vld [vmem:[%s6349_s19 + $0xa8] sm:$0xf] }
  0x3e   : > { %v810_v57 = vunpack.c.l.b16 %v716_v53  ;;  %v422_v58 = vor.u32 %v421_v47, %v418_v46  ;;  %v431_v60 = vrot.slane %v429_v48, 4  ;;  %v437_v61 = vrot.slane %v435_v49, 5  ;;  %v375_v46 = vld [vmem:[%s6349_s19 + $0xac] sm:$0xf]  ;;  %v376_v47 = vld [vmem:[%s6349_s19 + $0xb0] sm:$0x1] }
  0x3f   : > { %5234 = vmatmul.msk.bf16.gmra.mxu2 %vm856_vm3, %v825_v52  ;;  %v726_v1 = vsel %vm6376_vm2, %v721_v54, %v725_v37  ;;  %v539_v3 = vshll.u32 %v6461_v44, 16  ;;  %v545_v4 = vshll.u32 %v6464_v45, 16  ;;  %v549_v8 = vshrl.u32 %v6464_v45, 16 }
  0x40   : > { %v811_v5 = vunpack.c.l.b16 %v726_v1  ;;  %v423_v6 = vrot.slane %v422_v58, 4  ;;  %v432_v7 = vor.u32 %v431_v60, %v427_v55  ;;  %v538_v10 = vrot.slane %v536_v2, 4 }
  0x41   : > { %v541_v11 = vrot.slane %v539_v3, 5  ;;  %v547_v12 = vrot.slane %v545_v4, 5  ;;  %v555_v13 = vshll.u32 %v6480_v62, 16  ;;  %v551_v18 = vrot.slane %v549_v8, 4  ;;  %v6507_v4 = vld [vmem:[%s6349_s19 + $0x18] sm:$0xf] }
  0x42   : > { %v829_v15 = vpack.c.b16 %v811_v5, %v810_v57  ;;  %v428_v16 = vsel %vm6376_vm2, %v423_v6, %v427_v55  ;;  %v433_v17 = vrot.slane %v432_v7, 4  ;;  %v632_v24 = vshrl.u32 %v362_v9, 16  ;;  %v5856_v5 = vld [vmem:[%s8481_s3 + $0x40] sm:$0xff] }
  0x43   : > { %v786_v19 = vunpack.c.l.b16 %v428_v16  ;;  %v542_v21 = vor.u32 %v541_v11, %v538_v10  ;;  %v557_v22 = vrot.slane %v555_v13, 5  ;;  %v552_v26 = vor.u32 %v551_v18, %v547_v12  ;;  %v6518_v10 = vld [vmem:[%s6349_s19 + $0x20] sm:$0x1]  ;;  %1502 = vmatpush.bf16.msrb.mxu2 %v5856_v5  ;;  %v367_v5 = vld [vmem:[%s6349_s19 + $0x8c] sm:$0x1] }
  0x44   : > { %5238 = vmatmul.msk.bf16.gmra.mxu3 %vm856_vm3, %v829_v15  ;;  %v438_v25 = vsel %vm6376_vm2, %v433_v17, %v437_v61  ;;  %v635_v27 = vshll.u32 %v362_v9, 16  ;;  %v641_v28 = vshll.u32 %v363_v14, 16  ;;  %v634_v32 = vrot.slane %v632_v24, 4  ;;  %v6515_v9 = vld [vmem:[%s6349_s19 + $0x1c] sm:$0xf] }
  0x45   : > { %v787_v29 = vunpack.c.l.b16 %v438_v25  ;;  %v543_v31 = vrot.slane %v542_v21, 4  ;;  %v645_v33 = vshrl.u32 %v363_v14, 16  ;;  %v553_v36 = vrot.slane %v552_v26, 4  ;;  %v6532_v25 = vld [vmem:[%s6349_s19 + $0x58] sm:$0xf] }
  0x46   : > { %v637_v37 = vrot.slane %v635_v27, 5  ;;  %v643_v38 = vrot.slane %v641_v28, 5  ;;  %v651_v39 = vshll.u32 %v364_v23, 16  ;;  %v728_v54 = vshrl.u32 %v374_v40, 16 }
  0x47   : > { %v817_v41 = vpack.c.b16 %v787_v29, %v786_v19  ;;  %v548_v42 = vsel %vm6376_vm2, %v543_v31, %v547_v12  ;;  %v647_v43 = vrot.slane %v645_v33, 4  ;;  %v558_v48 = vsel %vm6376_vm2, %v553_v36, %v557_v22  ;;  %v6526_v19 = vld [vmem:[%s6349_s19 + $0x54] sm:$0xf]  ;;  %v5876_v31 = vld [vmem:[%s8481_s3 + $0x60] sm:$0xff] }
  0x48   : > { %v796_v49 = vunpack.c.l.b16 %v548_v42  ;;  %v638_v50 = vor.u32 %v637_v37, %v634_v32  ;;  %v653_v51 = vrot.slane %v651_v39, 5  ;;  %v797_v52 = vunpack.c.l.b16 %v558_v48  ;;  %v5848_v32 = vld [vmem:[%s8481_s3] sm:$0xff]  ;;  %1832 = vmatpush.bf16.msrb.mxu3 %v5876_v31 }
  0x49   : > { %5226 = vmatmul.msk.bf16.gmra.mxu0 %vm856_vm3, %v817_v41  ;;  %v648_v53 = vor.u32 %v647_v43, %v643_v38  ;;  %v731_v55 = vshll.u32 %v374_v40, 16  ;;  %v737_v57 = vshll.u32 %v375_v46, 16  ;;  %v741_v58 = vshrl.u32 %v375_v46, 16  ;;  %v5880_v33 = vld [vmem:[%s8481_s3 + $0x80] sm:$0xff]  ;;  %v6546_v40 = vld [vmem:[%s6349_s19 + $0x5c] sm:$0x1]  ;;  %1153 = vmatpush.bf16.msrb.mxu1 %v5848_v32 }
  0x4a   : > { %v639_v56 = vrot.slane %v638_v50, 4  ;;  %v747_v60 = vshll.u32 %v376_v47, 16  ;;  %v822_v61 = vpack.c.b16 %v797_v52, %v796_v49  ;;  %v730_v2 = vrot.slane %v728_v54, 4  ;;  %2466 = vmatpush.bf16.msrb.mxu0 %v5880_v33 }
  0x4b   : > { %v649_v1 = vrot.slane %v648_v53, 4  ;;  %v733_v3 = vrot.slane %v731_v55, 5  ;;  %v739_v7 = vrot.slane %v737_v57, 5  ;;  %v743_v8 = vrot.slane %v741_v58, 4 }
  0x4c   : > { %v644_v6 = vsel %vm6376_vm2, %v639_v56, %v643_v38  ;;  %5231 = vmatmul.msk.bf16.gmra.mxu1 %vm856_vm3, %v822_v61  ;;  %v749_v14 = vrot.slane %v747_v60, 5  ;;  %v440_v17 = vshrl.u32 %v6507_v4, 16  ;;  %v443_v18 = vshll.u32 %v6507_v4, 16  ;;  %v366_v61 = vld [vmem:[%s6349_s19 + $0x88] sm:$0xf] }
  0x4d   : > { %v654_v11 = vsel %vm6376_vm2, %v649_v1, %v653_v51  ;;  %v804_v12 = vunpack.c.l.b16 %v644_v6  ;;  %v734_v13 = vor.u32 %v733_v3, %v730_v2  ;;  %v744_v16 = vor.u32 %v743_v8, %v739_v7  ;;  %v365_v51 = vld [vmem:[%s6349_s19 + $0x84] sm:$0xf] }
  0x4e   : > { %v805_v15 = vunpack.c.l.b16 %v654_v11  ;;  %v449_v22 = vshll.u32 %v6515_v9, 16  ;;  %v453_v23 = vshrl.u32 %v6515_v9, 16  ;;  %v459_v24 = vshll.u32 %v6518_v10, 16 }
  0x4f   : > { %v735_v21 = vrot.slane %v734_v13, 4  ;;  %v745_v27 = vrot.slane %v744_v16, 4  ;;  %v442_v28 = vrot.slane %v440_v17, 4  ;;  %v445_v29 = vrot.slane %v443_v18, 5 }
  0x50   : > { %v826_v26 = vpack.c.b16 %v805_v15, %v804_v12  ;;  %v451_v37 = vrot.slane %v449_v22, 5  ;;  %v455_v38 = vrot.slane %v453_v23, 4  ;;  %v461_v39 = vrot.slane %v459_v24, 5  ;;  %v377_v23 = vld [vmem:[%s6349_s19 + $0xb4] sm:$0xf] }
  0x51   : > { %v740_v36 = vsel %vm6376_vm2, %v735_v21, %v739_v7  ;;  %v750_v41 = vsel %vm6376_vm2, %v745_v27, %v749_v14  ;;  %v446_v43 = vor.u32 %v445_v29, %v442_v28  ;;  %v560_v46 = vshrl.u32 %v6526_v19, 16  ;;  %v378_v28 = vld [vmem:[%s6349_s19 + $0xb8] sm:$0xf] }
  0x52   : > { %5235 = vmatmul.msk.bf16.gmra.mxu2 %vm856_vm3, %v826_v26  ;;  %v812_v42 = vunpack.c.l.b16 %v740_v36  ;;  %v813_v47 = vunpack.c.l.b16 %v750_v41  ;;  %v456_v48 = vor.u32 %v455_v38, %v451_v37  ;;  %v563_v49 = vshll.u32 %v6526_v19, 16  ;;  %v379_v36 = vld [vmem:[%s6349_s19 + $0xbc] sm:$0x1] }
  0x53   : > { %v569_v50 = vshll.u32 %v6532_v25, 16  ;;  %v447_v52 = vrot.slane %v446_v43, 4  ;;  %v562_v53 = vrot.slane %v560_v46, 4  ;;  %v573_v54 = vshrl.u32 %v6532_v25, 16 }
  0x54   : > { %v579_v55 = vshll.u32 %v6546_v40, 16  ;;  %v830_v56 = vpack.c.b16 %v813_v47, %v812_v42  ;;  %v457_v57 = vrot.slane %v456_v48, 4  ;;  %v565_v58 = vrot.slane %v563_v49, 5 }
  0x55   : > { %v571_v60 = vrot.slane %v569_v50, 5  ;;  %v452_v1 = vsel %vm6376_vm2, %v447_v52, %v451_v37  ;;  %v575_v2 = vrot.slane %v573_v54, 4  ;;  %v656_v6 = vshrl.u32 %v365_v51, 16  ;;  %v5907_v37 = vld [vmem:[%s8481_s3 + $0xd8] sm:$0xff] }
  0x56   : > { %v581_v3 = vrot.slane %v579_v55, 5  ;;  %5239 = vmatmul.msk.bf16.gmra.mxu3 %vm856_vm3, %v830_v56  ;;  %v462_v7 = vsel %vm6376_vm2, %v457_v57, %v461_v39  ;;  %v788_v8 = vunpack.c.l.b16 %v452_v1  ;;  %v566_v11 = vor.u32 %v565_v58, %v562_v53  ;;  %3171 = vmatpush.bf16.msra.mxu2 %v5907_v37  ;;  %v6576_v53 = vld [vmem:[%s6349_s19 + $0x24] sm:$0xf]  ;;  %v6581_v58 = vld [vmem:[%s6349_s19 + $0x28] sm:$0xf] }
  0x57   : > { %v659_v12 = vshll.u32 %v365_v51, 16  ;;  %v789_v13 = vunpack.c.l.b16 %v462_v7  ;;  %v576_v14 = vor.u32 %v575_v2, %v571_v60  ;;  %v658_v15 = vrot.slane %v656_v6, 4  ;;  %v5887_v6 = vld [vmem:[%s8481_s3 + $0xb8] sm:$0xff]  ;;  %v1617_v37 = vld [vmem:[%s6606_s15 + $0x4] sm:$0xf] }
  0x58   : > { %v665_v16 = vshll.u32 %v366_v61, 16  ;;  %v567_v17 = vrot.slane %v566_v11, 4  ;;  %v669_v21 = vshrl.u32 %v366_v61, 16  ;;  %v675_v22 = vshll.u32 %v367_v5, 16  ;;  %v5911_v5 = vld [vmem:[%s8481_s3 + $0xf8] sm:$0xff]  ;;  %2841 = vmatpush.bf16.msra.mxu1 %v5887_v6 }
  0x59   : > { %v661_v18 = vrot.slane %v659_v12, 5  ;;  %v818_v24 = vpack.c.b16 %v789_v13, %v788_v8  ;;  %v577_v26 = vrot.slane %v576_v14, 4  ;;  %v752_v41 = vshrl.u32 %v377_v23, 16  ;;  %v5915_v7 = vld [vmem:[%s8481_s3 + $0x118] sm:$0xff]  ;;  %3805 = vmatpush.bf16.msra.mxu3 %v5911_v5 }
  0x5a   : > { %v667_v27 = vrot.slane %v665_v16, 5  ;;  %v572_v29 = vsel %vm6376_vm2, %v567_v17, %v571_v60  ;;  %v671_v32 = vrot.slane %v669_v21, 4  ;;  %v677_v33 = vrot.slane %v675_v22, 5  ;;  %v6584_v60 = vld [vmem:[%s6349_s19 + $0x2c] sm:$0x1]  ;;  %4183 = vmatpush.bf16.msra.mxu0 %v5915_v7 }
  0x5b   : > { %v662_v31 = vor.u32 %v661_v18, %v658_v15  ;;  %5227 = vmatmul.msk.bf16.gmra.mxu0 %vm856_vm3, %v818_v24  ;;  %v582_v38 = vsel %vm6376_vm2, %v577_v26, %v581_v3  ;;  %v798_v39 = vunpack.c.l.b16 %v572_v29  ;;  %v755_v42 = vshll.u32 %v377_v23, 16 }
  0x5c   : > { %v799_v43 = vunpack.c.l.b16 %v582_v38  ;;  %v672_v47 = vor.u32 %v671_v32, %v667_v27  ;;  %v761_v48 = vshll.u32 %v378_v28, 16  ;;  %v754_v49 = vrot.slane %v752_v41, 4 }
  0x5d   : > { %v663_v46 = vrot.slane %v662_v31, 4  ;;  %v757_v50 = vrot.slane %v755_v42, 5  ;;  %v765_v51 = vshrl.u32 %v378_v28, 16  ;;  %v771_v52 = vshll.u32 %v379_v36, 16  ;;  %v1616_v36 = vld [vmem:[%s6606_s15] sm:$0xf] }
  0x5e   : > { %v823_v54 = vpack.c.b16 %v799_v43, %v798_v39  ;;  %v673_v56 = vrot.slane %v672_v47, 4  ;;  %v763_v57 = vrot.slane %v761_v48, 5  ;;  %v1259_v61 = vrot.slane %v6394_v0, 5 }
  0x5f   : > { %v668_v55 = vsel %vm6376_vm2, %v663_v46, %v667_v27  ;;  %v758_v2 = vor.u32 %v757_v50, %v754_v49  ;;  %v767_v3 = vrot.slane %v765_v51, 4  ;;  %v773_v11 = vrot.slane %v771_v52, 5 }
  0x60   : > { %v806_v1 = vunpack.c.l.b16 %v668_v55  ;;  %5232 = vmatmul.msk.bf16.gmra.mxu1 %vm856_vm3, %v823_v54  ;;  %v678_v8 = vsel %vm6376_vm2, %v673_v56, %v677_v33  ;;  %v464_v12 = vshrl.u32 %v6576_v53, 16  ;;  %v467_v13 = vshll.u32 %v6576_v53, 16 }
  0x61   : > { %v807_v14 = vunpack.c.l.b16 %v678_v8  ;;  %v759_v15 = vrot.slane %v758_v2, 4  ;;  %v768_v16 = vor.u32 %v767_v3, %v763_v57  ;;  %v473_v17 = vshll.u32 %v6581_v58, 16  ;;  %v1618_v2 = vld [vmem:[%s6606_s15 + $0x8] sm:$0x1] }
  0x62   : > { %v466_v18 = vrot.slane %v464_v12, 4  ;;  %v469_v21 = vrot.slane %v467_v13, 5  ;;  %v477_v22 = vshrl.u32 %v6581_v58, 16  ;;  %v483_v23 = vshll.u32 %v6584_v60, 16  ;;  %v5832_v12 = vld [vmem:[%s6349_s19] sm:$0xff] }
  0x63   : > { %v827_v24 = vpack.c.b16 %v807_v14, %v806_v1  ;;  %v764_v26 = vsel %vm6376_vm2, %v759_v15, %v763_v57  ;;  %v769_v27 = vrot.slane %v768_v16, 4  ;;  %v475_v28 = vrot.slane %v473_v17, 5 }
  0x64   : > { %v814_v29 = vunpack.c.l.b16 %v764_v26  ;;  %v470_v31 = vor.u32 %v469_v21, %v466_v18  ;;  %v479_v32 = vrot.slane %v477_v22, 4  ;;  %v485_v33 = vrot.slane %v483_v23, 5  ;;  %v1619_v26 = vld [vmem:[%s6606_s15 + $0xc] sm:$0xf] }
  0x65   : > { %5236 = vmatmul.msk.bf16.gmra.mxu2 %vm856_vm3, %v827_v24  ;;  %v774_v38 = vsel %vm6376_vm2, %v769_v27, %v773_v11  ;;  %v5337_v39 = vrot.slane %v6386_v59, 9  ;;  %v1256_v47 = vrot.slane %v6391_v63, 5  ;;  %v1947_v48 = vshrl.u32 %v1616_v36, 16 }
  0x66   : > { %v815_v41 = vunpack.c.l.b16 %v774_v38  ;;  %v471_v42 = vrot.slane %v470_v31, 4  ;;  %v480_v43 = vor.u32 %v479_v32, %v475_v28  ;;  %v1950_v49 = vshll.u32 %v1616_v36, 16 }
  0x67   : > { %v1956_v50 = vshll.u32 %v1617_v37, 16  ;;  %v1960_v51 = vshrl.u32 %v1617_v37, 16  ;;  %v1257_v55 = vsel %vm6618_vm6, %v5337_v39, %v1256_v47  ;;  %v1258_v57 = vrot.slane %v1256_v47, 4  ;;  %v5860_v39 = vld [vmem:[%s6606_s15] sm:$0xff] }
  0x68   : > { %v831_v52 = vpack.c.b16 %v815_v41, %v814_v29  ;;  %v476_v54 = vsel %vm6376_vm2, %v471_v42, %v475_v28  ;;  %v481_v59 = vrot.slane %v480_v43, 4  ;;  %v1375_v1 = vunpack.c.l.b16 %v1257_v55  ;;  %v1620_v29 = vld [vmem:[%s6606_s15 + $0x10] sm:$0xf] }
  0x69   : > { %v790_v56 = vunpack.c.l.b16 %v476_v54  ;;  %v1949_v3 = vrot.slane %v1947_v48, 4  ;;  %v1952_v5 = vrot.slane %v1950_v49, 5  ;;  %v1958_v6 = vrot.slane %v1956_v50, 5  ;;  %v5833_v54 = vld [vmem:[%s6349_s19 + $0xc] sm:$0xff] }
  0x6a   : > { %5240 = vmatmul.msk.bf16.gmra.mxu3 %vm856_vm3, %v831_v52  ;;  %v486_v63 = vsel %vm6376_vm2, %v481_v59, %v485_v33  ;;  %v1962_v7 = vrot.slane %v1960_v51, 4  ;;  %v1260_v11 = vsel %vm6618_vm6, %v1258_v57, %v1259_v61  ;;  %v1966_v16 = vshll.u32 %v1618_v2, 16  ;;  %v1621_v51 = vld [vmem:[%s6606_s15 + $0x14] sm:$0x1] }
  0x6b   : > { %v791_v8 = vunpack.c.l.b16 %v486_v63  ;;  %v1376_v13 = vunpack.c.l.b16 %v1260_v11  ;;  %v1953_v14 = vor.u32 %v1952_v5, %v1949_v3  ;;  %v5338_v18 = vrot.slane %v6441_v20, 9  ;;  %v1622_v3 = vld [vmem:[%s6606_s15 + $0x18] sm:$0xf]  ;;  %v1623_v63 = vld [vmem:[%s6606_s15 + $0x1c] sm:$0xf] }
  0x6c   : > { %v1963_v15 = vor.u32 %v1962_v7, %v1958_v6  ;;  %v1263_v23 = vrot.slane %v6449_v30, 5  ;;  %v1266_v0 = vrot.slane %v6452_v35, 5  ;;  %v1968_v24 = vrot.slane %v1966_v16, 5 }
  0x6d   : > { %v819_v17 = vpack.c.b16 %v791_v8, %v790_v56  ;;  %v1407_v21 = vpack.c.b16 %v1376_v13, %v1375_v1  ;;  %v1954_v22 = vrot.slane %v1953_v14, 4  ;;  %v1971_v35 = vshrl.u32 %v1619_v26, 16  ;;  %v5861_v14 = vld [vmem:[%s6606_s15 + $0xc] sm:$0xff] }
  0x6e   : > { %v1964_v61 = vrot.slane %v1963_v15, 4  ;;  %v1264_v27 = vsel %vm6618_vm6, %v5338_v18, %v1263_v23  ;;  %v1265_v28 = vrot.slane %v1263_v23, 4  ;;  %v1974_v32 = vshll.u32 %v1619_v26, 16 }
  0x6f   : > { %5228 = vmatmul.msk.bf16.gmra.mxu0 %vm856_vm3, %v819_v17  ;;  %v1377_v20 = vunpack.c.l.b16 %v1264_v27  ;;  %v1959_v31 = vsel %vm6376_vm2, %v1954_v22, %v1958_v6  ;;  %v1980_v37 = vshll.u32 %v1620_v29, 16  ;;  %v1984_v38 = vshrl.u32 %v1620_v29, 16  ;;  %v5834_v27 = vld [vmem:[%s6349_s19 + $0x18] sm:$0xff] }
  0x70   : > { %5321 = vmatmul.msk.bf16.vlgmr.msrb.gmra.mxu1 %vm856_vm3, %v5832_v12  ;;  %v1267_v30 = vsel %vm6618_vm6, %v1265_v28, %v1266_v0  ;;  %v1969_v33 = vsel %vm6376_vm2, %v1964_v61, %v1968_v24  ;;  %v2339_v42 = vunpack.c.l.b16 %v1959_v31  ;;  %v1973_v47 = vrot.slane %v1971_v35, 4  ;;  %v1624_v61 = vld [vmem:[%s6606_s15 + $0x20] sm:$0x1]  ;;  %v1626_v35 = vld [vmem:[%s6606_s15 + $0x28] sm:$0xf] }
  0x71   : > { %v1378_v36 = vunpack.c.l.b16 %v1267_v30  ;;  %v2340_v43 = vunpack.c.l.b16 %v1969_v33  ;;  %v1976_v48 = vrot.slane %v1974_v32, 5  ;;  %v1982_v49 = vrot.slane %v1980_v37, 5  ;;  %v1625_v30 = vld [vmem:[%s6606_s15 + $0x24] sm:$0xf] }
  0x72   : > { %v1986_v50 = vrot.slane %v1984_v38, 4  ;;  %v1990_v56 = vshll.u32 %v1621_v51, 16  ;;  %v1270_v5 = vrot.slane %v6515_v9, 5  ;;  %v1995_v6 = vshrl.u32 %v1622_v3, 16 }
  0x73   : > { %v1408_v41 = vpack.c.b16 %v1378_v36, %v1377_v20  ;;  %v2371_v52 = vpack.c.b16 %v2340_v43, %v2339_v42  ;;  %v1977_v59 = vor.u32 %v1976_v48, %v1973_v47  ;;  %v1998_v7 = vshll.u32 %v1622_v3, 16 }
  0x74   : > { %v1987_v55 = vor.u32 %v1986_v50, %v1982_v49  ;;  %v1992_v2 = vrot.slane %v1990_v56, 5  ;;  %v2004_v12 = vshll.u32 %v1623_v63, 16  ;;  %v2008_v13 = vshrl.u32 %v1623_v63, 16 }
  0x75   : > { %5377 = vmatmul.msk.bf16.vlgmr.msrb.gmra.mxu2 %vm856_vm3, %v1407_v21  ;;  %v1978_v57 = vrot.slane %v1977_v59, 4  ;;  %v5339_v15 = vrot.slane %v6507_v4, 9  ;;  %v1272_v16 = vrot.slane %v1270_v5, 4  ;;  %v1273_v9 = vrot.slane %v6518_v10, 5 }
  0x76   : > { %v1988_v1 = vrot.slane %v1987_v55, 4  ;;  %v1997_v21 = vrot.slane %v1995_v6, 4  ;;  %v2000_v22 = vrot.slane %v1998_v7, 5  ;;  %v2006_v23 = vrot.slane %v2004_v12, 5  ;;  %v5835_v7 = vld [vmem:[%s6349_s19 + $0x24] sm:$0xff] }
  0x77   : > { %v1983_v8 = vsel %vm6376_vm2, %v1978_v57, %v1982_v49  ;;  %v2010_v0 = vrot.slane %v2008_v13, 4  ;;  %v1271_v24 = vsel %vm6618_vm6, %v5339_v15, %v1270_v5  ;;  %v1274_v4 = vsel %vm6618_vm6, %v1272_v16, %v1273_v9  ;;  %v5906_v5 = vld [vmem:[%s8481_s3 + $0xd0] sm:$0xff] }
  0x78   : > { %v1993_v11 = vsel %vm6376_vm2, %v1988_v1, %v1992_v2  ;;  %v2341_v17 = vunpack.c.l.b16 %v1983_v8  ;;  %v2001_v10 = vor.u32 %v2000_v22, %v1997_v21  ;;  %v2014_v29 = vshll.u32 %v1624_v61, 16  ;;  %v1627_v1 = vld [vmem:[%s6606_s15 + $0x2c] sm:$0x1]  ;;  %3172 = vmatpush.bf16.msra.mxu2 %v5906_v5  ;;  %v5910_v15 = vld [vmem:[%s8481_s3 + $0xf0] sm:$0xff] }
  0x79   : > { %v2342_v18 = vunpack.c.l.b16 %v1993_v11  ;;  %v2011_v28 = vor.u32 %v2010_v0, %v2006_v23  ;;  %v1379_v20 = vunpack.c.l.b16 %v1271_v24  ;;  %v1380_v31 = vunpack.c.l.b16 %v1274_v4  ;;  %v5886_v16 = vld [vmem:[%s8481_s3 + $0xb0] sm:$0xff]  ;;  %3806 = vmatpush.bf16.msra.mxu3 %v5910_v15 }
  0x7a   : > { %5481 = vmatmul.msk.bf16.vlgmr.msrb.gmra.mxu3 %vm856_vm3, %v5860_v39  ;;  %v2002_v32 = vrot.slane %v2001_v10, 4  ;;  %v2016_v36 = vrot.slane %v2014_v29, 5  ;;  %v1277_v38 = vrot.slane %v6581_v58, 5  ;;  %v2019_v39 = vshrl.u32 %v1625_v30, 16  ;;  %v5914_v9 = vld [vmem:[%s8481_s3 + $0x110] sm:$0xff]  ;;  %2842 = vmatpush.bf16.msra.mxu1 %v5886_v16  ;;  %v5863_v29 = vld [vmem:[%s6606_s15 + $0x24] sm:$0xff] }
  0x7b   : > { %v2372_v26 = vpack.c.b16 %v2342_v18, %v2341_v17  ;;  %v2012_v33 = vrot.slane %v2011_v28, 4  ;;  %v1409_v37 = vpack.c.b16 %v1380_v31, %v1379_v20  ;;  %v2028_v42 = vshll.u32 %v1626_v35, 16  ;;  %v1628_v17 = vld [vmem:[%s6606_s15 + $0x30] sm:$0xf]  ;;  %v1629_v18 = vld [vmem:[%s6606_s15 + $0x34] sm:$0xf]  ;;  %4184 = vmatpush.bf16.msra.mxu0 %v5914_v9 }
  0x7c   : > { %v2032_v43 = vshrl.u32 %v1626_v35, 16  ;;  %v2007_v47 = vsel %vm6376_vm2, %v2002_v32, %v2006_v23  ;;  %v5340_v49 = vrot.slane %v6576_v53, 9  ;;  %v1279_v50 = vrot.slane %v1277_v38, 4  ;;  %v6101_v0 = vld [vmem:[%s6349_s19 + $0x34] sm:$0xf] }
  0x7d   : > { %v2017_v48 = vsel %vm6376_vm2, %v2012_v33, %v2016_v36  ;;  %v1280_v51 = vrot.slane %v6584_v60, 5  ;;  %v2021_v58 = vrot.slane %v2019_v39, 4  ;;  %v2030_v59 = vrot.slane %v2028_v42, 5  ;;  %v6102_v31 = vld [vmem:[%s6349_s19 + $0x30] sm:$0xf] }
  0x7e   : > { %v2034_v55 = vrot.slane %v2032_v43, 4  ;;  %v2343_v56 = vunpack.c.l.b16 %v2007_v47  ;;  %v2344_v57 = vunpack.c.l.b16 %v2017_v48  ;;  %v1278_v2 = vsel %vm6618_vm6, %v5340_v49, %v1277_v38  ;;  %v6103_v32 = vld [vmem:[%s6349_s19 + $0x38] sm:$0x1]  ;;  %v6105_v16 = vld [vmem:[%s6349_s19 + $0x3c] sm:$0xf] }
  0x7f   : > { %5521 = vmatmul.msk.bf16.vlgmr.msrb.gmra.mxu0 %vm856_vm3, %v2371_v52  ;;  %v5862_v52 = vld [vmem:[%s6606_s15 + $0x18] sm:$0xff]  ;;  %v1281_v53 = vsel %vm6618_vm6, %v1279_v50, %v1280_v51  ;;  %v2038_v60 = vshll.u32 %v1627_v1, 16  ;;  %v1381_v8 = vunpack.c.l.b16 %v1278_v2  ;;  %v1284_v61 = vrot.slane %v6101_v0, 5  ;;  %v5836_v51 = vld [vmem:[%s6349_s19 + $0x30] sm:$0xff] }
  0x80   : > { %5322 = vmatmul.msk.bf16.gmra.mxu1 %vm856_vm3, %v5833_v54  ;;  %v2035_v63 = vor.u32 %v2034_v55, %v2030_v59  ;;  %v2373_v6 = vpack.c.b16 %v2344_v57, %v2343_v56  ;;  %v1382_v11 = vunpack.c.l.b16 %v1281_v53  ;;  %v2043_v4 = vshrl.u32 %v1628_v17, 16  ;;  %v1631_v53 = vld [vmem:[%s6606_s15 + $0x3c] sm:$0xf] }
  0x81   : > { %v2056_v10 = vshrl.u32 %v1629_v18, 16  ;;  %v1286_v35 = vrot.slane %v1284_v61, 4  ;;  %v1287_v33 = vrot.slane %v6103_v32, 5  ;;  %v5342_v9 = vrot.slane %v6105_v16, 9  ;;  %v1636_v16 = vld [vmem:[%s6606_s15 + $0x50] sm:$0x1] }
  0x82   : > { %v2036_v13 = vrot.slane %v2035_v63, 4  ;;  %v1410_v21 = vpack.c.b16 %v1382_v11, %v1381_v8  ;;  %v2045_v36 = vrot.slane %v2043_v4, 4  ;;  %v2067_v8 = vshrl.u32 %v1631_v53, 16 }
  0x83   : > { %v2058_v39 = vrot.slane %v2056_v10, 4  ;;  %v1288_v43 = vsel %vm6618_vm6, %v1286_v35, %v1287_v33  ;;  %v2070_v11 = vshll.u32 %v1631_v53, 16  ;;  %v1633_v10 = vld [vmem:[%s6606_s15 + $0x44] sm:$0x1]  ;;  %v5837_v35 = vld [vmem:[%s6349_s19 + $0x3c] sm:$0xff] }
  0x85   : > { %5378 = vmatmul.msk.bf16.gmra.mxu2 %vm856_vm3, %v1408_v41  ;;  %v2022_v41 = vshll.u32 %v1625_v30, 16  ;;  %v5341_v30 = vrot.slane %v6102_v31, 9  ;;  %v2072_v4 = vrot.slane %v2070_v11, 5  ;;  %v1301_v11 = vrot.slane %v6480_v62, 5 }
  0x87   : > { %v2024_v54 = vrot.slane %v2022_v41, 5  ;;  %v1630_v41 = vld [vmem:[%s6606_s15 + $0x38] sm:$0x1]  ;;  %v1285_v42 = vsel %vm6618_vm6, %v5341_v30, %v1284_v61  ;;  %v2069_v61 = vrot.slane %v2067_v8, 4 }
  0x88   : > { %v2062_v50 = vshll.u32 %v1630_v41, 16  ;;  %v1635_v41 = vld [vmem:[%s6606_s15 + $0x4c] sm:$0xf] }
  0x89   : > { %v2025_v3 = vor.u32 %v2024_v54, %v2021_v58  ;;  %v1383_v58 = vunpack.c.l.b16 %v1285_v42  ;;  %v1384_v54 = vunpack.c.l.b16 %v1288_v43  ;;  %v2073_v32 = vor.u32 %v2072_v4, %v2069_v61  ;;  %v5838_v61 = vld [vmem:[%s6349_s19 + $0x48] sm:$0xff] }
  0x8a   : > { %5482 = vmatmul.msk.bf16.gmra.mxu3 %vm856_vm3, %v5861_v14  ;;  %v2040_v14 = vrot.slane %v2038_v60, 5  ;;  %v2064_v57 = vrot.slane %v2062_v50, 5  ;;  %v6104_v60 = vld [vmem:[%s6349_s19 + $0x40] sm:$0xf] }
  0x8b   : > { %v2026_v12 = vrot.slane %v2025_v3, 4  ;;  %v1411_v2 = vpack.c.b16 %v1384_v54, %v1383_v58  ;;  %v1632_v3 = vld [vmem:[%s6606_s15 + $0x40] sm:$0xf]  ;;  %v1291_v5 = vrot.slane %v6104_v60, 5  ;;  %v2074_v43 = vrot.slane %v2073_v32, 4 }
  0x8c   : > { %v2041_v23 = vsel %vm6376_vm2, %v2036_v13, %v2040_v14  ;;  %v2080_v13 = vshrl.u32 %v1632_v3, 16  ;;  %v5864_v14 = vld [vmem:[%s6606_s15 + $0x30] sm:$0xff]  ;;  %v2100_v54 = vshll.u32 %v1635_v41, 16  ;;  %v1638_v32 = vld [vmem:[%s6606_s15 + $0x58] sm:$0xf] }
  0x8d   : > { %v2031_v22 = vsel %vm6376_vm2, %v2026_v12, %v2030_v59  ;;  %v2346_v20 = vunpack.c.l.b16 %v2041_v23  ;;  %v2076_v12 = vshll.u32 %v1632_v3, 16 }
  0x8e   : > { %v2345_v28 = vunpack.c.l.b16 %v2031_v22 }
  0x8f   : > { %5522 = vmatmul.msk.bf16.gmra.mxu0 %vm856_vm3, %v2372_v26  ;;  %v2046_v26 = vshll.u32 %v1628_v17, 16  ;;  %v1293_v17 = vrot.slane %v1291_v5, 4 }
  0x90   : > { %5323 = vmatmul.msk.bf16.gmra.mxu1 %vm856_vm3, %v5834_v27  ;;  %v2052_v27 = vshll.u32 %v1629_v18, 16  ;;  %v2374_v47 = vpack.c.b16 %v2346_v20, %v2345_v28  ;;  %v6106_v18 = vld [vmem:[%s6349_s19 + $0x44] sm:$0x1]  ;;  %v1292_v28 = vsel %vm6618_vm6, %v5342_v9, %v1291_v5  ;;  %v2102_v5 = vrot.slane %v2100_v54, 5 }
  0x92   : > { %v2054_v38 = vrot.slane %v2052_v27, 5  ;;  %v2082_v27 = vrot.slane %v2080_v13, 4 }
  0x94   : > { %v2059_v49 = vor.u32 %v2058_v39, %v2054_v38  ;;  %v1634_v39 = vld [vmem:[%s6606_s15 + $0x48] sm:$0xf] }
  0x95   : > { %5379 = vmatmul.msk.bf16.gmra.mxu2 %vm856_vm3, %v1409_v37  ;;  %v2048_v37 = vrot.slane %v2046_v26, 5  ;;  %v2078_v26 = vrot.slane %v2076_v12, 5  ;;  %v2094_v58 = vshll.u32 %v1634_v39, 16 }
  0x96   : > { %v2060_v56 = vrot.slane %v2059_v49, 4 }
  0x97   : > { %v2049_v48 = vor.u32 %v2048_v37, %v2045_v36  ;;  %v2083_v33 = vor.u32 %v2082_v27, %v2078_v26  ;;  %v2086_v36 = vshll.u32 %v1633_v10, 16  ;;  %v1385_v37 = vunpack.c.l.b16 %v1292_v28 }
  0x98   : > { %v2096_v60 = vrot.slane %v2094_v58, 5  ;;  %v5866_v58 = vld [vmem:[%s6606_s15 + $0x48] sm:$0xff] }
  0x99   : > { %v2050_v55 = vrot.slane %v2049_v48, 4  ;;  %v2088_v48 = vrot.slane %v2086_v36, 5 }
  0x9a   : > { %5483 = vmatmul.msk.bf16.gmra.mxu3 %vm856_vm3, %v5862_v52 }
  0x9f   : > { %5523 = vmatmul.msk.bf16.gmra.mxu0 %vm856_vm3, %v2373_v6  ;;  %v2055_v6 = vsel %vm6376_vm2, %v2050_v55, %v2054_v38  ;;  %v1298_v55 = vrot.slane %v6464_v45, 5  ;;  %v5343_v45 = vrot.slane %v6461_v44, 9 }
  0xa0   : > { %5324 = vmatmul.msk.bf16.gmra.mxu1 %vm856_vm3, %v5835_v7  ;;  %v2065_v7 = vsel %vm6376_vm2, %v2060_v56, %v2064_v57  ;;  %v2347_v22 = vunpack.c.l.b16 %v2055_v6  ;;  %v2104_v56 = vshrl.u32 %v1635_v41, 16  ;;  %v2079_v57 = vsel %vm6376_vm2, %v2074_v43, %v2078_v26  ;;  %v5865_v6 = vld [vmem:[%s6606_s15 + $0x3c] sm:$0xff] }
  0xa1   : > { %v2348_v23 = vunpack.c.l.b16 %v2065_v7  ;;  %v1300_v8 = vrot.slane %v1298_v55, 4  ;;  %v2349_v13 = vunpack.c.l.b16 %v2079_v57 }
  0xa2   : > { %v2106_v12 = vrot.slane %v2104_v56, 4 }
  0xa3   : > { %v2375_v20 = vpack.c.b16 %v2348_v23, %v2347_v22  ;;  %v1302_v44 = vsel %vm6618_vm6, %v1300_v8, %v1301_v11  ;;  %v2110_v22 = vshll.u32 %v1636_v16, 16  ;;  %v5905_v16 = vld [vmem:[%s8481_s3 + $0xc8] sm:$0xff] }
  0xa4   : > { %v2107_v62 = vor.u32 %v2106_v12, %v2102_v5  ;;  %v1388_v26 = vunpack.c.l.b16 %v1302_v44  ;;  %3173 = vmatpush.bf16.msra.mxu2 %v5905_v16 }
  0xa5   : > { %v6717_v24 = vpop.f32.mrf.mxu1  ;;  %5380 = vmatmul.msk.bf16.gmra.mxu2 %vm856_vm3, %v1410_v21  ;;  %v1294_v21 = vrot.slane %v6106_v18, 5 }
  0xa6   : > { %v2108_v28 = vrot.slane %v2107_v62, 4 }
  0xaa   : > { %5484 = vmatmul.msk.bf16.gmra.mxu3 %vm856_vm3, %v5863_v29  ;;  %v1295_v29 = vsel %vm6618_vm6, %v1293_v17, %v1294_v21  ;;  %v1299_v21 = vsel %vm6618_vm6, %v5343_v45, %v1298_v55  ;;  %v5344_v55 = vrot.slane %v6526_v19, 9 }
  0xab   : > { %v1386_v38 = vunpack.c.l.b16 %v1295_v29  ;;  %v1387_v4 = vunpack.c.l.b16 %v1299_v21  ;;  %v2112_v29 = vrot.slane %v2110_v22, 5 }
  0xad   : > { %v6730_v52 = vpop.f32.mrf.mxu1  ;;  %v1412_v49 = vpack.c.b16 %v1386_v38, %v1385_v37  ;;  %v2113_v37 = vsel %vm6376_vm2, %v2108_v28, %v2112_v29  ;;  %v1305_v38 = vrot.slane %v6532_v25, 5  ;;  %v1308_v25 = vrot.slane %v6546_v40, 5  ;;  %v1640_v28 = vld [vmem:[%s6606_s15 + $0x60] sm:$0xf]  ;;  %v1641_v29 = vld [vmem:[%s6606_s15 + $0x64] sm:$0xf] }
  0xae   : > { %v2352_v54 = vunpack.c.l.b16 %v2113_v37 }
  0xaf   : > { %v6732_v59 = vpop.f32.mrf.mxu2  ;;  %5524 = vmatmul.msk.bf16.gmra.mxu0 %vm856_vm3, %v2374_v47  ;;  %v2084_v47 = vrot.slane %v2083_v33, 4  ;;  %v1413_v33 = vpack.c.b16 %v1388_v26, %v1387_v4  ;;  %v1307_v56 = vrot.slane %v1305_v38, 4  ;;  %v1306_v8 = vsel %vm6618_vm6, %v5344_v55, %v1305_v38  ;;  %v5909_v4 = vld [vmem:[%s8481_s3 + $0xe8] sm:$0xff] }
  0xb0   : > { %5325 = vmatmul.msk.bf16.gmra.mxu1 %vm856_vm3, %v5836_v51  ;;  %v2091_v51 = vshrl.u32 %v1634_v39, 16  ;;  %v1389_v21 = vunpack.c.l.b16 %v1306_v8  ;;  %v5885_v26 = vld [vmem:[%s8481_s3 + $0xa8] sm:$0xff]  ;;  %3807 = vmatpush.bf16.msra.mxu3 %v5909_v4 }
  0xb1   : > { %v1309_v19 = vsel %vm6618_vm6, %v1307_v56, %v1308_v25  ;;  %2843 = vmatpush.bf16.msra.mxu1 %v5885_v26  ;;  %v5867_v56 = vld [vmem:[%s6606_s15 + $0x54] sm:$0xff]  ;;  %v6109_v25 = vld [vmem:[%s6349_s19 + $0x60] sm:$0xf] }
  0xb2   : > { %v6736_v1 = vpop.f32.mrf.mxu0  ;;  %v2093_v3 = vrot.slane %v2091_v51, 4  ;;  %v1390_v44 = vunpack.c.l.b16 %v1309_v19 }
  0xb3   : > { %v6740_v63 = vpop.f32.mrf.mxu3 }
  0xb4   : > { %v2097_v17 = vor.u32 %v2096_v60, %v2093_v3 }
  0xb5   : > { %5381 = vmatmul.msk.bf16.gmra.mxu2 %vm856_vm3, %v1411_v2  ;;  %v2089_v2 = vsel %vm6376_vm2, %v2084_v47, %v2088_v48  ;;  %v2124_v47 = vshll.u32 %v1638_v32, 16  ;;  %v2128_v48 = vshrl.u32 %v1638_v32, 16  ;;  %v6107_v32 = vld [vmem:[%s6349_s19 + $0x64] sm:$0xf] }
  0xb6   : > { %v2098_v10 = vrot.slane %v2097_v17, 4 }
  0xb7   : > { %v6749_v15 = vpop.f32.mrf.mxu1  ;;  %v6753_v0 = vpop.f32.mrf.mxu2  ;;  %v2126_v3 = vrot.slane %v2124_v47, 5  ;;  %v2130_v60 = vrot.slane %v2128_v48, 4  ;;  %v2148_v47 = vshll.u32 %v1641_v29, 16  ;;  %v2152_v48 = vshrl.u32 %v1641_v29, 16 }
  0xb8   : > { %v2103_v36 = vsel %vm6376_vm2, %v2098_v10, %v2102_v5  ;;  %v1414_v10 = vpack.c.b16 %v1390_v44, %v1389_v21  ;;  %v5840_v44 = vld [vmem:[%s6349_s19 + $0x60] sm:$0xff] }
  0xb9   : > { %v2351_v51 = vunpack.c.l.b16 %v2103_v36  ;;  %v2131_v40 = vor.u32 %v2130_v60, %v2126_v3 }
  0xba   : > { %5485 = vmatmul.msk.bf16.gmra.mxu3 %vm856_vm3, %v5864_v14  ;;  %v6761_v31 = vpop.f32.mrf.mxu0  ;;  %v2350_v14 = vunpack.c.l.b16 %v2089_v2 }
  0xbb   : > { %v6763_v30 = vpop.f32.mrf.mxu3  ;;  %v2377_v11 = vpack.c.b16 %v2352_v54, %v2351_v51  ;;  %v5913_v51 = vld [vmem:[%s8481_s3 + $0x108] sm:$0xff] }
  0xbc   : > { %v2376_v23 = vpack.c.b16 %v2350_v14, %v2349_v13  ;;  %v5839_v14 = vld [vmem:[%s6349_s19 + $0x54] sm:$0xff]  ;;  %v6108_v54 = vld [vmem:[%s6349_s19 + $0x68] sm:$0x1]  ;;  %4185 = vmatpush.bf16.msra.mxu0 %v5913_v51 }
  0xbd   : > { %v1315_v55 = vrot.slane %v6108_v54, 5 }
  0xbf   : > { %5525 = vmatmul.msk.bf16.gmra.mxu0 %vm856_vm3, %v2375_v20  ;;  %v6769_v42 = vpop.f32.mrf.mxu1 }
  0xc0   : > { %5326 = vmatmul.msk.bf16.gmra.mxu1 %vm856_vm3, %v5837_v35  ;;  %v1637_v35 = vld [vmem:[%s6606_s15 + $0x54] sm:$0xf] }
  0xc1   : > { %v2115_v41 = vshrl.u32 %v1637_v35, 16  ;;  %v2118_v43 = vshll.u32 %v1637_v35, 16 }
  0xc2   : > { %v6772_v50 = vpop.f32.mrf.mxu2 }
  0xc3   : > { %v2117_v57 = vrot.slane %v2115_v41, 4  ;;  %v2120_v2 = vrot.slane %v2118_v43, 5  ;;  %v2139_v41 = vshrl.u32 %v1640_v28, 16  ;;  %v2142_v43 = vshll.u32 %v1640_v28, 16 }
  0xc5   : > { %5382 = vmatmul.msk.bf16.gmra.mxu2 %vm856_vm3, %v1412_v49  ;;  %v2121_v12 = vor.u32 %v2120_v2, %v2117_v57  ;;  %v5345_v57 = vrot.slane %v6109_v25, 9  ;;  %v2141_v8 = vrot.slane %v2139_v41, 4  ;;  %v2144_v19 = vrot.slane %v2142_v43, 5  ;;  %v1643_v41 = vld [vmem:[%s6606_s15 + $0x6c] sm:$0xf] }
  0xc6   : > { %v6779_v53 = vpop.f32.mrf.mxu0  ;;  %v2163_v54 = vshrl.u32 %v1643_v41, 16 }
  0xc7   : > { %v6783_v7 = vpop.f32.mrf.mxu3  ;;  %v2122_v22 = vrot.slane %v2121_v12, 4  ;;  %v2154_v12 = vrot.slane %v2152_v48, 4  ;;  %v6110_v48 = vld [vmem:[%s6349_s19 + $0x70] sm:$0xf] }
  0xc8   : > { %v1319_v51 = vrot.slane %v6110_v48, 5 }
  0xc9   : > { %v6788_v9 = vpop.f32.mrf.mxu1  ;;  %v2127_v37 = vsel %vm6376_vm2, %v2122_v22, %v2126_v3  ;;  %v2145_v22 = vor.u32 %v2144_v19, %v2141_v8  ;;  %v6111_v8 = vld [vmem:[%s6349_s19 + $0x74] sm:$0x1] }
  0xca   : > { %5486 = vmatmul.msk.bf16.gmra.mxu3 %vm856_vm3, %v5865_v6  ;;  %v6791_v18 = vpop.f32.mrf.mxu2  ;;  %v1639_v6 = vld [vmem:[%s6606_s15 + $0x5c] sm:$0x1]  ;;  %v2353_v3 = vunpack.c.l.b16 %v2127_v37  ;;  %v1322_v19 = vrot.slane %v6111_v8, 5 }
  0xcb   : > { %v2134_v13 = vshll.u32 %v1639_v6, 16 }
  0xce   : > { %v6798_v27 = vpop.f32.mrf.mxu0 }
  0xcf   : > { %5526 = vmatmul.msk.bf16.gmra.mxu0 %vm856_vm3, %v2376_v23  ;;  %v6801_v20 = vpop.f32.mrf.mxu3  ;;  %v2132_v23 = vrot.slane %v2131_v40, 4  ;;  %v1642_v40 = vld [vmem:[%s6606_s15 + $0x68] sm:$0x1] }
  0xd0   : > { %5327 = vmatmul.msk.bf16.gmra.mxu1 %vm856_vm3, %v5838_v61  ;;  %v2136_v61 = vrot.slane %v2134_v13, 5 }
  0xd1   : > { %v6811_v39 = vpop.f32.mrf.mxu1 }
  0xd2   : > { %v2137_v38 = vsel %vm6376_vm2, %v2132_v23, %v2136_v61  ;;  %v2158_v61 = vshll.u32 %v1642_v40, 16 }
  0xd3   : > { %v2354_v60 = vunpack.c.l.b16 %v2137_v38 }
  0xd4   : > { %v2160_v38 = vrot.slane %v2158_v61, 5 }
  0xd5   : > { %v6813_v49 = vpop.f32.mrf.mxu2  ;;  %5383 = vmatmul.msk.bf16.gmra.mxu2 %vm856_vm3, %v1413_v33  ;;  %v1312_v33 = vrot.slane %v6107_v32, 5  ;;  %v2378_v16 = vpack.c.b16 %v2354_v60, %v2353_v3 }
  0xd7   : > { %v1314_v2 = vrot.slane %v1312_v33, 4  ;;  %v1313_v13 = vsel %vm6618_vm6, %v5345_v57, %v1312_v33  ;;  %v2146_v33 = vrot.slane %v2145_v22, 4  ;;  %v2165_v22 = vrot.slane %v2163_v54, 4 }
  0xd8   : > { %v6819_v5 = vpop.f32.mrf.mxu0 }
  0xd9   : > { %v6822_v45 = vpop.f32.mrf.mxu3 }
  0xda   : > { %5487 = vmatmul.msk.bf16.gmra.mxu3 %vm856_vm3, %v5866_v58 }
  0xdd   : > { %v6833_v17 = vpop.f32.mrf.mxu1  ;;  %v6835_v62 = vpop.f32.mrf.mxu2 }
  0xdf   : > { %5527 = vmatmul.msk.bf16.gmra.mxu0 %vm856_vm3, %v2377_v11  ;;  %v2150_v11 = vrot.slane %v2148_v47, 5  ;;  %v1644_v47 = vld [vmem:[%s6606_s15 + $0x70] sm:$0xf] }
  0xe0   : > { %5328 = vmatmul.msk.bf16.gmra.mxu1 %vm856_vm3, %v5839_v14  ;;  %v6847_v35 = vpop.f32.mrf.mxu0  ;;  %v1316_v14 = vsel %vm6618_vm6, %v1314_v2, %v1315_v55  ;;  %v2166_v55 = vshll.u32 %v1643_v41, 16  ;;  %v2172_v57 = vshll.u32 %v1644_v47, 16  ;;  %v2176_v2 = vshrl.u32 %v1644_v47, 16  ;;  %v5841_v47 = vld [vmem:[%s6349_s19 + $0x6c] sm:$0xff] }
  0xe1   : > { %v6850_v36 = vpop.f32.mrf.mxu3  ;;  %v2155_v23 = vor.u32 %v2154_v12, %v2150_v11  ;;  %v1392_v28 = vunpack.c.l.b16 %v1316_v14  ;;  %v5868_v12 = vld [vmem:[%s6606_s15 + $0x60] sm:$0xff] }
  0xe3   : > { %v2156_v37 = vrot.slane %v2155_v23, 4  ;;  %v2168_v23 = vrot.slane %v2166_v55, 5 }
  0xe5   : > { %5384 = vmatmul.msk.bf16.gmra.mxu2 %vm856_vm3, %v1414_v10  ;;  %v6860_v58 = vpop.f32.mrf.mxu1  ;;  %v1391_v10 = vunpack.c.l.b16 %v1313_v13  ;;  %v2161_v25 = vsel %vm6376_vm2, %v2156_v37, %v2160_v38  ;;  %v6112_v13 = vld [vmem:[%s6349_s19 + $0x6c] sm:$0xf]  ;;  %v2169_v41 = vor.u32 %v2168_v23, %v2165_v22 }
  0xe6   : > { %v5346_v14 = vrot.slane %v6112_v13, 9 }
  0xe7   : > { %v1415_v43 = vpack.c.b16 %v1392_v28, %v1391_v10  ;;  %v2178_v10 = vrot.slane %v2176_v2, 4 }
  0xe8   : > { %v6865_v6 = vpop.f32.mrf.mxu2  ;;  %v1320_v37 = vsel %vm6618_vm6, %v5346_v14, %v1319_v51 }
  0xea   : > { %5488 = vmatmul.msk.bf16.gmra.mxu3 %vm856_vm3, %v5867_v56  ;;  %v2151_v56 = vsel %vm6376_vm2, %v2146_v33, %v2150_v11  ;;  %v1645_v33 = vld [vmem:[%s6606_s15 + $0x74] sm:$0x1] }
  0xeb   : > { %v2355_v11 = vunpack.c.l.b16 %v2151_v56  ;;  %v2182_v54 = vshll.u32 %v1645_v33, 16 }
  0xec   : > { %v6873_v21 = vpop.f32.mrf.mxu0 }
  0xed   : > { %v6876_v4 = vpop.f32.mrf.mxu3  ;;  %v1155_v26 = vpop.f32.mrf.mxu1 }
  0xee   : > { %v1156_v29 = vadd.f32 %v1155_v26, %v6736_v1  ;;  %v2174_v26 = vrot.slane %v2172_v57, 5 }
  0xef   : > { %5528 = vmatmul.msk.bf16.gmra.mxu0 %vm856_vm3, %v2378_v16  ;;  %v1321_v16 = vrot.slane %v1319_v51, 4  ;;  %v2170_v51 = vrot.slane %v2169_v41, 4 }
  0xf0   : > { %v6880_v32 = vpop.f32.mrf.mxu2  ;;  %5329 = vmatmul.msk.bf16.gmra.mxu1 %vm856_vm3, %v5840_v44  ;;  %v2356_v44 = vunpack.c.l.b16 %v2161_v25  ;;  %v2179_v48 = vor.u32 %v2178_v10, %v2174_v26 }
  0xf2   : > { %v2379_v38 = vpack.c.b16 %v2356_v44, %v2355_v11  ;;  %v2180_v8 = vrot.slane %v2179_v48, 4  ;;  %v1647_v11 = vld [vmem:[%s6606_s15 + $0x7c] sm:$0xf] }
  0xf3   : > { %v6113_v44 = vld [vmem:[%s6349_s19 + $0x7c] sm:$0xf]  ;;  %v2196_v33 = vshll.u32 %v1647_v11, 16 }
  0xf4   : > { %v6886_v1 = vpop.f32.mrf.mxu0  ;;  %v1326_v22 = vrot.slane %v6113_v44, 5 }
  0xf5   : > { %v6892_v3 = vpop.f32.mrf.mxu3  ;;  %5385 = vmatmul.msk.bf16.gmra.mxu2 %vm856_vm3, %v1415_v43  ;;  %v1157_v60 = vpop.f32.mrf.mxu1 }
  0xf6   : > { %v1158_v40 = vadd.f32 %v1157_v60, %v6761_v31  ;;  %v1323_v31 = vsel %vm6618_vm6, %v1321_v16, %v1322_v19  ;;  %v2184_v19 = vrot.slane %v2182_v54, 5 }
  0xf7   : > { %v1394_v25 = vunpack.c.l.b16 %v1323_v31  ;;  %v6114_v31 = vld [vmem:[%s6349_s19 + $0x80] sm:$0x1] }
  0xf8   : > { %v1504_v61 = vpop.f32.mrf.mxu2  ;;  %v2185_v10 = vsel %vm6376_vm2, %v2180_v8, %v2184_v19 }
  0xf9   : > { %v1584_v28 = vadd.f32 %v1504_v61, %v1156_v29  ;;  %v1393_v29 = vunpack.c.l.b16 %v1320_v37  ;;  %v2200_v37 = vshrl.u32 %v1647_v11, 16 }
  0xfa   : > { %5489 = vmatmul.msk.bf16.gmra.mxu3 %vm856_vm3, %v5868_v12  ;;  %v1646_v12 = vld [vmem:[%s6606_s15 + $0x78] sm:$0xf] }
  0xfb   : > { %v1416_v16 = vpack.c.b16 %v1394_v25, %v1393_v29  ;;  %v2187_v23 = vshrl.u32 %v1646_v12, 16  ;;  %v2358_v29 = vunpack.c.l.b16 %v2185_v10  ;;  %v2202_v8 = vrot.slane %v2200_v37, 4 }
  0xfc   : > { %v2468_v43 = vpop.f32.mrf.mxu0 }
  0xfd   : > { %v1834_v55 = vpop.f32.mrf.mxu3  ;;  %v1160_v56 = vpop.f32.mrf.mxu1  ;;  %v2189_v25 = vrot.slane %v2187_v23, 4 }
  0xfe   : > { %v1914_v57 = vadd.f32 %v1834_v55, %v1584_v28  ;;  %v1161_v2 = vadd.f32 %v1160_v56, %v6779_v53  ;;  %v2175_v53 = vsel %vm6376_vm2, %v2170_v51, %v2174_v26  ;;  %v2190_v28 = vshll.u32 %v1646_v12, 16  ;;  %v6115_v26 = vld [vmem:[%s6349_s19 + $0x78] sm:$0xf] }
  0xff   : > { %5529 = vmatmul.msk.bf16.gmra.mxu0 %vm856_vm3, %v2379_v38  ;;  %v1329_v38 = vrot.slane %v6114_v31, 5  ;;  %v5347_v54 = vrot.slane %v6115_v26, 9  ;;  %v1328_v55 = vrot.slane %v1326_v22, 4  ;;  %v2357_v56 = vunpack.c.l.b16 %v2175_v53  ;;  %v5842_v53 = vld [vmem:[%s6349_s19 + $0x78] sm:$0xff] }
 0x100   : > { %v1506_v60 = vpop.f32.mrf.mxu2  ;;  %5330 = vmatmul.msk.bf16.gmra.mxu1 %vm856_vm3, %v5841_v47  ;;  %v6910_v13 = vadd.f32 %v2468_v43, %v1914_v57  ;;  %v5869_v47 = vld [vmem:[%s6606_s15 + $0x6c] sm:$0xff]  ;;  %v2192_v51 = vrot.slane %v2190_v28, 5 }
 0x101   : > { %v1585_v14 = vadd.f32 %v1506_v60, %v1158_v40  ;;  %v2198_v60 = vrot.slane %v2196_v33, 5  ;;  %v2380_v11 = vpack.c.b16 %v2358_v29, %v2357_v56  ;;  %v1650_v56 = vld [vmem:[%s6606_s15 + $0x88] sm:$0xf] }
 0x102   : > { %v2193_v23 = vor.u32 %v2192_v51, %v2189_v25  ;;  %v6116_v29 = vld [vmem:[%s6349_s19 + $0x88] sm:$0xf] }
 0x103   : > { %v2203_v10 = vor.u32 %v2202_v8, %v2198_v60  ;;  %v1333_v25 = vrot.slane %v6116_v29, 5 }
 0x104   : > { %v2470_v61 = vpop.f32.mrf.mxu0 }
 0x105   : > { %v1836_v40 = vpop.f32.mrf.mxu3  ;;  %5386 = vmatmul.msk.bf16.gmra.mxu2 %vm856_vm3, %v1416_v16  ;;  %v1162_v41 = vpop.f32.mrf.mxu1  ;;  %v1648_v16 = vld [vmem:[%s6606_s15 + $0x80] sm:$0x1] }
 0x106   : > { %v1915_v43 = vadd.f32 %v1836_v40, %v1585_v14  ;;  %v1163_v48 = vadd.f32 %v1162_v41, %v6798_v27  ;;  %v1327_v27 = vsel %vm6618_vm6, %v5347_v54, %v1326_v22  ;;  %v1330_v14 = vsel %vm6618_vm6, %v1328_v55, %v1329_v38 }
 0x107   : > { %v2206_v28 = vshll.u32 %v1648_v16, 16  ;;  %v1396_v37 = vunpack.c.l.b16 %v1330_v14  ;;  %v2194_v38 = vrot.slane %v2193_v23, 4  ;;  %v2204_v41 = vrot.slane %v2203_v10, 4  ;;  %v6117_v14 = vld [vmem:[%s6349_s19 + $0x8c] sm:$0x1]  ;;  %v5870_v23 = vld [vmem:[%s6606_s15 + $0x78] sm:$0xff] }
 0x108   : > { %v1509_v57 = vpop.f32.mrf.mxu2  ;;  %v6923_v19 = vadd.f32 %v2470_v61, %v1915_v43  ;;  %v2220_v16 = vshll.u32 %v1650_v56, 16 }
 0x109   : > { %v1586_v12 = vadd.f32 %v1509_v57, %v1161_v2  ;;  %v1395_v2 = vunpack.c.l.b16 %v1327_v27  ;;  %v2208_v43 = vrot.slane %v2206_v28, 5  ;;  %v2199_v8 = vsel %vm6376_vm2, %v2194_v38, %v2198_v60  ;;  %v6118_v28 = vld [vmem:[%s6349_s19 + $0x84] sm:$0xf] }
 0x10a   : > { %5490 = vmatmul.msk.bf16.gmra.mxu3 %vm856_vm3, %v5869_v47  ;;  %v1649_v47 = vld [vmem:[%s6606_s15 + $0x84] sm:$0xf]  ;;  %v2224_v27 = vshrl.u32 %v1650_v56, 16  ;;  %v2359_v60 = vunpack.c.l.b16 %v2199_v8  ;;  %v2222_v38 = vrot.slane %v2220_v16, 5 }
 0x10b   : > { %v1417_v55 = vpack.c.b16 %v1396_v37, %v1395_v2  ;;  %v2214_v57 = vshll.u32 %v1649_v47, 16 }
 0x10c   : > { %v2473_v44 = vpop.f32.mrf.mxu0 }
 0x10d   : > { %v1839_v33 = vpop.f32.mrf.mxu3  ;;  %v1165_v61 = vpop.f32.mrf.mxu1 }
 0x10e   : > { %v1916_v31 = vadd.f32 %v1839_v33, %v1586_v12  ;;  %v1166_v40 = vadd.f32 %v1165_v61, %v6819_v5  ;;  %v2211_v5 = vshrl.u32 %v1649_v47, 16  ;;  %v2209_v12 = vsel %vm6376_vm2, %v2204_v41, %v2208_v43 }
 0x10f   : > { %5530 = vmatmul.msk.bf16.gmra.mxu0 %vm856_vm3, %v2380_v11  ;;  %v1336_v11 = vrot.slane %v6117_v14, 5  ;;  %v5348_v33 = vrot.slane %v6118_v28, 9  ;;  %v1335_v61 = vrot.slane %v1333_v25, 4  ;;  %v2360_v2 = vunpack.c.l.b16 %v2209_v12 }
 0x110   : > { %v1511_v22 = vpop.f32.mrf.mxu2  ;;  %5331 = vmatmul.msk.bf16.gmra.mxu1 %vm856_vm3, %v5842_v53  ;;  %v6936_v26 = vadd.f32 %v2473_v44, %v1916_v31  ;;  %v2213_v37 = vrot.slane %v2211_v5, 4  ;;  %v2216_v31 = vrot.slane %v2214_v57, 5  ;;  %v2226_v41 = vrot.slane %v2224_v27, 4  ;;  %v5843_v5 = vld [vmem:[%s6349_s19 + $0x84] sm:$0xff] }
 0x111   : > { %v1587_v54 = vadd.f32 %v1511_v22, %v1163_v48  ;;  %v2381_v56 = vpack.c.b16 %v2360_v2, %v2359_v60 }
 0x112   : > { %v2217_v29 = vor.u32 %v2216_v31, %v2213_v37  ;;  %v2227_v57 = vor.u32 %v2226_v41, %v2222_v38  ;;  %v1653_v37 = vld [vmem:[%s6606_s15 + $0x94] sm:$0xf] }
 0x113   : > { %v6119_v31 = vld [vmem:[%s6349_s19 + $0x94] sm:$0xf] }
 0x114   : > { %v2475_v51 = vpop.f32.mrf.mxu0  ;;  %v2228_v28 = vrot.slane %v2227_v57, 4 }
 0x115   : > { %v1841_v48 = vpop.f32.mrf.mxu3  ;;  %5387 = vmatmul.msk.bf16.gmra.mxu2 %vm856_vm3, %v1417_v55  ;;  %v1167_v44 = vpop.f32.mrf.mxu1  ;;  %v1651_v55 = vld [vmem:[%s6606_s15 + $0x8c] sm:$0x1] }
 0x116   : > { %v1917_v53 = vadd.f32 %v1841_v48, %v1587_v54  ;;  %v1168_v10 = vadd.f32 %v1167_v44, %v6847_v35  ;;  %v1334_v35 = vsel %vm6618_vm6, %v5348_v33, %v1333_v25  ;;  %v1337_v54 = vsel %vm6618_vm6, %v1335_v61, %v1336_v11  ;;  %v5908_v44 = vld [vmem:[%s8481_s3 + $0xe0] sm:$0xff]  ;;  %v1652_v61 = vld [vmem:[%s6606_s15 + $0x90] sm:$0xf] }
 0x117   : > { %v2230_v12 = vshll.u32 %v1651_v55, 16  ;;  %v1397_v27 = vunpack.c.l.b16 %v1334_v35  ;;  %v1398_v14 = vunpack.c.l.b16 %v1337_v54  ;;  %v2218_v11 = vrot.slane %v2217_v29, 4  ;;  %3808 = vmatpush.bf16.msra.mxu3 %v5908_v44 }
 0x118   : > { %v1514_v22 = vpop.f32.mrf.mxu2  ;;  %v6949_v43 = vadd.f32 %v2475_v51, %v1917_v53  ;;  %v5904_v51 = vld [vmem:[%s8481_s3 + $0xc0] sm:$0xff]  ;;  %v2238_v54 = vshll.u32 %v1652_v61, 16  ;;  %v2248_v29 = vshrl.u32 %v1653_v37, 16 }
 0x119   : > { %v1588_v47 = vadd.f32 %v1514_v22, %v1166_v40  ;;  %3174 = vmatpush.bf16.msra.mxu2 %v5904_v51  ;;  %v5884_v53 = vld [vmem:[%s8481_s3 + $0xa0] sm:$0xff]  ;;  %v2232_v33 = vrot.slane %v2230_v12, 5  ;;  %v1418_v2 = vpack.c.b16 %v1398_v14, %v1397_v27  ;;  %v1340_v22 = vrot.slane %v6119_v31, 5 }
 0x11a   : > { %5491 = vmatmul.msk.bf16.gmra.mxu3 %vm856_vm3, %v5870_v23  ;;  %2844 = vmatpush.bf16.msra.mxu1 %v5884_v53  ;;  %v2223_v41 = vsel %vm6376_vm2, %v2218_v11, %v2222_v38  ;;  %v5871_v51 = vld [vmem:[%s6606_s15 + $0x84] sm:$0xff] }
 0x11b   : > { %v2233_v35 = vsel %vm6376_vm2, %v2228_v28, %v2232_v33  ;;  %v1342_v14 = vrot.slane %v1340_v22, 4  ;;  %v2250_v33 = vrot.slane %v2248_v29, 4 }
 0x11c   : > { %v2478_v8 = vpop.f32.mrf.mxu0  ;;  %v2362_v11 = vunpack.c.l.b16 %v2233_v35 }
 0x11d   : > { %v1844_v40 = vpop.f32.mrf.mxu3  ;;  %v1170_v16 = vpop.f32.mrf.mxu1 }
 0x11e   : > { %v1918_v25 = vadd.f32 %v1844_v40, %v1588_v47  ;;  %v1171_v48 = vadd.f32 %v1170_v16, %v6873_v21  ;;  %v2235_v47 = vshrl.u32 %v1652_v61, 16  ;;  %v6121_v16 = vld [vmem:[%s6349_s19 + $0x90] sm:$0xf] }
 0x11f   : > { %5531 = vmatmul.msk.bf16.gmra.mxu0 %vm856_vm3, %v2381_v56  ;;  %v2244_v56 = vshll.u32 %v1653_v37, 16  ;;  %v5349_v27 = vrot.slane %v6121_v16, 9 }
 0x120   : > { %v1516_v23 = vpop.f32.mrf.mxu2  ;;  %5332 = vmatmul.msk.bf16.gmra.mxu1 %vm856_vm3, %v5843_v5  ;;  %v6971_v21 = vadd.f32 %v2478_v8, %v1918_v25  ;;  %v6120_v8 = vld [vmem:[%s6349_s19 + $0x98] sm:$0x1]  ;;  %v2361_v25 = vunpack.c.l.b16 %v2223_v41  ;;  %v2237_v44 = vrot.slane %v2235_v47, 4  ;;  %v5844_v47 = vld [vmem:[%s6349_s19 + $0x90] sm:$0xff] }
 0x121   : > { %v1589_v60 = vadd.f32 %v1516_v23, %v1168_v10  ;;  %v5912_v10 = vld [vmem:[%s8481_s3 + $0x100] sm:$0xff]  ;;  %v1343_v5 = vrot.slane %v6120_v8, 5  ;;  %v2240_v23 = vrot.slane %v2238_v54, 5  ;;  %v2246_v28 = vrot.slane %v2244_v56, 5 }
 0x122   : > { %4186 = vmatpush.bf16.msra.mxu0 %v5912_v10  ;;  %v2382_v31 = vpack.c.b16 %v2362_v11, %v2361_v25  ;;  %v6122_v11 = vld [vmem:[%s6349_s19 + $0xa0] sm:$0xf] }
 0x123   : > { %v1344_v37 = vsel %vm6618_vm6, %v1342_v14, %v1343_v5  ;;  %v2241_v35 = vor.u32 %v2240_v23, %v2237_v44  ;;  %v2251_v54 = vor.u32 %v2250_v33, %v2246_v28  ;;  %v1656_v14 = vld [vmem:[%s6606_s15 + $0xa0] sm:$0xf]  ;;  %v1347_v44 = vrot.slane %v6122_v11, 5 }
 0x124   : > { %v2480_v55 = vpop.f32.mrf.mxu0  ;;  %v1400_v10 = vunpack.c.l.b16 %v1344_v37  ;;  %v6123_v37 = vld [vmem:[%s6349_s19 + $0xa4] sm:$0x1] }
 0x125   : > { %v1846_v57 = vpop.f32.mrf.mxu3  ;;  %5388 = vmatmul.msk.bf16.gmra.mxu2 %vm856_vm3, %v1418_v2  ;;  %v1172_v12 = vpop.f32.mrf.mxu1  ;;  %v2242_v5 = vrot.slane %v2241_v35, 4 }
 0x126   : > { %v1919_v38 = vadd.f32 %v1846_v57, %v1589_v60  ;;  %v1173_v40 = vadd.f32 %v1172_v12, %v6886_v1  ;;  %v1654_v60 = vld [vmem:[%s6606_s15 + $0x98] sm:$0x1]  ;;  %v1341_v1 = vsel %vm6618_vm6, %v5349_v27, %v1340_v22  ;;  %v1655_v57 = vld [vmem:[%s6606_s15 + $0x9c] sm:$0xf]  ;;  %v2252_v12 = vrot.slane %v2251_v54, 4  ;;  %v5872_v54 = vld [vmem:[%s6606_s15 + $0x90] sm:$0xff] }
 0x127   : > { %v2254_v56 = vshll.u32 %v1654_v60, 16  ;;  %v2259_v25 = vshrl.u32 %v1655_v57, 16  ;;  %v2247_v33 = vsel %vm6376_vm2, %v2242_v5, %v2246_v28  ;;  %v2268_v60 = vshll.u32 %v1656_v14, 16 }
 0x128   : > { %v1519_v53 = vpop.f32.mrf.mxu2  ;;  %v6987_v61 = vadd.f32 %v2480_v55, %v1919_v38 }
 0x129   : > { %v1590_v2 = vadd.f32 %v1519_v53, %v1171_v48  ;;  %v1399_v48 = vunpack.c.l.b16 %v1341_v1  ;;  %v2256_v38 = vrot.slane %v2254_v56, 5  ;;  %v2262_v53 = vshll.u32 %v1655_v57, 16  ;;  %v6124_v56 = vld [vmem:[%s6349_s19 + $0x9c] sm:$0xf] }
 0x12a   : > { %5492 = vmatmul.msk.bf16.gmra.mxu3 %vm856_vm3, %v5871_v51  ;;  %v2272_v1 = vshrl.u32 %v1656_v14, 16  ;;  %v2270_v5 = vrot.slane %v2268_v60, 5  ;;  %v1657_v14 = vld [vmem:[%s6606_s15 + $0xa4] sm:$0x1] }
 0x12b   : > { %v1419_v27 = vpack.c.b16 %v1400_v10, %v1399_v48  ;;  %v1349_v48 = vrot.slane %v1347_v44, 4  ;;  %v2264_v10 = vrot.slane %v2262_v53, 5  ;;  %v5845_v53 = vld [vmem:[%s6349_s19 + $0x9c] sm:$0xff] }
 0x12c   : > { %v2483_v41 = vpop.f32.mrf.mxu0 }
 0x12d   : > { %v1849_v55 = vpop.f32.mrf.mxu3  ;;  %v1175_v29 = vpop.f32.mrf.mxu1 }
 0x12e   : > { %v1920_v8 = vadd.f32 %v1849_v55, %v1590_v2  ;;  %v2257_v2 = vsel %vm6376_vm2, %v2252_v12, %v2256_v38  ;;  %v5350_v55 = vrot.slane %v6124_v56, 9  ;;  %v1176_v28 = vadd.f32 %v1175_v29, %v6717_v24 }
 0x12f   : > { %5532 = vmatmul.msk.bf16.gmra.mxu0 %vm856_vm3, %v2382_v31  ;;  %v1350_v31 = vrot.slane %v6123_v37, 5  ;;  %v2364_v57 = vunpack.c.l.b16 %v2257_v2  ;;  %v2274_v12 = vrot.slane %v2272_v1, 4  ;;  %v2278_v2 = vshll.u32 %v1657_v14, 16 }
 0x130   : > { %v1521_v22 = vpop.f32.mrf.mxu2  ;;  %5333 = vmatmul.msk.bf16.gmra.mxu1 %vm856_vm3, %v5844_v47  ;;  %v6999_v51 = vadd.f32 %v2483_v41, %v1920_v8  ;;  %v2261_v47 = vrot.slane %v2259_v25, 4  ;;  %v2363_v8 = vunpack.c.l.b16 %v2247_v33 }
 0x131   : > { %v1591_v16 = vadd.f32 %v1521_v22, %v1173_v40  ;;  %v1351_v25 = vsel %vm6618_vm6, %v1349_v48, %v1350_v31  ;;  %v2275_v33 = vor.u32 %v2274_v12, %v2270_v5  ;;  %v2280_v56 = vrot.slane %v2278_v2, 5  ;;  %v5873_v2 = vld [vmem:[%s6606_s15 + $0x9c] sm:$0xff] }
 0x132   : > { %v2265_v11 = vor.u32 %v2264_v10, %v2261_v47  ;;  %v2383_v24 = vpack.c.b16 %v2364_v57, %v2363_v8  ;;  %v1402_v37 = vunpack.c.l.b16 %v1351_v25  ;;  %v6126_v25 = vld [vmem:[%s6349_s19 + $0xb0] sm:$0x1] }
 0x133   : > { %v2276_v47 = vrot.slane %v2275_v33, 4 }
 0x134   : > { %v2485_v23 = vpop.f32.mrf.mxu0 }
 0x135   : > { %v1851_v40 = vpop.f32.mrf.mxu3  ;;  %5389 = vmatmul.msk.bf16.gmra.mxu2 %vm856_vm3, %v1419_v27  ;;  %v1177_v41 = vpop.f32.mrf.mxu1 }
 0x136   : > { %v1921_v35 = vadd.f32 %v1851_v40, %v1591_v16  ;;  %v1348_v16 = vsel %vm6618_vm6, %v5350_v55, %v1347_v44  ;;  %v1178_v44 = vadd.f32 %v1177_v41, %v6730_v52  ;;  %v1659_v55 = vld [vmem:[%s6606_s15 + $0xac] sm:$0xf] }
 0x137   : > { %v1401_v1 = vunpack.c.l.b16 %v1348_v16  ;;  %v2292_v41 = vshll.u32 %v1659_v55, 16  ;;  %v2281_v16 = vsel %vm6376_vm2, %v2276_v47, %v2280_v56  ;;  %v1660_v56 = vld [vmem:[%s6606_s15 + $0xb0] sm:$0x1] }
 0x138   : > { %v1524_v22 = vpop.f32.mrf.mxu2  ;;  %v7012_v38 = vadd.f32 %v2485_v23, %v1921_v35  ;;  %v2266_v35 = vrot.slane %v2265_v11, 4  ;;  %v1357_v11 = vrot.slane %v6126_v25, 5 }
 0x139   : > { %v1592_v27 = vadd.f32 %v1524_v22, %v1176_v28  ;;  %v1420_v28 = vpack.c.b16 %v1402_v37, %v1401_v1  ;;  %v6125_v22 = vld [vmem:[%s6349_s19 + $0xac] sm:$0xf] }
 0x13a   : > { %5493 = vmatmul.msk.bf16.gmra.mxu3 %vm856_vm3, %v5872_v54  ;;  %v1658_v54 = vld [vmem:[%s6606_s15 + $0xa8] sm:$0xf]  ;;  %v2271_v57 = vsel %vm6376_vm2, %v2266_v35, %v2270_v5  ;;  %v1354_v12 = vrot.slane %v6125_v22, 5  ;;  %v2302_v22 = vshll.u32 %v1660_v56, 16 }
 0x13b   : > { %v2283_v8 = vshrl.u32 %v1658_v54, 16  ;;  %v2286_v52 = vshll.u32 %v1658_v54, 16  ;;  %v2366_v54 = vunpack.c.l.b16 %v2281_v16 }
 0x13c   : > { %v2488_v29 = vpop.f32.mrf.mxu0  ;;  %v1356_v37 = vrot.slane %v1354_v12, 4 }
 0x13d   : > { %v1854_v23 = vpop.f32.mrf.mxu3  ;;  %v1180_v60 = vpop.f32.mrf.mxu1  ;;  %v2285_v5 = vrot.slane %v2283_v8, 4 }
 0x13e   : > { %v1922_v40 = vadd.f32 %v1854_v23, %v1592_v27  ;;  %v2296_v27 = vshrl.u32 %v1659_v55, 16  ;;  %v6127_v23 = vld [vmem:[%s6349_s19 + $0xa8] sm:$0xf]  ;;  %v1181_v35 = vadd.f32 %v1180_v60, %v6749_v15  ;;  %v1358_v8 = vsel %vm6618_vm6, %v1356_v37, %v1357_v11  ;;  %v1662_v37 = vld [vmem:[%s6606_s15 + $0xb8] sm:$0xf] }
 0x13f   : > { %5533 = vmatmul.msk.bf16.gmra.mxu0 %vm856_vm3, %v2383_v24  ;;  %v5351_v1 = vrot.slane %v6127_v23, 9  ;;  %v1404_v25 = vunpack.c.l.b16 %v1358_v8  ;;  %v2320_v8 = vshrl.u32 %v1662_v37, 16 }
 0x140   : > { %v1526_v31 = vpop.f32.mrf.mxu2  ;;  %5334 = vmatmul.msk.bf16.gmra.mxu1 %vm856_vm3, %v5845_v53  ;;  %v7026_v48 = vadd.f32 %v2488_v29, %v1922_v40  ;;  %v2365_v29 = vunpack.c.l.b16 %v2271_v57  ;;  %v2288_v40 = vrot.slane %v2286_v52, 5 }
 0x141   : > { %v1593_v10 = vadd.f32 %v1526_v31, %v1178_v44  ;;  %v2294_v44 = vrot.slane %v2292_v41, 5  ;;  %v2298_v31 = vrot.slane %v2296_v27, 4  ;;  %v5846_v41 = vld [vmem:[%s6349_s19 + $0xa8] sm:$0xff] }
 0x142   : > { %v2289_v57 = vor.u32 %v2288_v40, %v2285_v5  ;;  %v2384_v15 = vpack.c.b16 %v2366_v54, %v2365_v29  ;;  %v2304_v5 = vrot.slane %v2302_v22, 5  ;;  %v1661_v29 = vld [vmem:[%s6606_s15 + $0xb4] sm:$0xf]  ;;  %v6129_v54 = vld [vmem:[%s6349_s19 + $0xb8] sm:$0xf] }
 0x143   : > { %v2299_v60 = vor.u32 %v2298_v31, %v2294_v44  ;;  %v1361_v31 = vrot.slane %v6129_v54, 5  ;;  %v2310_v56 = vshll.u32 %v1661_v29, 16  ;;  %v6131_v22 = vld [vmem:[%s6606_s15 + $0x8] sm:$0x1] }
 0x144   : > { %v2490_v14 = vpop.f32.mrf.mxu0 }
 0x145   : > { %v1856_v24 = vpop.f32.mrf.mxu3  ;;  %5390 = vmatmul.msk.bf16.gmra.mxu2 %vm856_vm3, %v1420_v28  ;;  %v1182_v53 = vpop.f32.mrf.mxu1  ;;  %v2300_v11 = vrot.slane %v2299_v60, 4 }
 0x146   : > { %v1923_v33 = vadd.f32 %v1856_v24, %v1593_v10  ;;  %v1355_v10 = vsel %vm6618_vm6, %v5351_v1, %v1354_v12  ;;  %v1183_v12 = vadd.f32 %v1182_v53, %v6769_v42  ;;  %v2307_v53 = vshrl.u32 %v1661_v29, 16  ;;  %v5874_v29 = vld [vmem:[%s6606_s15 + $0xa8] sm:$0xff] }
 0x147   : > { %v1403_v16 = vunpack.c.l.b16 %v1355_v10  ;;  %v2316_v10 = vshll.u32 %v1662_v37, 16  ;;  %v2312_v37 = vrot.slane %v2310_v56, 5 }
 0x148   : > { %v1529_v47 = vpop.f32.mrf.mxu2  ;;  %v7039_v55 = vadd.f32 %v2490_v14, %v1923_v33  ;;  %v2290_v33 = vrot.slane %v2289_v57, 4  ;;  %v6130_v57 = vld [vmem:[%s6606_s15] sm:$0xf] }
 0x149   : > { %v1594_v28 = vadd.f32 %v1529_v47, %v1181_v35  ;;  %v1421_v35 = vpack.c.b16 %v1404_v25, %v1403_v16  ;;  %v6133_v25 = vld [vmem:[%s6349_s19 + $0xbc] sm:$0x1] }
 0x14a   : > { %5494 = vmatmul.msk.bf16.gmra.mxu3 %vm856_vm3, %v5873_v2  ;;  %v6128_v2 = vld [vmem:[%s6606_s15 + $0x4] sm:$0xf]  ;;  %v2295_v42 = vsel %vm6376_vm2, %v2290_v33, %v2294_v44 }
 0x14b   : > { %v2598_v23 = vrot.slane %v6128_v2, 5  ;;  %v2367_v33 = vunpack.c.l.b16 %v2295_v42 }
 0x14c   : > { %v2493_v52 = vpop.f32.mrf.mxu0 }
 0x14d   : > { %v1859_v27 = vpop.f32.mrf.mxu3  ;;  %v1185_v14 = vpop.f32.mrf.mxu1  ;;  %v2600_v60 = vrot.slane %v2598_v23, 4 }
 0x14e   : > { %v1924_v24 = vadd.f32 %v1859_v27, %v1594_v28  ;;  %v2305_v28 = vsel %vm6376_vm2, %v2300_v11, %v2304_v5  ;;  %v1363_v11 = vrot.slane %v1361_v31, 4  ;;  %v1186_v54 = vadd.f32 %v1185_v14, %v6788_v9 }
 0x14f   : > { %5534 = vmatmul.msk.bf16.gmra.mxu0 %vm856_vm3, %v2384_v15  ;;  %v5537_v15 = vrot.slane %v6130_v57, 9  ;;  %v2368_v2 = vunpack.c.l.b16 %v2305_v28  ;;  %v2318_v57 = vrot.slane %v2316_v10, 5  ;;  %v7083_v10 = vld [vmem:[%s7070_s26] sm:$0xf] }
 0x150   : > { %v1531_v1 = vpop.f32.mrf.mxu2  ;;  %5335 = vmatmul.msk.bf16.gmra.mxu1 %vm856_vm3, %v5846_v41  ;;  %v7054_v47 = vadd.f32 %v2493_v52, %v1924_v24  ;;  %v2601_v41 = vrot.slane %v6131_v22, 5  ;;  %v6132_v52 = vld [vmem:[%s6349_s19 + $0xb4] sm:$0xf]  ;;  %v1364_v24 = vrot.slane %v6133_v25, 5  ;;  %v2322_v22 = vrot.slane %v2320_v8, 4 }
 0x151   : > { %v1595_v40 = vadd.f32 %v1531_v1, %v1183_v12  ;;  %v5352_v16 = vrot.slane %v6132_v52, 9  ;;  %v2309_v1 = vrot.slane %v2307_v53, 4  ;;  %v2599_v53 = vsel %vm6618_vm6, %v5537_v15, %v2598_v23 }
 0x152   : > { %8491 = vst [vmem:[#allocation5_spill] sm:$0xff] %v7054_v47  ;;  %v2602_v56 = vsel %vm6618_vm6, %v2600_v60, %v2601_v41  ;;  %v1365_v52 = vsel %vm6618_vm6, %v1363_v11, %v1364_v24  ;;  %v2717_v9 = vunpack.c.l.b16 %v2599_v53  ;;  %v2385_v8 = vpack.c.b16 %v2368_v2, %v2367_v33  ;;  %v5847_v41 = vld [vmem:[%s6349_s19 + $0xb4] sm:$0xff]  ;;  %s5085_s19 = scalar_lea.hbm %s8484_s6, %s5917_s20 }
 0x153   : > { %v1362_v42 = vsel %vm6618_vm6, %v5352_v16, %v1361_v31  ;;  %v2718_v14 = vunpack.c.l.b16 %v2602_v56  ;;  %v2313_v31 = vor.u32 %v2312_v37, %v2309_v1  ;;  %v7087_v16 = vld [vmem:[%s7070_s26 + $0x4] sm:$0xf]  ;;  %v2323_v25 = vor.u32 %v2322_v22, %v2318_v57  ;;  %s5088_s28 = sshll.u32 %s5085_s19, 4  ;;  %s5089_s28 = int_to_ptr.hbm [resolvable:$true] %s5088_s28 }
 0x154   : > { %v2495_v27 = vpop.f32.mrf.mxu0  ;;  %v1406_v24 = vunpack.c.l.b16 %v1365_v52  ;;  %v3289_v11 = vshrl.u32 %v7083_v10, 16  ;;  %v3298_v33 = vshll.u32 %v7087_v16, 16  ;;  %v3302_v2 = vshrl.u32 %v7087_v16, 16  ;;  %s6195_s9 = sshra.s32 %s5089_s28, 4  ;;  %s6196_s9 = int_to_ptr.hbm [resolvable:$true] %s6195_s9 }
 0x155   : > { %v1861_v44 = vpop.f32.mrf.mxu3  ;;  %5391 = vmatmul.msk.bf16.gmra.mxu2 %vm856_vm3, %v1421_v35  ;;  %v1187_v12 = vpop.f32.mrf.mxu1  ;;  %v7089_v15 = vpack.c.b16 %v2718_v14, %v2717_v9  ;;  %v2324_v37 = vrot.slane %v2323_v25, 4  ;;  %s6197_s12 = scalar_lea.hbm %s6196_s9, 256  ;;  %p6202_p0 = scmp.lt.s32.totalorder %s6196_s9, %s8484_s6 }
 0x156   : > { %v1925_v5 = vadd.f32 %v1861_v44, %v1595_v40  ;;  %v1663_v40 = vld [vmem:[%s6606_s15 + $0xbc] sm:$0x1]  ;;  %v3291_v56 = vrot.slane %v3289_v11, 4  ;;  %v3300_v14 = vrot.slane %v3298_v33, 5  ;;  %p6198_p11 = scmp.ne.s32.totalorder %s6196_s9, %s6197_s12 }
 0x157   : > { %v2326_v23 = vshll.u32 %v1663_v40, 16 }
 0x158   : > { %v1534_v35 = vpop.f32.mrf.mxu2  ;;  %v7091_v44 = vadd.f32 %v2495_v27, %v1925_v5  ;;  %v1188_v27 = vadd.f32 %v1187_v12, %v6811_v39  ;;  %v2314_v5 = vrot.slane %v2313_v31, 4  ;;  %p6199_p12 = pnand %p6198_p11, %p6320_p5 }
 0x159   : > { %v1596_v28 = vadd.f32 %v1534_v35, %v1186_v54  ;;  %v1405_v54 = vunpack.c.l.b16 %v1362_v42  ;;  %v3292_v35 = vshll.u32 %v7083_v10, 16  ;;  %v2328_v40 = vrot.slane %v2326_v23, 5 }
 0x15a   : > { %5495 = vmatmul.msk.bf16.gmra.mxu3 %vm856_vm3, %v5874_v29  ;;  %8492 = vst [vmem:[#allocation6_spill] sm:$0xff] %v7091_v44  ;;  %v3304_v44 = vrot.slane %v3302_v2, 4  ;;  %v2319_v39 = vsel %vm6376_vm2, %v2314_v5, %v2318_v57  ;;  %v7113_v5 = vld [vmem:[%s7070_s26 + $0xc] sm:$0xf]  ;;  %p6200_p13 = pneg %p6199_p12 }
 0x15b   : > { %v1422_v42 = vpack.c.b16 %v1406_v24, %v1405_v54  ;;  %v3294_v52 = vrot.slane %v3292_v35, 5  ;;  %v2329_v12 = vsel %vm6376_vm2, %v2324_v37, %v2328_v40  ;;  %v2369_v11 = vunpack.c.l.b16 %v2319_v39 }
 0x15c   : > { %v2498_v60 = vpop.f32.mrf.mxu0  ;;  %v3305_v23 = vor.u32 %v3304_v44, %v3300_v14  ;;  %v2370_v35 = vunpack.c.l.b16 %v2329_v12  ;;  %v3940_v44 = vrot.slane %v7087_v16, 5  ;;  %v5737_v12 = vrot.slane %v7083_v10, 9 }
 0x15d   : > { %v1864_v53 = vpop.f32.mrf.mxu3  ;;  %v1190_v29 = vpop.f32.mrf.mxu1  ;;  %v3295_v25 = vor.u32 %v3294_v52, %v3291_v56  ;;  %v3313_v16 = vshrl.u32 %v7113_v5, 16 }
 0x15e   : > { %v1926_v1 = vadd.f32 %v1864_v53, %v1596_v28  ;;  %v2960_v28 = vld [vmem:[%s7070_s26 + $0x8] sm:$0x1]  ;;  %v1191_v24 = vadd.f32 %v1190_v29, %v6833_v17  ;;  %v2386_v37 = vpack.c.b16 %v2370_v35, %v2369_v11  ;;  %v6134_v17 = vld [vmem:[%s6606_s15 + $0x10] sm:$0xf]  ;;  %v6136_v35 = vld [vmem:[%s6606_s15 + $0xc] sm:$0xf] }
 0x15f   : > { %5535 = vmatmul.msk.bf16.gmra.mxu0 %vm856_vm3, %v2385_v8  ;;  %v3296_v2 = vrot.slane %v3295_v25, 4  ;;  %v2605_v29 = vrot.slane %v6134_v17, 5 }
 0x160   : > { %v1536_v22 = vpop.f32.mrf.mxu2  ;;  %5336 = vmatmul.msk.bf16.gmra.mxu1 %vm856_vm3, %v5847_v41  ;;  %v7101_v47 = vadd.f32 %v2498_v60, %v1926_v1  ;;  %v3308_v41 = vshll.u32 %v2960_v28, 16  ;;  %v5875_v60 = vld [vmem:[%s6606_s15 + $0xb4] sm:$0xff]  ;;  %v3306_v1 = vrot.slane %v3305_v23, 4 }
 0x161   : > { %v1597_v9 = vadd.f32 %v1536_v22, %v1188_v27  ;;  %v7117_v22 = vld [vmem:[%s7070_s26 + $0x10] sm:$0xf] }
 0x162   : > { %v3310_v27 = vrot.slane %v3308_v41, 5  ;;  %v3322_v25 = vshll.u32 %v7117_v22, 16  ;;  %v3326_v23 = vshrl.u32 %v7117_v22, 16  ;;  %v3942_v41 = vrot.slane %v3940_v44, 4 }
 0x164   : > { %v2500_v53 = vpop.f32.mrf.mxu0  ;;  %v3311_v39 = vsel %vm6376_vm2, %v3306_v1, %v3310_v27  ;;  %v5888_v1 = vld [vmem:[%s7070_s26] sm:$0xff]  ;;  %v7142_v17 = vrot.slane %v3322_v25, 5 }
 0x165   : > { %v1866_v8 = vpop.f32.mrf.mxu3  ;;  %5392 = vmatmul.msk.bf16.gmra.mxu2 %vm856_vm3, %v1422_v42  ;;  %v1192_v31 = vpop.f32.mrf.mxu1  ;;  %v3682_v27 = vunpack.c.l.b16 %v3311_v39 }
 0x166   : > { %v1927_v54 = vadd.f32 %v1866_v8, %v1597_v9  ;;  %v3301_v9 = vsel %vm6376_vm2, %v3296_v2, %v3300_v14  ;;  %v1193_v14 = vadd.f32 %v1192_v31, %v6860_v58 }
 0x167   : > { %v3681_v10 = vunpack.c.l.b16 %v3301_v9 }
 0x168   : > { %v1539_v57 = vpop.f32.mrf.mxu2  ;;  %v7119_v42 = vadd.f32 %v2500_v53, %v1927_v54  ;;  %v3316_v53 = vshll.u32 %v7113_v5, 16  ;;  %v3943_v54 = vrot.slane %v2960_v28, 5  ;;  %v3315_v28 = vrot.slane %v3313_v16, 4 }
 0x169   : > { %v1598_v33 = vadd.f32 %v1539_v57, %v1191_v24  ;;  %v5538_v57 = vrot.slane %v6136_v35, 9 }
 0x16a   : > { %5496 = vmatmul.msk.bf16.gmra.mxu3 %vm856_vm3, %v5875_v60  ;;  %v6135_v60 = vld [vmem:[%s6606_s15 + $0x14] sm:$0x1]  ;;  %v3318_v31 = vrot.slane %v3316_v53, 5 }
 0x16b   : > { %v2608_v24 = vrot.slane %v6135_v60, 5  ;;  %v2606_v60 = vsel %vm6618_vm6, %v5538_v57, %v2605_v29  ;;  %v7158_v57 = vld [vmem:[%s7070_s26 + $0x18] sm:$0xf] }
 0x16c   : > { %v2503_v40 = vpop.f32.mrf.mxu0  ;;  %v3319_v25 = vor.u32 %v3318_v31, %v3315_v28  ;;  %v3337_v31 = vshrl.u32 %v7158_v57, 16 }
 0x16d   : > { %v1869_v56 = vpop.f32.mrf.mxu3  ;;  %v1195_v52 = vpop.f32.mrf.mxu1 }
 0x16e   : > { %v1928_v8 = vadd.f32 %v1869_v56, %v1598_v33  ;;  %v2607_v33 = vrot.slane %v2605_v29, 4  ;;  %v3328_v56 = vrot.slane %v3326_v23, 4  ;;  %v1196_v29 = vadd.f32 %v1195_v52, %v6732_v59 }
 0x16f   : > { %5536 = vmatmul.msk.bf16.gmra.mxu0 %vm856_vm3, %v2386_v37  ;;  %v3941_v37 = vsel %vm6618_vm6, %v5737_v12, %v3940_v44  ;;  %v3947_v59 = vrot.slane %v7117_v22, 5  ;;  %v5738_v22 = vrot.slane %v7113_v5, 9 }
 0x170   : > { %v1541_v11 = vpop.f32.mrf.mxu2  ;;  %5577 = vmatmul.msk.bf16.vlgmr.msra.gmra.mxu1 %vm856_vm3, %v7089_v15  ;;  %v7140_v58 = vadd.f32 %v2503_v40, %v1928_v8  ;;  %v3944_v15 = vsel %vm6618_vm6, %v3942_v41, %v3943_v54  ;;  %v2609_v39 = vsel %vm6618_vm6, %v2607_v33, %v2608_v24  ;;  %v3713_v40 = vpack.c.b16 %v3682_v27, %v3681_v10  ;;  %v7161_v33 = vld [vmem:[%s7070_s26 + $0x1c] sm:$0xf] }
 0x171   : > { %v1599_v2 = vadd.f32 %v1541_v11, %v1193_v14  ;;  %v7151_v14 = vld [vmem:[%s7070_s26 + $0x14] sm:$0x1]  ;;  %v4059_v12 = vunpack.c.l.b16 %v3941_v37  ;;  %v4060_v53 = vunpack.c.l.b16 %v3944_v15  ;;  %v3329_v23 = vor.u32 %v3328_v56, %v7142_v17 }
 0x172   : > { %v2719_v41 = vunpack.c.l.b16 %v2606_v60  ;;  %v2720_v54 = vunpack.c.l.b16 %v2609_v39  ;;  %v3332_v24 = vshll.u32 %v7151_v14, 16  ;;  %v3340_v56 = vshll.u32 %v7158_v57, 16 }
 0x173   : > { %v4091_v10 = vpack.c.b16 %v4060_v53, %v4059_v12  ;;  %v3346_v15 = vshll.u32 %v7161_v33, 16  ;;  %v3350_v60 = vshrl.u32 %v7161_v33, 16  ;;  %v6138_v53 = vld [vmem:[%s6606_s15 + $0x20] sm:$0x1] }
 0x174   : > { %v2505_v9 = vpop.f32.mrf.mxu0  ;;  %v2750_v27 = vpack.c.b16 %v2720_v54, %v2719_v41  ;;  %v3334_v37 = vrot.slane %v3332_v24, 5  ;;  %v3949_v54 = vrot.slane %v3947_v59, 4  ;;  %v3342_v5 = vrot.slane %v3340_v56, 5 }
 0x175   : > { %v1871_v44 = vpop.f32.mrf.mxu3  ;;  %5681 = vmatmul.msk.bf16.vlgmr.msra.gmra.mxu2 %vm856_vm3, %v5888_v1  ;;  %v1197_v16 = vpop.f32.mrf.mxu1  ;;  %v3330_v1 = vrot.slane %v3329_v23, 4 }
 0x176   : > { %v1929_v8 = vadd.f32 %v1871_v44, %v1599_v2  ;;  %v3320_v2 = vrot.slane %v3319_v25, 4  ;;  %v2615_v25 = vrot.slane %v6138_v53, 5 }
 0x177   : > { %v3335_v41 = vsel %vm6376_vm2, %v3330_v1, %v3334_v37  ;;  %v3948_v37 = vsel %vm6618_vm6, %v5738_v22, %v3947_v59 }
 0x178   : > { %v1544_v11 = vpop.f32.mrf.mxu2  ;;  %v7165_v52 = vadd.f32 %v2505_v9, %v1929_v8  ;;  %v3950_v9 = vrot.slane %v7151_v14, 5  ;;  %v1198_v8 = vadd.f32 %v1197_v16, %v6753_v0  ;;  %v3352_v14 = vrot.slane %v3350_v60, 4 }
 0x179   : > { %v1600_v35 = vadd.f32 %v1544_v11, %v1196_v29  ;;  %v3325_v29 = vsel %vm6376_vm2, %v3320_v2, %v7142_v17  ;;  %v3339_v11 = vrot.slane %v3337_v31, 4  ;;  %v3684_v2 = vunpack.c.l.b16 %v3335_v41 }
 0x17a   : > { %5721 = vmatmul.msk.bf16.vlgmr.msra.gmra.mxu3 %vm856_vm3, %v3713_v40  ;;  %8493 = vst [vmem:[#allocation7_spill] sm:$0xff] %v7165_v52  ;;  %v6137_v40 = vld [vmem:[%s6606_s15 + $0x1c] sm:$0xf]  ;;  %v3683_v17 = vunpack.c.l.b16 %v3325_v29  ;;  %v7188_v52 = vld [vmem:[%s7070_s26 + $0x20] sm:$0x1] }
 0x17b   : > { %v2612_v12 = vrot.slane %v6137_v40, 5  ;;  %v6139_v40 = vld [vmem:[%s6606_s15 + $0x18] sm:$0xf]  ;;  %v3343_v31 = vor.u32 %v3342_v5, %v3339_v11 }
 0x17c   : > { %v2508_v28 = vpop.f32.mrf.mxu0  ;;  %v5539_v0 = vrot.slane %v6139_v40, 9  ;;  %v3714_v59 = vpack.c.b16 %v3684_v2, %v3683_v17  ;;  %v6140_v17 = vld [vmem:[%s6606_s15 + $0x28] sm:$0xf] }
 0x17d   : > { %v1874_v39 = vpop.f32.mrf.mxu3  ;;  %v1200_v44 = vpop.f32.mrf.mxu1  ;;  %v2614_v16 = vrot.slane %v2612_v12, 4  ;;  %v2619_v2 = vrot.slane %v6140_v17, 5 }
 0x17e   : > { %v1930_v23 = vadd.f32 %v1874_v39, %v1600_v35  ;;  %v3348_v35 = vrot.slane %v3346_v15, 5  ;;  %v1201_v22 = vadd.f32 %v1200_v44, %v6772_v50 }
 0x17f   : > { %5777 = vmatmul.msk.bf16.vlgmr.msra.gmra.mxu0 %vm856_vm3, %v4091_v10  ;;  %v5889_v10 = vld [vmem:[%s7070_s26 + $0xc] sm:$0xff]  ;;  %v2616_v60 = vsel %vm6618_vm6, %v2614_v16, %v2615_v25  ;;  %v7203_v25 = vld [vmem:[%s7070_s26 + $0x24] sm:$0xf] }
 0x180   : > { %v1546_v24 = vpop.f32.mrf.mxu2  ;;  %5578 = vmatmul.msk.bf16.gmra.mxu1 %vm856_vm3, %v2750_v27  ;;  %v7185_v53 = vadd.f32 %v2508_v28, %v1930_v23  ;;  %v3951_v27 = vsel %vm6618_vm6, %v3949_v54, %v3950_v9  ;;  %v2613_v28 = vsel %vm6618_vm6, %v5539_v0, %v2612_v12  ;;  %v3353_v23 = vor.u32 %v3352_v14, %v3348_v35  ;;  %v7207_v0 = vld [vmem:[%s7070_s26 + $0x28] sm:$0xf] }
 0x181   : > { %v1601_v39 = vadd.f32 %v1546_v24, %v1198_v8  ;;  %v3356_v8 = vshll.u32 %v7188_v52, 16  ;;  %v4061_v9 = vunpack.c.l.b16 %v3948_v37  ;;  %v4062_v41 = vunpack.c.l.b16 %v3951_v27 }
 0x182   : > { %v2721_v24 = vunpack.c.l.b16 %v2613_v28  ;;  %v2722_v11 = vunpack.c.l.b16 %v2616_v60  ;;  %v3344_v12 = vrot.slane %v3343_v31, 4  ;;  %v3361_v28 = vshrl.u32 %v7203_v25, 16 }
 0x183   : > { %v3358_v40 = vrot.slane %v3356_v8, 5  ;;  %v4092_v14 = vpack.c.b16 %v4062_v41, %v4061_v9  ;;  %v3364_v60 = vshll.u32 %v7203_v25, 16  ;;  %v3374_v8 = vshrl.u32 %v7207_v0, 16 }
 0x184   : > { %v2510_v1 = vpop.f32.mrf.mxu0  ;;  %v2751_v16 = vpack.c.b16 %v2722_v11, %v2721_v24  ;;  %v3349_v31 = vsel %vm6376_vm2, %v3344_v12, %v3348_v35  ;;  %v2621_v11 = vrot.slane %v2619_v2, 4  ;;  %v5890_v12 = vld [vmem:[%s7070_s26 + $0x18] sm:$0xff] }
 0x185   : > { %v1876_v56 = vpop.f32.mrf.mxu3  ;;  %5682 = vmatmul.msk.bf16.gmra.mxu2 %vm856_vm3, %v5889_v10  ;;  %v1202_v15 = vpop.f32.mrf.mxu1  ;;  %v3354_v10 = vrot.slane %v3353_v23, 4  ;;  %v3370_v23 = vshll.u32 %v7207_v0, 16  ;;  %v3685_v41 = vunpack.c.l.b16 %v3349_v31  ;;  %v3376_v17 = vrot.slane %v3374_v8, 4 }
 0x186   : > { %v1931_v29 = vadd.f32 %v1876_v56, %v1601_v39  ;;  %v3954_v39 = vrot.slane %v7161_v33, 5  ;;  %v5739_v33 = vrot.slane %v7158_v57, 9  ;;  %v1203_v35 = vadd.f32 %v1202_v15, %v6791_v18 }
 0x187   : > { %v3359_v56 = vsel %vm6376_vm2, %v3354_v10, %v3358_v40  ;;  %v3363_v15 = vrot.slane %v3361_v28, 4 }
 0x188   : > { %v1549_v54 = vpop.f32.mrf.mxu2  ;;  %v7209_v50 = vadd.f32 %v2510_v1, %v1931_v29  ;;  %v3956_v29 = vrot.slane %v3954_v39, 4  ;;  %v3686_v10 = vunpack.c.l.b16 %v3359_v56  ;;  %v3955_v40 = vsel %vm6618_vm6, %v5739_v33, %v3954_v39 }
 0x189   : > { %v1602_v5 = vadd.f32 %v1549_v54, %v1201_v22  ;;  %v6141_v22 = vld [vmem:[%s6606_s15 + $0x2c] sm:$0x1]  ;;  %v6142_v54 = vld [vmem:[%s6606_s15 + $0x24] sm:$0xf]  ;;  %v4063_v33 = vunpack.c.l.b16 %v3955_v40 }
 0x18a   : > { %5722 = vmatmul.msk.bf16.gmra.mxu3 %vm856_vm3, %v3714_v59  ;;  %v3957_v59 = vrot.slane %v7188_v52, 5  ;;  %v2622_v9 = vrot.slane %v6141_v22, 5  ;;  %v5540_v24 = vrot.slane %v6142_v54, 9  ;;  %v3366_v52 = vrot.slane %v3364_v60, 5  ;;  %v7248_v54 = vld [vmem:[%s7070_s26 + $0x30] sm:$0xf] }
 0x18c   : > { %v2513_v44 = vpop.f32.mrf.mxu0  ;;  %v2620_v31 = vsel %vm6618_vm6, %v5540_v24, %v2619_v2  ;;  %v2623_v56 = vsel %vm6618_vm6, %v2621_v11, %v2622_v9  ;;  %v7251_v24 = vld [vmem:[%s7070_s26 + $0x34] sm:$0xf] }
 0x18d   : > { %v1879_v37 = vpop.f32.mrf.mxu3  ;;  %v1205_v27 = vpop.f32.mrf.mxu1 }
 0x18e   : > { %v1932_v1 = vadd.f32 %v1879_v37, %v1602_v5  ;;  %v1206_v2 = vadd.f32 %v1205_v27, %v6813_v49  ;;  %v3961_v49 = vrot.slane %v7207_v0, 5  ;;  %v5740_v0 = vrot.slane %v7203_v25, 9 }
 0x18f   : > { %5778 = vmatmul.msk.bf16.gmra.mxu0 %vm856_vm3, %v4092_v14  ;;  %v7232_v14 = vrot.slane %v3370_v23, 5  ;;  %v3367_v23 = vor.u32 %v3366_v52, %v3363_v15  ;;  %v3385_v15 = vshrl.u32 %v7248_v54, 16  ;;  %v3388_v52 = vshll.u32 %v7248_v54, 16 }
 0x190   : > { %v1551_v57 = vpop.f32.mrf.mxu2  ;;  %5579 = vmatmul.msk.bf16.gmra.mxu1 %vm856_vm3, %v2751_v16  ;;  %v7230_v18 = vadd.f32 %v2513_v44, %v1932_v1  ;;  %v3958_v16 = vsel %vm6618_vm6, %v3956_v29, %v3957_v59  ;;  %v3715_v44 = vpack.c.b16 %v3686_v10, %v3685_v41  ;;  %v2723_v29 = vunpack.c.l.b16 %v2620_v31 }
 0x191   : > { %v1603_v5 = vadd.f32 %v1551_v57, %v1203_v35  ;;  %v7241_v35 = vld [vmem:[%s7070_s26 + $0x2c] sm:$0x1]  ;;  %v4064_v60 = vunpack.c.l.b16 %v3958_v16  ;;  %v3377_v8 = vor.u32 %v3376_v17, %v7232_v14  ;;  %v2724_v59 = vunpack.c.l.b16 %v2623_v56 }
 0x192   : > { %v3380_v22 = vshll.u32 %v7241_v35, 16  ;;  %v3368_v11 = vrot.slane %v3367_v23, 4  ;;  %v3394_v17 = vshll.u32 %v7251_v24, 16  ;;  %v3398_v16 = vshrl.u32 %v7251_v24, 16 }
 0x193   : > { %v4093_v41 = vpack.c.b16 %v4064_v60, %v4063_v33  ;;  %v6144_v33 = vld [vmem:[%s6606_s15 + $0x38] sm:$0x1]  ;;  %v3390_v25 = vrot.slane %v3388_v52, 5 }
 0x194   : > { %v2515_v37 = vpop.f32.mrf.mxu0  ;;  %v3382_v10 = vrot.slane %v3380_v22, 5  ;;  %v2629_v60 = vrot.slane %v6144_v33, 5  ;;  %v3387_v22 = vrot.slane %v3385_v15, 4  ;;  %v7278_v33 = vld [vmem:[%s7070_s26 + $0x38] sm:$0x1] }
 0x195   : > { %v1881_v39 = vpop.f32.mrf.mxu3  ;;  %5683 = vmatmul.msk.bf16.gmra.mxu2 %vm856_vm3, %v5890_v12  ;;  %v1207_v28 = vpop.f32.mrf.mxu1  ;;  %v2752_v12 = vpack.c.b16 %v2724_v59, %v2723_v29  ;;  %v3963_v29 = vrot.slane %v3961_v49, 4 }
 0x196   : > { %v1933_v1 = vadd.f32 %v1881_v39, %v1603_v5  ;;  %v3378_v5 = vrot.slane %v3377_v8, 4  ;;  %v6143_v39 = vld [vmem:[%s6606_s15 + $0x34] sm:$0xf]  ;;  %v3373_v8 = vsel %vm6376_vm2, %v3368_v11, %v7232_v14  ;;  %v3391_v15 = vor.u32 %v3390_v25, %v3387_v22 }
 0x197   : > { %v3687_v14 = vunpack.c.l.b16 %v3373_v8 }
 0x198   : > { %v1554_v9 = vpop.f32.mrf.mxu2  ;;  %v7255_v27 = vadd.f32 %v2515_v37, %v1933_v1  ;;  %v3964_v37 = vrot.slane %v7241_v35, 5  ;;  %v1208_v1 = vadd.f32 %v1207_v28, %v6835_v62  ;;  %v3400_v35 = vrot.slane %v3398_v16, 4 }
 0x199   : > { %v1604_v57 = vadd.f32 %v1554_v9, %v1206_v2  ;;  %v3383_v2 = vsel %vm6376_vm2, %v3378_v5, %v3382_v10  ;;  %v3396_v9 = vrot.slane %v3394_v17, 5  ;;  %v3962_v10 = vsel %vm6618_vm6, %v5740_v0, %v3961_v49 }
 0x19a   : > { %5723 = vmatmul.msk.bf16.gmra.mxu3 %vm856_vm3, %v3715_v44  ;;  %v2626_v44 = vrot.slane %v6143_v39, 5  ;;  %v3688_v11 = vunpack.c.l.b16 %v3383_v2 }
 0x19c   : > { %v2518_v40 = vpop.f32.mrf.mxu0  ;;  %v2628_v28 = vrot.slane %v2626_v44, 4  ;;  %v3716_v49 = vpack.c.b16 %v3688_v11, %v3687_v14  ;;  %v6146_v14 = vld [vmem:[%s6606_s15 + $0x40] sm:$0xf] }
 0x19d   : > { %v1884_v31 = vpop.f32.mrf.mxu3  ;;  %v1210_v56 = vpop.f32.mrf.mxu1  ;;  %v2633_v11 = vrot.slane %v6146_v14, 5 }
 0x19e   : > { %v1934_v23 = vadd.f32 %v1884_v31, %v1604_v57  ;;  %v6145_v31 = vld [vmem:[%s6606_s15 + $0x30] sm:$0xf]  ;;  %v2630_v16 = vsel %vm6618_vm6, %v2628_v28, %v2629_v60  ;;  %v1211_v0 = vadd.f32 %v1210_v56, %v6865_v6  ;;  %v7293_v60 = vld [vmem:[%s7070_s26 + $0x3c] sm:$0xf] }
 0x19f   : > { %5779 = vmatmul.msk.bf16.gmra.mxu0 %vm856_vm3, %v4093_v41  ;;  %v5891_v41 = vld [vmem:[%s7070_s26 + $0x24] sm:$0xff]  ;;  %v5541_v62 = vrot.slane %v6145_v31, 9  ;;  %v2726_v22 = vunpack.c.l.b16 %v2630_v16  ;;  %v3412_v16 = vshll.u32 %v7293_v60, 16 }
 0x1a0   : > { %v1556_v59 = vpop.f32.mrf.mxu2  ;;  %5580 = vmatmul.msk.bf16.gmra.mxu1 %vm856_vm3, %v2752_v12  ;;  %v7275_v39 = vadd.f32 %v2518_v40, %v1934_v23  ;;  %v3965_v12 = vsel %vm6618_vm6, %v3963_v29, %v3964_v37  ;;  %v3401_v23 = vor.u32 %v3400_v35, %v3396_v9  ;;  %v4065_v37 = vunpack.c.l.b16 %v3962_v10 }
 0x1a1   : > { %v1605_v57 = vadd.f32 %v1556_v59, %v1208_v1  ;;  %v2627_v40 = vsel %vm6618_vm6, %v5541_v62, %v2626_v44  ;;  %v3404_v1 = vshll.u32 %v7278_v33, 16  ;;  %v4066_v2 = vunpack.c.l.b16 %v3965_v12  ;;  %v7297_v62 = vld [vmem:[%s7070_s26 + $0x40] sm:$0xf] }
 0x1a2   : > { %v2725_v59 = vunpack.c.l.b16 %v2627_v40  ;;  %v3392_v44 = vrot.slane %v3391_v15, 4  ;;  %v3409_v40 = vshrl.u32 %v7293_v60, 16 }
 0x1a3   : > { %v3406_v31 = vrot.slane %v3404_v1, 5  ;;  %v4094_v35 = vpack.c.b16 %v4066_v2, %v4065_v37  ;;  %v3422_v1 = vshrl.u32 %v7297_v62, 16 }
 0x1a4   : > { %v2520_v5 = vpop.f32.mrf.mxu0  ;;  %v2753_v28 = vpack.c.b16 %v2726_v22, %v2725_v59  ;;  %v3397_v15 = vsel %vm6376_vm2, %v3392_v44, %v3396_v9  ;;  %v2635_v22 = vrot.slane %v2633_v11, 4  ;;  %v5892_v44 = vld [vmem:[%s7070_s26 + $0x30] sm:$0xff] }
 0x1a5   : > { %v1886_v52 = vpop.f32.mrf.mxu3  ;;  %5684 = vmatmul.msk.bf16.gmra.mxu2 %vm856_vm3, %v5891_v41  ;;  %v1212_v17 = vpop.f32.mrf.mxu1  ;;  %v3402_v41 = vrot.slane %v3401_v23, 4  ;;  %v3418_v23 = vshll.u32 %v7297_v62, 16  ;;  %v3689_v2 = vunpack.c.l.b16 %v3397_v15  ;;  %v3424_v14 = vrot.slane %v3422_v1, 4 }
 0x1a6   : > { %v1935_v8 = vadd.f32 %v1886_v52, %v1605_v57  ;;  %v3968_v57 = vrot.slane %v7251_v24, 5  ;;  %v5741_v24 = vrot.slane %v7248_v54, 9  ;;  %v1213_v9 = vadd.f32 %v1212_v17, %v6880_v32 }
 0x1a7   : > { %v3407_v52 = vsel %vm6376_vm2, %v3402_v41, %v3406_v31  ;;  %v3411_v17 = vrot.slane %v3409_v40, 4 }
 0x1a8   : > { %v1559_v29 = vpop.f32.mrf.mxu2  ;;  %v7299_v6 = vadd.f32 %v2520_v5, %v1935_v8  ;;  %v3970_v8 = vrot.slane %v3968_v57, 4  ;;  %v3690_v41 = vunpack.c.l.b16 %v3407_v52  ;;  %v3969_v31 = vsel %vm6618_vm6, %v5741_v24, %v3968_v57 }
 0x1a9   : > { %v1606_v25 = vadd.f32 %v1559_v29, %v1211_v0  ;;  %v6147_v0 = vld [vmem:[%s6606_s15 + $0x44] sm:$0x1]  ;;  %v6148_v29 = vld [vmem:[%s6606_s15 + $0x3c] sm:$0xf]  ;;  %v4067_v24 = vunpack.c.l.b16 %v3969_v31 }
 0x1aa   : > { %5724 = vmatmul.msk.bf16.gmra.mxu3 %vm856_vm3, %v3716_v49  ;;  %v3971_v49 = vrot.slane %v7278_v33, 5  ;;  %v2636_v37 = vrot.slane %v6147_v0, 5  ;;  %v5542_v59 = vrot.slane %v6148_v29, 9  ;;  %v3414_v33 = vrot.slane %v3412_v16, 5  ;;  %v7338_v29 = vld [vmem:[%s7070_s26 + $0x48] sm:$0xf] }
 0x1ac   : > { %v2523_v56 = vpop.f32.mrf.mxu0  ;;  %v2634_v15 = vsel %vm6618_vm6, %v5542_v59, %v2633_v11  ;;  %v2637_v52 = vsel %vm6618_vm6, %v2635_v22, %v2636_v37  ;;  %v7341_v59 = vld [vmem:[%s7070_s26 + $0x4c] sm:$0xf] }
 0x1ad   : > { %v1889_v10 = vpop.f32.mrf.mxu3  ;;  %v1215_v12 = vpop.f32.mrf.mxu1 }
 0x1ae   : > { %v1936_v5 = vadd.f32 %v1889_v10, %v1606_v25  ;;  %v1216_v11 = vadd.f32 %v1215_v12, %v6740_v63  ;;  %v3975_v63 = vrot.slane %v7297_v62, 5  ;;  %v5742_v62 = vrot.slane %v7293_v60, 9 }
 0x1af   : > { %5780 = vmatmul.msk.bf16.gmra.mxu0 %vm856_vm3, %v4094_v35  ;;  %v7322_v35 = vrot.slane %v3418_v23, 5  ;;  %v3415_v23 = vor.u32 %v3414_v33, %v3411_v17  ;;  %v3433_v17 = vshrl.u32 %v7338_v29, 16  ;;  %v3436_v33 = vshll.u32 %v7338_v29, 16 }
 0x1b0   : > { %v1561_v54 = vpop.f32.mrf.mxu2  ;;  %5581 = vmatmul.msk.bf16.gmra.mxu1 %vm856_vm3, %v2753_v28  ;;  %v7320_v32 = vadd.f32 %v2523_v56, %v1936_v5  ;;  %v3972_v28 = vsel %vm6618_vm6, %v3970_v8, %v3971_v49  ;;  %v3717_v56 = vpack.c.b16 %v3690_v41, %v3689_v2  ;;  %v2727_v8 = vunpack.c.l.b16 %v2634_v15 }
 0x1b1   : > { %v1607_v25 = vadd.f32 %v1561_v54, %v1213_v9  ;;  %v7331_v9 = vld [vmem:[%s7070_s26 + $0x44] sm:$0x1]  ;;  %v4068_v16 = vunpack.c.l.b16 %v3972_v28  ;;  %v3425_v1 = vor.u32 %v3424_v14, %v7322_v35  ;;  %v2728_v49 = vunpack.c.l.b16 %v2637_v52 }
 0x1b2   : > { %v3428_v0 = vshll.u32 %v7331_v9, 16  ;;  %v3416_v22 = vrot.slane %v3415_v23, 4  ;;  %v3442_v14 = vshll.u32 %v7341_v59, 16  ;;  %v3446_v28 = vshrl.u32 %v7341_v59, 16 }
 0x1b3   : > { %v4095_v2 = vpack.c.b16 %v4068_v16, %v4067_v24  ;;  %v6150_v24 = vld [vmem:[%s6606_s15 + $0x50] sm:$0x1]  ;;  %v3438_v60 = vrot.slane %v3436_v33, 5 }
 0x1b4   : > { %v2525_v10 = vpop.f32.mrf.mxu0  ;;  %v3430_v41 = vrot.slane %v3428_v0, 5  ;;  %v2643_v16 = vrot.slane %v6150_v24, 5  ;;  %v3435_v0 = vrot.slane %v3433_v17, 4  ;;  %v2978_v24 = vld [vmem:[%s7070_s26 + $0x50] sm:$0x1] }
 0x1b5   : > { %v1891_v57 = vpop.f32.mrf.mxu3  ;;  %5685 = vmatmul.msk.bf16.gmra.mxu2 %vm856_vm3, %v5892_v44  ;;  %v1217_v40 = vpop.f32.mrf.mxu1  ;;  %v2754_v44 = vpack.c.b16 %v2728_v49, %v2727_v8  ;;  %v3977_v8 = vrot.slane %v3975_v63, 4 }
 0x1b6   : > { %v1937_v5 = vadd.f32 %v1891_v57, %v1607_v25  ;;  %v3426_v25 = vrot.slane %v3425_v1, 4  ;;  %v6149_v57 = vld [vmem:[%s6606_s15 + $0x4c] sm:$0xf]  ;;  %v3421_v1 = vsel %vm6376_vm2, %v3416_v22, %v7322_v35  ;;  %v3439_v17 = vor.u32 %v3438_v60, %v3435_v0 }
 0x1b7   : > { %v3691_v35 = vunpack.c.l.b16 %v3421_v1  ;;  %v3982_v60 = vrot.slane %v7341_v59, 5 }
 0x1b8   : > { %v1564_v37 = vpop.f32.mrf.mxu2  ;;  %v7345_v12 = vadd.f32 %v2525_v10, %v1937_v5  ;;  %v3978_v10 = vrot.slane %v7331_v9, 5  ;;  %v1218_v5 = vadd.f32 %v1217_v40, %v6763_v30  ;;  %v3448_v9 = vrot.slane %v3446_v28, 4 }
 0x1b9   : > { %v1608_v54 = vadd.f32 %v1564_v37, %v1216_v11  ;;  %v3431_v11 = vsel %vm6376_vm2, %v3426_v25, %v3430_v41  ;;  %v3444_v37 = vrot.slane %v3442_v14, 5  ;;  %v3976_v41 = vsel %vm6618_vm6, %v5742_v62, %v3975_v63 }
 0x1ba   : > { %5725 = vmatmul.msk.bf16.gmra.mxu3 %vm856_vm3, %v3717_v56  ;;  %v2640_v56 = vrot.slane %v6149_v57, 5  ;;  %v3692_v22 = vunpack.c.l.b16 %v3431_v11  ;;  %v3984_v59 = vrot.slane %v3982_v60, 4 }
 0x1bc   : > { %v2528_v31 = vpop.f32.mrf.mxu0  ;;  %v2642_v40 = vrot.slane %v2640_v56, 4  ;;  %v3718_v63 = vpack.c.b16 %v3692_v22, %v3691_v35  ;;  %v5743_v35 = vrot.slane %v7338_v29, 9  ;;  %v3985_v22 = vrot.slane %v2978_v24, 5 }
 0x1bd   : > { %v1894_v15 = vpop.f32.mrf.mxu3  ;;  %v1220_v52 = vpop.f32.mrf.mxu1 }
 0x1be   : > { %v1938_v23 = vadd.f32 %v1894_v15, %v1608_v54  ;;  %v6151_v15 = vld [vmem:[%s6606_s15 + $0x48] sm:$0xf]  ;;  %v1221_v62 = vadd.f32 %v1220_v52, %v6783_v7 }
 0x1bf   : > { %5781 = vmatmul.msk.bf16.gmra.mxu0 %vm856_vm3, %v4095_v2  ;;  %v5893_v2 = vld [vmem:[%s7070_s26 + $0x3c] sm:$0xff]  ;;  %v5543_v30 = vrot.slane %v6151_v15, 9 }
 0x1c0   : > { %v1566_v49 = vpop.f32.mrf.mxu2  ;;  %5582 = vmatmul.msk.bf16.gmra.mxu1 %vm856_vm3, %v2754_v44  ;;  %v7365_v57 = vadd.f32 %v2528_v31, %v1938_v23  ;;  %v3979_v44 = vsel %vm6618_vm6, %v3977_v8, %v3978_v10  ;;  %v2644_v31 = vsel %vm6618_vm6, %v2642_v40, %v2643_v16  ;;  %v3449_v23 = vor.u32 %v3448_v9, %v3444_v37  ;;  %v7381_v9 = vld [vmem:[%s7070_s26 + $0x54] sm:$0xf] }
 0x1c1   : > { %v1609_v54 = vadd.f32 %v1566_v49, %v1218_v5  ;;  %v2641_v28 = vsel %vm6618_vm6, %v5543_v30, %v2640_v56  ;;  %v3452_v5 = vshll.u32 %v2978_v24, 16  ;;  %v4069_v10 = vunpack.c.l.b16 %v3976_v41  ;;  %v7384_v30 = vld [vmem:[%s7070_s26 + $0x58] sm:$0xf] }
 0x1c2   : > { %8494 = vst [vmem:[#allocation8_spill] sm:$0xff] %v7365_v57  ;;  %v4070_v11 = vunpack.c.l.b16 %v3979_v44  ;;  %v2729_v49 = vunpack.c.l.b16 %v2641_v28  ;;  %v2730_v0 = vunpack.c.l.b16 %v2644_v31  ;;  %v3440_v56 = vrot.slane %v3439_v17, 4  ;;  %v6152_v28 = vld [vmem:[%s6606_s15 + $0x58] sm:$0xf] }
 0x1c3   : > { %v3450_v15 = vrot.slane %v3449_v23, 4  ;;  %v3454_v16 = vrot.slane %v3452_v5, 5  ;;  %v2647_v31 = vrot.slane %v6152_v28, 5  ;;  %v3460_v5 = vshll.u32 %v7381_v9, 16 }
 0x1c4   : > { %v2530_v25 = vpop.f32.mrf.mxu0  ;;  %v2755_v40 = vpack.c.b16 %v2730_v0, %v2729_v49  ;;  %v3445_v17 = vsel %vm6376_vm2, %v3440_v56, %v3444_v37  ;;  %v3466_v29 = vshll.u32 %v7384_v30, 16  ;;  %v3470_v24 = vshrl.u32 %v7384_v30, 16  ;;  %v6154_v56 = vld [vmem:[%s6606_s15 + $0x54] sm:$0xf] }
 0x1c5   : > { %v1896_v33 = vpop.f32.mrf.mxu3  ;;  %5686 = vmatmul.msk.bf16.gmra.mxu2 %vm856_vm3, %v5893_v2  ;;  %v1222_v14 = vpop.f32.mrf.mxu1  ;;  %v3986_v49 = vsel %vm6618_vm6, %v3984_v59, %v3985_v22 }
 0x1c6   : > { %v1939_v1 = vadd.f32 %v1896_v33, %v1609_v54  ;;  %v4096_v54 = vpack.c.b16 %v4070_v11, %v4069_v10  ;;  %v3455_v33 = vsel %vm6376_vm2, %v3450_v15, %v3454_v16  ;;  %v1223_v37 = vadd.f32 %v1222_v14, %v6801_v20 }
 0x1c7   : > { %v3693_v10 = vunpack.c.l.b16 %v3445_v17  ;;  %v3694_v11 = vunpack.c.l.b16 %v3455_v33  ;;  %v5544_v15 = vrot.slane %v6154_v56, 9  ;;  %v2649_v16 = vrot.slane %v2647_v31, 4  ;;  %v7413_v17 = vld [vmem:[%s7070_s26 + $0x5c] sm:$0x1] }
 0x1c8   : > { %v1569_v8 = vpop.f32.mrf.mxu2  ;;  %v7386_v7 = vadd.f32 %v2530_v25, %v1939_v1  ;;  %v3457_v25 = vshrl.u32 %v7381_v9, 16  ;;  %v6153_v1 = vld [vmem:[%s6606_s15 + $0x5c] sm:$0x1]  ;;  %v3462_v14 = vrot.slane %v3460_v5, 5  ;;  %v4072_v59 = vunpack.c.l.b16 %v3986_v49  ;;  %v7427_v49 = vld [vmem:[%s7070_s26 + $0x64] sm:$0xf] }
 0x1c9   : > { %v1610_v2 = vadd.f32 %v1569_v8, %v1221_v62  ;;  %v3983_v8 = vsel %vm6618_vm6, %v5743_v35, %v3982_v60  ;;  %v3719_v35 = vpack.c.b16 %v3694_v11, %v3693_v10  ;;  %v7424_v10 = vld [vmem:[%s7070_s26 + $0x60] sm:$0xf]  ;;  %v3989_v56 = vrot.slane %v7384_v30, 5 }
 0x1ca   : > { %5726 = vmatmul.msk.bf16.gmra.mxu3 %vm856_vm3, %v3718_v63  ;;  %8495 = vst [vmem:[#allocation9_spill] sm:$0xff] %v7386_v7  ;;  %v2650_v63 = vrot.slane %v6153_v1, 5  ;;  %v3459_v20 = vrot.slane %v3457_v25, 4  ;;  %v4071_v28 = vunpack.c.l.b16 %v3983_v8 }
 0x1cc   : > { %v2533_v52 = vpop.f32.mrf.mxu0  ;;  %v2651_v25 = vsel %vm6618_vm6, %v2649_v16, %v2650_v63  ;;  %v3463_v5 = vor.u32 %v3462_v14, %v3459_v20  ;;  %v3490_v14 = vshll.u32 %v7427_v49, 16 }
 0x1cd   : > { %v1899_v41 = vpop.f32.mrf.mxu3  ;;  %v1225_v44 = vpop.f32.mrf.mxu1  ;;  %v2732_v8 = vunpack.c.l.b16 %v2651_v25 }
 0x1ce   : > { %v1940_v23 = vadd.f32 %v1899_v41, %v1610_v2  ;;  %v5894_v2 = vld [vmem:[%s7070_s26 + $0x48] sm:$0xff]  ;;  %v7410_v41 = vrot.slane %v3466_v29, 5  ;;  %v1226_v1 = vadd.f32 %v1225_v44, %v6822_v45  ;;  %v3464_v63 = vrot.slane %v3463_v5, 4 }
 0x1cf   : > { %5782 = vmatmul.msk.bf16.gmra.mxu0 %vm856_vm3, %v4096_v54  ;;  %v3484_v45 = vshll.u32 %v7424_v10, 16 }
 0x1d0   : > { %v1571_v62 = vpop.f32.mrf.mxu2  ;;  %5583 = vmatmul.msk.bf16.gmra.mxu1 %vm856_vm3, %v2755_v40  ;;  %v7408_v54 = vadd.f32 %v2533_v52, %v1940_v23  ;;  %v3472_v40 = vrot.slane %v3470_v24, 4  ;;  %v2648_v52 = vsel %vm6618_vm6, %v5544_v15, %v2647_v31  ;;  %v3476_v24 = vshll.u32 %v7413_v17, 16 }
 0x1d1   : > { %v1611_v0 = vadd.f32 %v1571_v62, %v1223_v37  ;;  %v2731_v62 = vunpack.c.l.b16 %v2648_v52  ;;  %v4097_v31 = vpack.c.b16 %v4072_v59, %v4071_v28  ;;  %v3481_v15 = vshrl.u32 %v7424_v10, 16  ;;  %v6155_v59 = vld [vmem:[%s6606_s15 + $0x64] sm:$0xf] }
 0x1d2   : > { %8496 = vst [vmem:[#allocation10_spill] sm:$0xff] %v7408_v54  ;;  %v3473_v29 = vor.u32 %v3472_v40, %v7410_v41  ;;  %v3494_v40 = vshrl.u32 %v7427_v49, 16  ;;  %v2654_v52 = vrot.slane %v6155_v59, 5 }
 0x1d3   : > { %v2756_v20 = vpack.c.b16 %v2732_v8, %v2731_v62  ;;  %v3492_v62 = vrot.slane %v3490_v14, 5 }
 0x1d4   : > { %v2535_v33 = vpop.f32.mrf.mxu0  ;;  %v3496_v8 = vrot.slane %v3494_v40, 4 }
 0x1d5   : > { %v1901_v60 = vpop.f32.mrf.mxu3  ;;  %5687 = vmatmul.msk.bf16.gmra.mxu2 %vm856_vm3, %v5894_v2  ;;  %v1227_v22 = vpop.f32.mrf.mxu1  ;;  %v3478_v2 = vrot.slane %v3476_v24, 5  ;;  %v3486_v24 = vrot.slane %v3484_v45, 5  ;;  %v7457_v45 = vld [vmem:[%s7070_s26 + $0x6c] sm:$0xf] }
 0x1d6   : > { %v1941_v23 = vadd.f32 %v1901_v60, %v1611_v0  ;;  %v3474_v0 = vrot.slane %v3473_v29, 4  ;;  %v1228_v5 = vadd.f32 %v1227_v22, %v6850_v36  ;;  %v3483_v29 = vrot.slane %v3481_v15, 4 }
 0x1d7   : > { %v3497_v59 = vor.u32 %v3496_v8, %v3492_v62 }
 0x1d8   : > { %v1574_v37 = vpop.f32.mrf.mxu2  ;;  %v7433_v44 = vadd.f32 %v2535_v33, %v1941_v23  ;;  %v3469_v33 = vsel %vm6376_vm2, %v3464_v63, %v7410_v41  ;;  %v3479_v25 = vsel %vm6376_vm2, %v3474_v0, %v3478_v2  ;;  %v3992_v23 = vrot.slane %v7413_v17, 5  ;;  %v5895_v63 = vld [vmem:[%s7070_s26 + $0x54] sm:$0xff]  ;;  %v6157_v0 = vld [vmem:[%s6606_s15 + $0x68] sm:$0x1] }
 0x1d9   : > { %v1612_v11 = vadd.f32 %v1574_v37, %v1226_v1  ;;  %v6156_v37 = vld [vmem:[%s6606_s15 + $0x60] sm:$0xf]  ;;  %v2656_v17 = vrot.slane %v2654_v52, 4  ;;  %v7452_v2 = vld [vmem:[%s7070_s26 + $0x68] sm:$0x1]  ;;  %v3695_v22 = vunpack.c.l.b16 %v3469_v33  ;;  %v3696_v15 = vunpack.c.l.b16 %v3479_v25 }
 0x1da   : > { %5727 = vmatmul.msk.bf16.gmra.mxu3 %vm856_vm3, %v3719_v35  ;;  %8497 = vst [vmem:[#allocation11_spill] sm:$0xff] %v7433_v44  ;;  %v5744_v35 = vrot.slane %v7381_v9, 9  ;;  %v3991_v9 = vrot.slane %v3989_v56, 4  ;;  %v5545_v41 = vrot.slane %v6156_v37, 9  ;;  %v3487_v40 = vor.u32 %v3486_v24, %v3483_v29 }
 0x1db   : > { %v3508_v33 = vshll.u32 %v7457_v45, 16  ;;  %v3498_v44 = vrot.slane %v3497_v59, 4 }
 0x1dc   : > { %v2538_v16 = vpop.f32.mrf.mxu0  ;;  %v3993_v14 = vsel %vm6618_vm6, %v3991_v9, %v3992_v23  ;;  %v3720_v23 = vpack.c.b16 %v3696_v15, %v3695_v22  ;;  %v3488_v8 = vrot.slane %v3487_v40, 4 }
 0x1dd   : > { %v1904_v60 = vpop.f32.mrf.mxu3  ;;  %v1230_v28 = vpop.f32.mrf.mxu1  ;;  %v4074_v29 = vunpack.c.l.b16 %v3993_v14  ;;  %v3510_v22 = vrot.slane %v3508_v33, 5 }
 0x1de   : > { %v1942_v30 = vadd.f32 %v1904_v60, %v1612_v11  ;;  %v1231_v24 = vadd.f32 %v1230_v28, %v6876_v4  ;;  %v5745_v28 = vrot.slane %v7424_v10, 9  ;;  %v3493_v15 = vsel %vm6376_vm2, %v3488_v8, %v3492_v62 }
 0x1df   : > { %5783 = vmatmul.msk.bf16.gmra.mxu0 %vm856_vm3, %v4097_v31  ;;  %v2657_v31 = vrot.slane %v6157_v0, 5 }
 0x1e0   : > { %v1576_v1 = vpop.f32.mrf.mxu2  ;;  %5584 = vmatmul.msk.bf16.gmra.mxu1 %vm856_vm3, %v2756_v20  ;;  %v7454_v36 = vadd.f32 %v2538_v16, %v1942_v30  ;;  %v3990_v20 = vsel %vm6618_vm6, %v5744_v35, %v3989_v56  ;;  %v2655_v30 = vsel %vm6618_vm6, %v5545_v41, %v2654_v52  ;;  %v3505_v35 = vshrl.u32 %v7457_v45, 16 }
 0x1e1   : > { %v1613_v11 = vadd.f32 %v1576_v1, %v1228_v5  ;;  %v3500_v5 = vshll.u32 %v7452_v2, 16  ;;  %v7465_v1 = vld [vmem:[%s7070_s26 + $0x70] sm:$0xf]  ;;  %v2658_v56 = vsel %vm6618_vm6, %v2656_v17, %v2657_v31  ;;  %v4073_v9 = vunpack.c.l.b16 %v3990_v20 }
 0x1e2   : > { %8498 = vst [vmem:[#allocation12_spill] sm:$0xff] %v7454_v36  ;;  %v3518_v0 = vshrl.u32 %v7465_v1, 16  ;;  %v2733_v52 = vunpack.c.l.b16 %v2655_v30  ;;  %v2734_v41 = vunpack.c.l.b16 %v2658_v56  ;;  %v3996_v17 = vrot.slane %v7427_v49, 5  ;;  %v7489_v56 = vld [vmem:[%s7070_s26 + $0x74] sm:$0x1] }
 0x1e3   : > { %v3502_v54 = vrot.slane %v3500_v5, 5  ;;  %v4098_v4 = vpack.c.b16 %v4074_v29, %v4073_v9  ;;  %v3999_v5 = vrot.slane %v7452_v2, 5  ;;  %v3524_v29 = vshll.u32 %v7489_v56, 16 }
 0x1e4   : > { %v2540_v60 = vpop.f32.mrf.mxu0  ;;  %v3520_v14 = vrot.slane %v3518_v0, 4  ;;  %v2757_v59 = vpack.c.b16 %v2734_v41, %v2733_v52  ;;  %v5896_v41 = vld [vmem:[%s7070_s26 + $0x60] sm:$0xff] }
 0x1e5   : > { %v1906_v37 = vpop.f32.mrf.mxu3  ;;  %5688 = vmatmul.msk.bf16.gmra.mxu2 %vm856_vm3, %v5895_v63  ;;  %v1232_v16 = vpop.f32.mrf.mxu1  ;;  %v3514_v63 = vshll.u32 %v7465_v1, 16  ;;  %v3503_v62 = vsel %vm6376_vm2, %v3498_v44, %v3502_v54 }
 0x1e6   : > { %v1943_v25 = vadd.f32 %v1906_v37, %v1613_v11  ;;  %v3507_v11 = vrot.slane %v3505_v35, 4  ;;  %v6158_v37 = vld [vmem:[%s6606_s15 + $0x70] sm:$0xf]  ;;  %v1233_v2 = vadd.f32 %v1232_v16, %v6892_v3  ;;  %v3698_v44 = vunpack.c.l.b16 %v3503_v62  ;;  %v7507_v3 = vld [vmem:[%s7070_s26 + $0x7c] sm:$0xf] }
 0x1e7   : > { %v7482_v20 = vrot.slane %v3514_v63, 5  ;;  %v2661_v30 = vrot.slane %v6158_v37, 5  ;;  %v6159_v63 = vld [vmem:[%s6606_s15 + $0x6c] sm:$0xf] }
 0x1e8   : > { %v1579_v36 = vpop.f32.mrf.mxu2  ;;  %v7484_v40 = vadd.f32 %v2540_v60, %v1943_v25  ;;  %v3511_v33 = vor.u32 %v3510_v22, %v3507_v11  ;;  %v3697_v25 = vunpack.c.l.b16 %v3493_v15  ;;  %v5546_v0 = vrot.slane %v6159_v63, 9 }
 0x1e9   : > { %v1614_v31 = vadd.f32 %v1579_v36, %v1231_v24  ;;  %v3998_v36 = vrot.slane %v3996_v17, 4  ;;  %v3521_v9 = vor.u32 %v3520_v14, %v7482_v20  ;;  %v7500_v24 = vld [vmem:[%s7070_s26 + $0x78] sm:$0xf]  ;;  %v2663_v52 = vrot.slane %v2661_v30, 4 }
 0x1ea   : > { %5728 = vmatmul.msk.bf16.gmra.mxu3 %vm856_vm3, %v3720_v23  ;;  %8499 = vst [vmem:[#allocation13_spill] sm:$0xff] %v7484_v40  ;;  %v3997_v23 = vsel %vm6618_vm6, %v5745_v28, %v3996_v17  ;;  %v6160_v17 = vld [vmem:[%s6606_s15 + $0x74] sm:$0x1]  ;;  %v3512_v11 = vrot.slane %v3511_v33, 4  ;;  %v3529_v28 = vshrl.u32 %v7500_v24, 16  ;;  %v3532_v15 = vshll.u32 %v7500_v24, 16 }
 0x1eb   : > { %v4000_v8 = vsel %vm6618_vm6, %v3998_v36, %v3999_v5  ;;  %v3522_v14 = vrot.slane %v3521_v9, 4  ;;  %v3538_v36 = vshll.u32 %v7507_v3, 16  ;;  %v3542_v5 = vshrl.u32 %v7507_v3, 16 }
 0x1ec   : > { %v2543_v49 = vpop.f32.mrf.mxu0  ;;  %v4075_v62 = vunpack.c.l.b16 %v3997_v23  ;;  %v3517_v9 = vsel %vm6376_vm2, %v3512_v11, %v7482_v20  ;;  %v6161_v11 = vld [vmem:[%s6606_s15 + $0x7c] sm:$0xf] }
 0x1ed   : > { %v1909_v35 = vpop.f32.mrf.mxu3  ;;  %v2846_v10 = vpop.f32.mrf.mxu1  ;;  %v7530_v63 = vrot.slane %v3538_v36, 5 }
 0x1ee   : > { %v1944_v60 = vadd.f32 %v1909_v35, %v1614_v31  ;;  %v2664_v31 = vrot.slane %v6160_v17, 5  ;;  %v3721_v35 = vpack.c.b16 %v3698_v44, %v3697_v25  ;;  %v4006_v25 = vrot.slane %v7489_v56, 5 }
 0x1ef   : > { %5784 = vmatmul.msk.bf16.gmra.mxu0 %vm856_vm3, %v4098_v4  ;;  %v4003_v4 = vrot.slane %v7465_v1, 5  ;;  %v3534_v44 = vrot.slane %v3532_v15, 5 }
 0x1f0   : > { %v1581_v54 = vpop.f32.mrf.mxu2  ;;  %5585 = vmatmul.msk.bf16.gmra.mxu1 %vm856_vm3, %v2757_v59  ;;  %v7511_v22 = vadd.f32 %v2543_v49, %v1944_v60  ;;  %v3526_v59 = vrot.slane %v3524_v29, 5  ;;  %v2662_v49 = vsel %vm6618_vm6, %v5546_v0, %v2661_v30  ;;  %v2665_v60 = vsel %vm6618_vm6, %v2663_v52, %v2664_v31 }
 0x1f1   : > { %v1615_v16 = vadd.f32 %v1581_v54, %v1233_v2  ;;  %v4076_v2 = vunpack.c.l.b16 %v4000_v8  ;;  %v5746_v29 = vrot.slane %v7457_v45, 9  ;;  %v4005_v54 = vrot.slane %v4003_v4, 4  ;;  %v7534_v45 = vld [vmem:[%s7070_s26 + $0x80] sm:$0x1] }
 0x1f2   : > { %8500 = vst [vmem:[#allocation14_spill] sm:$0xff] %v7511_v22  ;;  %v3531_v30 = vrot.slane %v3529_v28, 4  ;;  %v3527_v8 = vsel %vm6376_vm2, %v3522_v14, %v3526_v59  ;;  %v3544_v0 = vrot.slane %v3542_v5, 4  ;;  %v2926_v52 = vadd.f32 %v2846_v10, %v6910_v13  ;;  %v6162_v59 = vld [vmem:[%s6606_s15 + $0x78] sm:$0xf] }
 0x1f3   : > { %v2735_v20 = vunpack.c.l.b16 %v2662_v49  ;;  %v2736_v17 = vunpack.c.l.b16 %v2665_v60  ;;  %v4099_v56 = vpack.c.b16 %v4076_v2, %v4075_v62  ;;  %v7536_v31 = vunpack.c.l.b16 %v3517_v9 }
 0x1f4   : > { %v2545_v37 = vpop.f32.mrf.mxu0  ;;  %v2668_v28 = vrot.slane %v6161_v11, 5  ;;  %v7544_v14 = vunpack.c.l.b16 %v3527_v8  ;;  %v7548_v13 = vsel %vm6618_vm6, %v4005_v54, %v4006_v25  ;;  %v3535_v10 = vor.u32 %v3534_v44, %v3531_v30  ;;  %v7560_v30 = vld [vmem:[%s8482_s4] ss:$0 sm:$0xff] }
 0x1f5   : > { %v1911_v33 = vpop.f32.mrf.mxu3  ;;  %5689 = vmatmul.msk.bf16.gmra.mxu2 %vm856_vm3, %v5896_v41  ;;  %v2848_v1 = vpop.f32.mrf.mxu1  ;;  %v5547_v36 = vrot.slane %v6162_v59, 9  ;;  %v3545_v5 = vor.u32 %v3544_v0, %v7530_v63  ;;  %v2758_v49 = vpack.c.b16 %v2736_v17, %v2735_v20  ;;  %v7570_v20 = vld [vmem:[%s7070_s26 + $0x84] sm:$0xf]  ;;  %v7573_v17 = vld [vmem:[%s7070_s26 + $0x88] sm:$0xf] }
 0x1f6   : > { %v1945_v23 = vadd.f32 %v1911_v33, %v1615_v16  ;;  %v7540_v16 = vsel %vm6618_vm6, %v5746_v29, %v4003_v4  ;;  %v3548_v4 = vshll.u32 %v7534_v45, 16  ;;  %v2670_v9 = vrot.slane %v2668_v28, 4  ;;  %v6163_v29 = vld [vmem:[%s6606_s15 + $0x80] sm:$0x1] }
 0x1f7   : > { %v2671_v25 = vrot.slane %v6163_v29, 5  ;;  %v3536_v44 = vrot.slane %v3535_v10, 4  ;;  %v2927_v8 = vadd.f32 %v2848_v1, %v6923_v19  ;;  %v2669_v0 = vsel %vm6618_vm6, %v5547_v36, %v2668_v28  ;;  %v5897_v1 = vld [vmem:[%s7070_s26 + $0x6c] sm:$0xff] }
 0x1f8   : > { %v3176_v41 = vpop.f32.mrf.mxu2  ;;  %v7553_v62 = vadd.f32 %v2545_v37, %v1945_v23  ;;  %v3722_v37 = vpack.c.b16 %v7544_v14, %v7536_v31  ;;  %v4078_v23 = vunpack.c.l.b16 %v7548_v13  ;;  %v5747_v31 = vrot.slane %v7500_v24, 9 }
 0x1f9   : > { %v3256_v15 = vadd.f32 %v3176_v41, %v2926_v52  ;;  %v3546_v52 = vrot.slane %v3545_v5, 4  ;;  %v3550_v41 = vrot.slane %v3548_v4, 5  ;;  %v3556_v19 = vshll.u32 %v7570_v20, 16 }
 0x1fa   : > { %5729 = vmatmul.msk.bf16.gmra.mxu3 %vm856_vm3, %v3721_v35  ;;  %8501 = vst [vmem:[#allocation15_spill] sm:$0xff] %v7553_v62  ;;  %v2672_v28 = vsel %vm6618_vm6, %v2670_v9, %v2671_v25  ;;  %v4010_v14 = vrot.slane %v7507_v3, 5  ;;  %v3562_v13 = vshll.u32 %v7573_v17, 16  ;;  %v3566_v10 = vshrl.u32 %v7573_v17, 16  ;;  %v6164_v25 = vld [vmem:[%s6606_s15 + $0x88] sm:$0xf] }
 0x1fb   : > { %v3558_v5 = vrot.slane %v3556_v19, 5  ;;  %v2737_v4 = vunpack.c.l.b16 %v2669_v0 }
 0x1fc   : > { %v4188_v2 = vpop.f32.mrf.mxu0  ;;  %v3568_v29 = vrot.slane %v3566_v10, 4  ;;  %v4012_v10 = vrot.slane %v4010_v14, 4 }
 0x1fd   : > { %v3810_v35 = vpop.f32.mrf.mxu3  ;;  %v2851_v33 = vpop.f32.mrf.mxu1 }
 0x1fe   : > { %v3890_v54 = vadd.f32 %v3810_v35, %v3256_v15  ;;  %v3564_v35 = vrot.slane %v3562_v13, 5 }
 0x1ff   : > { %5785 = vmatmul.msk.bf16.gmra.mxu0 %vm856_vm3, %v4099_v56  ;;  %v3553_v56 = vshrl.u32 %v7570_v20, 16 }
 0x200   : > { %v4268_v11 = vadd.f32 %v4188_v2, %v3890_v54  ;;  %v3178_v15 = vpop.f32.mrf.mxu2  ;;  %5586 = vmatmul.msk.bf16.gmra.mxu1 %vm856_vm3, %v2758_v49  ;;  %v4013_v2 = vrot.slane %v7534_v45, 5  ;;  %v7590_v49 = vld [vmem:[%s7070_s26 + $0x8c] sm:$0x1]  ;;  %v2675_v54 = vrot.slane %v6164_v25, 5  ;;  %v3541_v45 = vsel %vm6376_vm2, %v3536_v44, %v7530_v63 }
 0x201   : > { %v3257_v36 = vadd.f32 %v3178_v15, %v2927_v8  ;;  %v3555_v24 = vrot.slane %v3553_v56, 4  ;;  %v2738_v15 = vunpack.c.l.b16 %v2672_v28  ;;  %v3551_v56 = vsel %vm6376_vm2, %v3546_v52, %v3550_v41  ;;  %v6166_v28 = vld [vmem:[%s6606_s15 + $0x8c] sm:$0x1] }
 0x202   : > { %v7586_v59 = vadd.f32 %v7560_v30, %v4268_v11  ;;  %v3572_v11 = vshll.u32 %v7590_v49, 16  ;;  %v3569_v19 = vor.u32 %v3568_v29, %v3564_v35  ;;  %v2928_v25 = vadd.f32 %v2851_v33, %v6936_v26 }
 0x203   : > { %v3559_v60 = vor.u32 %v3558_v5, %v3555_v24  ;;  %v6165_v24 = vld [vmem:[%s6606_s15 + $0x84] sm:$0xf]  ;;  %v2677_v62 = vrot.slane %v2675_v54, 4  ;;  %v2678_v22 = vrot.slane %v6166_v28, 5  ;;  %v8502_v52 = vunpack.c.l.b16 %v7540_v16 }
 0x204   : > { %v5793_v9 = vmul.f32 -1.442695, %v7586_v59  ;;  %v4190_v3 = vpop.f32.mrf.mxu0  ;;  %v5548_v5 = vrot.slane %v6165_v24, 9  ;;  %v3570_v44 = vrot.slane %v3569_v19, 4  ;;  %v3574_v57 = vrot.slane %v3572_v11, 5  ;;  %v5898_v24 = vld [vmem:[%s7070_s26 + $0x78] sm:$0xff] }
 0x205   : > { %v3812_v8 = vpop.f32.mrf.mxu3  ;;  %5690 = vmatmul.msk.bf16.gmra.mxu2 %vm856_vm3, %v5897_v1  ;;  %v2853_v0 = vpop.f32.mrf.mxu1  ;;  %v4011_v1 = vsel %vm6618_vm6, %v5747_v31, %v4010_v14  ;;  %v3560_v63 = vrot.slane %v3559_v60, 4  ;;  %v4100_v41 = vpack.c.b16 %v4078_v23, %v8502_v52  ;;  %v4014_v33 = vsel %vm6618_vm6, %v4012_v10, %v4013_v2  ;;  %v7639_v19 = vld [vmem:[%s7070_s26 + $0x90] sm:$0xf] }
 0x206   : > { %5973 = vpow2.f32 %v5793_v9  ;;  %v3891_v13 = vadd.f32 %v3812_v8, %v3257_v36  ;;  %v7608_v36 = vunpack.c.l.b16 %v3541_v45  ;;  %v2676_v31 = vsel %vm6618_vm6, %v5548_v5, %v2675_v54 }
 0x207   : > { %v2759_v60 = vpack.c.b16 %v2738_v15, %v2737_v4  ;;  %v7618_v14 = vunpack.c.l.b16 %v3551_v56  ;;  %v4079_v9 = vunpack.c.l.b16 %v4011_v1  ;;  %v4017_v16 = vrot.slane %v7573_v17, 5 }
 0x208   : > { %v4269_v40 = vadd.f32 %v4190_v3, %v3891_v13  ;;  %v3181_v7 = vpop.f32.mrf.mxu2  ;;  %v3575_v2 = vsel %vm6376_vm2, %v3570_v44, %v3574_v57  ;;  %v4080_v8 = vunpack.c.l.b16 %v4014_v33  ;;  %v2739_v17 = vunpack.c.l.b16 %v2676_v31 }
 0x209   : > { %v3258_v26 = vadd.f32 %v3181_v7, %v2928_v25  ;;  %v3565_v7 = vsel %vm6376_vm2, %v3560_v63, %v3564_v35  ;;  %v5748_v15 = vrot.slane %v7570_v20, 9  ;;  %v4019_v56 = vrot.slane %v4017_v16, 4 }
 0x20a   : > { %v7611_v29 = vadd.f32 %v7560_v30, %v4269_v40  ;;  %5730 = vmatmul.msk.bf16.gmra.mxu3 %vm856_vm3, %v3722_v37  ;;  %v2679_v37 = vsel %vm6618_vm6, %v2677_v62, %v2678_v22  ;;  %v4020_v22 = vrot.slane %v7590_v49, 5  ;;  %v7634_v62 = vunpack.c.l.b16 %v3565_v7 }
 0x20b   : > { %v2740_v57 = vunpack.c.l.b16 %v2679_v37  ;;  %v7636_v35 = vunpack.c.l.b16 %v3575_v2  ;;  %v2929_v10 = vadd.f32 %v2853_v0, %v6949_v43  ;;  %v3723_v49 = vpack.c.b16 %v7618_v14, %v7608_v36 }
 0x20c   : > { %v5974_v23 = vpop.eup %5973  ;;  %v5794_v3 = vmul.f32 -1.442695, %v7611_v29  ;;  %v4193_v40 = vpop.f32.mrf.mxu0  ;;  %v4018_v5 = vsel %vm6618_vm6, %v5748_v15, %v4017_v16  ;;  %v3577_v25 = vshrl.u32 %v7639_v19, 16  ;;  %v7652_v63 = vpack.c.b16 %v4080_v8, %v4079_v9  ;;  %v7666_v9 = vld [vmem:[%s7070_s26 + $0x94] sm:$0xf] }
 0x20d   : > { %v7628_v4 = vadd.f32 1.0, %v5974_v23  ;;  %v3815_v54 = vpop.f32.mrf.mxu3  ;;  %v2856_v11 = vpop.f32.mrf.mxu1  ;;  %v4021_v43 = vsel %vm6618_vm6, %v4019_v56, %v4020_v22  ;;  %v7657_v44 = vpack.c.b16 %v2740_v57, %v2739_v17  ;;  %v3724_v52 = vpack.c.b16 %v7636_v35, %v7634_v62 }
 0x20e   : > { %5975 = vpow2.f32 %v5794_v3  ;;  %v3892_v45 = vadd.f32 %v3815_v54, %v3258_v26  ;;  %v4081_v14 = vunpack.c.l.b16 %v4018_v5  ;;  %v4082_v37 = vunpack.c.l.b16 %v4021_v43  ;;  %v6167_v54 = vld [vmem:[%s6606_s15 + $0x94] sm:$0xf]  ;;  %v6168_v5 = vld [vmem:[%s6606_s15 + $0x90] sm:$0xf] }
 0x20f   : > { %5977 = vrcp.f32 %v7628_v4  ;;  %5786 = vmatmul.msk.bf16.gmra.mxu0 %vm856_vm3, %v4100_v41  ;;  %v4473_v0 = vand.u32 2147483647, %v7628_v4  ;;  %v3580_v41 = vshll.u32 %v7639_v19, 16  ;;  %v4475_v26 = vand.u32 2147483648, %v7628_v4 }
 0x210   : > { %v4270_v13 = vadd.f32 %v4193_v40, %v3892_v45  ;;  %v3183_v20 = vpop.f32.mrf.mxu2  ;;  %5587 = vmatmul.msk.bf16.gmra.mxu1 %vm856_vm3, %v2759_v60  ;;  %v2930_v60 = vadd.f32 %v2856_v11, %v6971_v21  ;;  %vm4469_vm7 = vweird.f32 %v7628_v4  ;;  %v3579_v7 = vrot.slane %v3577_v25, 4 }
 0x211   : > { %v3259_v28 = vadd.f32 %v3183_v20, %v2929_v10  ;;  %v2682_v11 = vrot.slane %v6167_v54, 5  ;;  %v3582_v8 = vrot.slane %v3580_v41, 5  ;;  %v3586_v17 = vshll.u32 %v7666_v9, 16  ;;  %v7685_v10 = vld [vmem:[%s7070_s26 + $0x98] sm:$0x1] }
 0x212   : > { %v7650_v1 = vadd.f32 %v7560_v30, %v4270_v13  ;;  %v3590_v15 = vshrl.u32 %v7666_v9, 16  ;;  %vm7680_vm8 = vcmp.eq.f32.partialorder %v4473_v0, 8.507059e+37  ;;  %v4476_v22 = vor.u32 1.1754944e-38, %v4475_v26  ;;  %v6169_v41 = vld [vmem:[%s6606_s15 + $0x98] sm:$0x1] }
 0x213   : > { %v5549_v25 = vrot.slane %v6168_v5, 9  ;;  %v2684_v0 = vrot.slane %v2682_v11, 4  ;;  %v3583_v26 = vor.u32 %v3582_v8, %v3579_v7 }
 0x214   : > { %v5976_v36 = vpop.eup %5975  ;;  %v5795_v33 = vmul.f32 -1.442695, %v7650_v1  ;;  %v4195_v31 = vpop.f32.mrf.mxu0 }
 0x215   : > { %v7668_v16 = vpop.eup %5977  ;;  %v7671_v23 = vadd.f32 1.0, %v5976_v36  ;;  %v3817_v3 = vpop.f32.mrf.mxu3  ;;  %5691 = vmatmul.msk.bf16.gmra.mxu2 %vm856_vm3, %v5898_v24  ;;  %v7690_v24 = vpack.c.b16 %v4082_v37, %v4081_v14  ;;  %v2685_v36 = vrot.slane %v6169_v41, 5  ;;  %v3596_v14 = vshll.u32 %v7685_v10, 16 }
 0x216   : > { %v2858_v40 = vpop.f32.mrf.mxu1  ;;  %v4465_v21 = vmul.f32 %v7668_v16, %v7628_v4  ;;  %5979 = vpow2.f32 %v5795_v33  ;;  %v3893_v2 = vadd.f32 %v3817_v3, %v3259_v28  ;;  %vm4470_vm9 = vweird.f32 %v7668_v16 }
 0x217   : > { %5981 = vrcp.f32 %v7671_v23  ;;  %v4488_v20 = vand.u32 2147483647, %v7671_v23  ;;  %v7700_v33 = vrot.slane %v3586_v17, 5  ;;  %vm4471_vm10 = vmor %vm4469_vm7, %vm4470_vm9  ;;  %vm4484_vm11 = vweird.f32 %v7671_v23 }
 0x218   : > { %v4466_v45 = vsub.f32 1.0, %v4465_v21  ;;  %v4271_v57 = vadd.f32 %v4195_v31, %v3893_v2  ;;  %v3186_v13 = vpop.f32.mrf.mxu2  ;;  %v3592_v31 = vrot.slane %v3590_v15, 4  ;;  %v2931_v15 = vadd.f32 %v2858_v40, %v6987_v61 }
 0x219   : > { %v3260_v7 = vadd.f32 %v3186_v13, %v2930_v60  ;;  %vm7730_vm12 = vcmp.eq.f32.partialorder %v4488_v20, 8.507059e+37  ;;  %v2686_v61 = vsel %vm6618_vm6, %v2684_v0, %v2685_v36 }
 0x21a   : > { %v4467_v28 = vmul.f32 %v7668_v16, %v4466_v45  ;;  %v7695_v43 = vadd.f32 %v7560_v30, %v4271_v57  ;;  %5731 = vmatmul.msk.bf16.gmra.mxu3 %vm856_vm3, %v3723_v49  ;;  %v4490_v49 = vand.u32 2147483648, %v7671_v23  ;;  %v2683_v57 = vsel %vm6618_vm6, %v5549_v25, %v2682_v11  ;;  %v4976_v11 = vld [vmem:[%s7706_s10] sm:$0xff] }
 0x21b   : > { %v3593_v20 = vor.u32 %v3592_v31, %v7700_v33  ;;  %v2742_v0 = vunpack.c.l.b16 %v2686_v61 }
 0x21c   : > { %v5980_v3 = vpop.eup %5979  ;;  %v4468_v37 = vadd.f32 %v7668_v16, %v4467_v28  ;;  %v5796_v21 = vmul.f32 -1.442695, %v7695_v43  ;;  %v4198_v2 = vpop.f32.mrf.mxu0  ;;  %v4491_v28 = vor.u32 1.1754944e-38, %v4490_v49 }
 0x21d   : > { %v7711_v54 = vpop.eup %5981  ;;  %v7718_v8 = vadd.f32 1.0, %v5980_v3  ;;  %v3820_v17 = vpop.f32.mrf.mxu3  ;;  %v3594_v49 = vrot.slane %v3593_v20, 4  ;;  %v6172_v20 = vld [vmem:[%s6606_s15 + $0xa4] sm:$0x1] }
 0x21e   : > { %v2861_v45 = vpop.f32.mrf.mxu1  ;;  %v4472_v60 = vsel %vm4471_vm10, %v7668_v16, %v4468_v37  ;;  %v4480_v4 = vmul.f32 %v7711_v54, %v7671_v23  ;;  %5983 = vpow2.f32 %v5796_v21  ;;  %v7742_v16 = vrot.slane %v3583_v26, 4 }
 0x21f   : > { %v4477_v40 = vsel %vm7680_vm8, %v4476_v22, %v4472_v60  ;;  %5985 = vrcp.f32 %v7718_v8  ;;  %5787 = vmatmul.msk.bf16.gmra.mxu0 %vm856_vm3, %v7652_v63  ;;  %v3894_v41 = vadd.f32 %v3820_v17, %v3260_v7  ;;  %vm4485_vm13 = vweird.f32 %v7711_v54  ;;  %v5899_v22 = vld [vmem:[%s7070_s26 + $0x84] sm:$0xff] }
 0x220   : > { %v4944_v5 = vmul.f32 %v4477_v40, %v7586_v59  ;;  %v4481_v25 = vsub.f32 1.0, %v4480_v4  ;;  %v3188_v3 = vpop.f32.mrf.mxu2  ;;  %5588 = vmatmul.msk.bf16.gmra.mxu1 %vm856_vm3, %v7657_v44  ;;  %v4503_v56 = vand.u32 2147483647, %v7718_v8  ;;  %v2741_v63 = vunpack.c.l.b16 %v2683_v57  ;;  %vm4486_vm15 = vmor %vm4484_vm11, %vm4485_vm13 }
 0x221   : > { %v4505_v59 = vand.u32 2147483648, %v7718_v8  ;;  %v4272_v31 = vadd.f32 %v4198_v2, %v3894_v41  ;;  %v3589_v37 = vsel %vm6376_vm2, %v7742_v16, %v7700_v33  ;;  %v3598_v44 = vrot.slane %v3596_v14, 5 }
 0x222   : > { %v5008_v36 = vadd.f32 %v4976_v11, %v4944_v5  ;;  %v4482_v26 = vmul.f32 %v7711_v54, %v4481_v25  ;;  %v5749_v21 = vrot.slane %v7639_v19, 9  ;;  %vm4499_vm14 = vweird.f32 %v7718_v8 }
 0x223   : > { %v7765_v2 = vadd.f32 %v7560_v30, %v4272_v31  ;;  %v3261_v60 = vadd.f32 %v3188_v3, %v2931_v15  ;;  %v2932_v4 = vadd.f32 %v2861_v45, %v6999_v51  ;;  %v7775_v40 = vpack.c.b16 %v2742_v0, %v2741_v63  ;;  %v4977_v45 = vld [vmem:[%s7706_s10 + $0x8] sm:$0xff]  ;;  %v7799_v63 = vld [vmem:[%s7070_s26 + $0x9c] sm:$0xf] }
 0x224   : > { %v5984_v7 = vpop.eup %5983  ;;  %5040 = vst [vmem:[%s7759_s13] sm:$0xff] %v5008_v36  ;;  %v4483_v17 = vadd.f32 %v7711_v54, %v4482_v26  ;;  %v4200_v57 = vpop.f32.mrf.mxu0  ;;  %v4024_v11 = vrot.slane %v7666_v9, 5  ;;  %vm7780_vm0 = vcmp.eq.f32.partialorder %v4503_v56, 8.507059e+37  ;;  %v4506_v23 = vor.u32 1.1754944e-38, %v4505_v59 }
 0x225   : > { %v5986_v33 = vpop.eup %5985  ;;  %v7771_v19 = vadd.f32 1.0, %v5984_v7  ;;  %v3822_v14 = vpop.f32.mrf.mxu3  ;;  %5692 = vmatmul.msk.bf16.gmra.mxu2 %vm856_vm3, %v5899_v22  ;;  %v5797_v5 = vmul.f32 -1.442695, %v7765_v2  ;;  %v3599_v9 = vsel %vm6376_vm2, %v3594_v49, %v3598_v44  ;;  %v7806_v59 = vunpack.c.l.b16 %v3589_v37  ;;  %v6170_v49 = vld [vmem:[%s6606_s15 + $0xa0] sm:$0xf] }
 0x226   : > { %v2863_v61 = vpop.f32.mrf.mxu1  ;;  %v4487_v15 = vsel %vm4486_vm15, %v7711_v54, %v4483_v17  ;;  %v4495_v16 = vmul.f32 %v5986_v33, %v7718_v8  ;;  %v4027_v54 = vrot.slane %v7685_v10, 5  ;;  %v7795_v56 = vsel %vm6618_vm6, %v5749_v21, %v4024_v11 }
 0x227   : > { %v4492_v51 = vsel %vm7730_vm12, %v4491_v28, %v4487_v15  ;;  %5987 = vrcp.f32 %v7771_v19  ;;  %vm4500_vm1 = vweird.f32 %v5986_v33  ;;  %v4520_v13 = vand.u32 2147483648, %v7771_v19 }
 0x228   : > { %v4945_v25 = vmul.f32 %v4492_v51, %v7611_v29  ;;  %v4496_v41 = vsub.f32 1.0, %v4495_v16  ;;  %5989 = vpow2.f32 %v5797_v5  ;;  %v3191_v3 = vpop.f32.mrf.mxu2  ;;  %v3895_v28 = vadd.f32 %v3822_v14, %v3261_v60  ;;  %vm4501_vm5 = vmor %vm4499_vm14, %vm4500_vm1  ;;  %v6171_v16 = vld [vmem:[%s6606_s15 + $0x9c] sm:$0xf] }
 0x229   : > { %v4026_v22 = vrot.slane %v4024_v11, 4  ;;  %v4518_v29 = vand.u32 2147483647, %v7771_v19  ;;  %v3262_v36 = vadd.f32 %v3191_v3, %v2932_v4  ;;  %v7808_v31 = vunpack.c.l.b16 %v3599_v9 }
 0x22a   : > { %v5009_v0 = vadd.f32 %v4977_v45, %v4945_v25  ;;  %v4497_v10 = vmul.f32 %v5986_v33, %v4496_v41  ;;  %5732 = vmatmul.msk.bf16.gmra.mxu3 %vm856_vm3, %v3724_v52  ;;  %v4273_v26 = vadd.f32 %v4200_v57, %v3895_v28  ;;  %v2689_v44 = vrot.slane %v6170_v49, 5  ;;  %v4978_v45 = vld [vmem:[%s7706_s10 + $0x10] sm:$0xff] }
 0x22b   : > { %vm4514_vm4 = vweird.f32 %v7771_v19  ;;  %v2933_v17 = vadd.f32 %v2863_v61, %v7012_v38  ;;  %v3601_v62 = vshrl.u32 %v7799_v63, 16  ;;  %v4521_v52 = vor.u32 1.1754944e-38, %v4520_v13  ;;  %v5900_v13 = vld [vmem:[%s7070_s26 + $0x90] sm:$0xff] }
 0x22c   : > { %5041 = vst [vmem:[%s7759_s13 + $0x8] sm:$0xff] %v5009_v0  ;;  %v4498_v21 = vadd.f32 %v5986_v33, %v4497_v10  ;;  %v4203_v7 = vpop.f32.mrf.mxu0  ;;  %v7821_v37 = vadd.f32 %v7560_v30, %v4273_v26  ;;  %v4028_v14 = vsel %vm6618_vm6, %v4026_v22, %v4027_v54  ;;  %v4083_v38 = vunpack.c.l.b16 %v7795_v56  ;;  %v7854_v10 = vld [vmem:[%s7070_s26 + $0xa0] sm:$0xf] }
 0x22d   : > { %v7815_v35 = vpop.eup %5987  ;;  %v3825_v57 = vpop.f32.mrf.mxu3  ;;  %vm7828_vm7 = vcmp.eq.f32.partialorder %v4518_v29, 8.507059e+37  ;;  %v5550_v5 = vrot.slane %v6171_v16, 9  ;;  %v2691_v54 = vrot.slane %v2689_v44, 4  ;;  %v4084_v28 = vunpack.c.l.b16 %v4028_v14 }
 0x22e   : > { %v2866_v60 = vpop.f32.mrf.mxu1  ;;  %v5990_v4 = vpop.eup %5989  ;;  %v4502_v61 = vsel %vm4501_vm5, %v5986_v33, %v4498_v21  ;;  %v4510_v11 = vmul.f32 %v7815_v35, %v7771_v19  ;;  %v3896_v15 = vadd.f32 %v3825_v57, %v3262_v36  ;;  %v5798_v33 = vmul.f32 -1.442695, %v7821_v37 }
 0x22f   : > { %v4507_v51 = vsel %vm7780_vm0, %v4506_v23, %v4502_v61  ;;  %v7836_v9 = vadd.f32 1.0, %v5990_v4  ;;  %5788 = vmatmul.msk.bf16.gmra.mxu0 %vm856_vm3, %v7690_v24  ;;  %v2692_v23 = vrot.slane %v6172_v20, 5  ;;  %vm4515_vm8 = vweird.f32 %v7815_v35 }
 0x230   : > { %v4946_v25 = vmul.f32 %v4507_v51, %v7650_v1  ;;  %v4511_v41 = vsub.f32 1.0, %v4510_v11  ;;  %v4274_v3 = vadd.f32 %v4203_v7, %v3896_v15  ;;  %v3193_v56 = vpop.f32.mrf.mxu2  ;;  %5589 = vmatmul.msk.bf16.gmra.mxu1 %vm856_vm3, %v7775_v40  ;;  %v3604_v24 = vshll.u32 %v7799_v63, 16  ;;  %vm4516_vm9 = vmor %vm4514_vm4, %vm4515_vm8  ;;  %v4979_v11 = vld [vmem:[%s7706_s10 + $0x18] sm:$0xff] }
 0x231   : > { %5991 = vrcp.f32 %v7836_v9  ;;  %v3263_v40 = vadd.f32 %v3193_v56, %v2933_v17  ;;  %v3725_v29 = vpack.c.b16 %v7808_v31, %v7806_v59  ;;  %v2690_v36 = vsel %vm6618_vm6, %v5550_v5, %v2689_v44 }
 0x232   : > { %v5010_v22 = vadd.f32 %v4978_v45, %v4946_v25  ;;  %v4512_v1 = vmul.f32 %v7815_v35, %v4511_v41  ;;  %5993 = vpow2.f32 %v5798_v33  ;;  %v7851_v0 = vadd.f32 %v7560_v30, %v4274_v3 }
 0x233   : > { %v3603_v26 = vrot.slane %v3601_v62, 4  ;;  %v2934_v57 = vadd.f32 %v2866_v60, %v7026_v48  ;;  %v2693_v14 = vsel %vm6618_vm6, %v2691_v54, %v2692_v23  ;;  %v4103_v31 = vpack.c.b16 %v4084_v28, %v4083_v38 }
 0x234   : > { %5042 = vst [vmem:[%s7759_s13 + $0x10] sm:$0xff] %v5010_v22  ;;  %v4513_v49 = vadd.f32 %v7815_v35, %v4512_v1  ;;  %v5799_v21 = vmul.f32 -1.442695, %v7851_v0  ;;  %v4205_v7 = vpop.f32.mrf.mxu0  ;;  %v3606_v17 = vrot.slane %v3604_v24, 5  ;;  %v3610_v62 = vshll.u32 %v7854_v10, 16 }
 0x235   : > { %v3827_v59 = vpop.f32.mrf.mxu3  ;;  %5693 = vmatmul.msk.bf16.gmra.mxu2 %vm856_vm3, %v5900_v13  ;;  %v3614_v4 = vshrl.u32 %v7854_v10, 16  ;;  %vm4529_vm10 = vweird.f32 %v7836_v9  ;;  %v2743_v15 = vunpack.c.l.b16 %v2690_v36  ;;  %v2744_v38 = vunpack.c.l.b16 %v2693_v14 }
 0x236   : > { %v2868_v44 = vpop.f32.mrf.mxu1  ;;  %v4517_v48 = vsel %vm4516_vm9, %v7815_v35, %v4513_v49  ;;  %5995 = vpow2.f32 %v5799_v21  ;;  %v3897_v60 = vadd.f32 %v3827_v59, %v3263_v40  ;;  %v3607_v16 = vor.u32 %v3606_v17, %v3603_v26  ;;  %v7881_v35 = vld [vmem:[%s7070_s26 + $0xa4] sm:$0x1] }
 0x237   : > { %v5992_v61 = vpop.eup %5991  ;;  %v4522_v19 = vsel %vm7828_vm7, %v4521_v52, %v4517_v48  ;;  %v3612_v25 = vrot.slane %v3610_v62, 5  ;;  %v4533_v41 = vand.u32 2147483647, %v7836_v9  ;;  %v3616_v8 = vrot.slane %v3614_v4, 4 }
 0x238   : > { %v5994_v5 = vpop.eup %5993  ;;  %v4947_v51 = vmul.f32 %v4522_v19, %v7695_v43  ;;  %v4525_v45 = vmul.f32 %v5992_v61, %v7836_v9  ;;  %v4275_v33 = vadd.f32 %v4205_v7, %v3897_v60  ;;  %v3196_v54 = vpop.f32.mrf.mxu2  ;;  %v3608_v43 = vrot.slane %v3607_v16, 4 }
 0x239   : > { %v7884_v3 = vadd.f32 1.0, %v5994_v5  ;;  %v3264_v52 = vadd.f32 %v3196_v54, %v2934_v57  ;;  %v4535_v13 = vand.u32 2147483648, %v7836_v9  ;;  %v2762_v28 = vpack.c.b16 %v2744_v38, %v2743_v15  ;;  %v4980_v5 = vld [vmem:[%s7706_s10 + $0x20] sm:$0xff] }
 0x23a   : > { %v5011_v56 = vadd.f32 %v4979_v11, %v4947_v51  ;;  %v4526_v20 = vsub.f32 1.0, %v4525_v45  ;;  %v7887_v23 = vadd.f32 %v7560_v30, %v4275_v33  ;;  %5733 = vmatmul.msk.bf16.gmra.mxu3 %vm856_vm3, %v3725_v29  ;;  %v3620_v24 = vshll.u32 %v7881_v35, 16  ;;  %v8513_v45 = vld [vmem:[#allocation5_spill] sm:$0xff] }
 0x23b   : > { %5997 = vrcp.f32 %v7884_v3  ;;  %vm4530_vm11 = vweird.f32 %v5992_v61  ;;  %v3617_v26 = vor.u32 %v3616_v8, %v3612_v25  ;;  %vm7895_vm12 = vcmp.eq.f32.partialorder %v4533_v41, 8.507059e+37 }
 0x23c   : > { %v5996_v22 = vpop.eup %5995  ;;  %5043 = vst [vmem:[%s7759_s13 + $0x18] sm:$0xff] %v5011_v56  ;;  %v4527_v1 = vmul.f32 %v5992_v61, %v4526_v20  ;;  %v5800_v40 = vmul.f32 -1.442695, %v7887_v23  ;;  %v4208_v36 = vpop.f32.mrf.mxu0  ;;  %v4548_v29 = vand.u32 2147483647, %v7884_v3  ;;  %v4550_v21 = vand.u32 2147483648, %v7884_v3  ;;  %vm4531_vm13 = vmor %vm4529_vm10, %vm4530_vm11 }
 0x23d   : > { %v7901_v7 = vadd.f32 1.0, %v5996_v22  ;;  %v3830_v57 = vpop.f32.mrf.mxu3  ;;  %v3613_v62 = vsel %vm6376_vm2, %v3608_v43, %v3612_v25  ;;  %v4536_v4 = vor.u32 1.1754944e-38, %v4535_v13  ;;  %v2935_v48 = vadd.f32 %v2868_v44, %v7039_v55 }
 0x23e   : > { %v2871_v14 = vpop.f32.mrf.mxu1  ;;  %v4528_v59 = vadd.f32 %v5992_v61, %v4527_v1  ;;  %5999 = vpow2.f32 %v5800_v40  ;;  %v3898_v17 = vadd.f32 %v3830_v57, %v3264_v52  ;;  %v3622_v60 = vrot.slane %v3620_v24, 5 }
 0x23f   : > { %6001 = vrcp.f32 %v7901_v7  ;;  %5789 = vmatmul.msk.bf16.gmra.mxu0 %vm856_vm3, %v4103_v31  ;;  %vm4544_vm14 = vweird.f32 %v7884_v3  ;;  %v3618_v38 = vrot.slane %v3617_v26, 4  ;;  %v4551_v51 = vor.u32 1.1754944e-38, %v4550_v21  ;;  %v5901_v31 = vld [vmem:[%s7070_s26 + $0x9c] sm:$0xff] }
 0x240   : > { %v4532_v19 = vsel %vm4531_vm13, %v5992_v61, %v4528_v59  ;;  %v4276_v11 = vadd.f32 %v4208_v36, %v3898_v17  ;;  %v3198_v15 = vpop.f32.mrf.mxu2  ;;  %5590 = vmatmul.msk.bf16.gmra.mxu1 %vm856_vm3, %v2762_v28  ;;  %v7916_v33 = vadd.f32 %v2871_v14, %v8513_v45  ;;  %v3707_v55 = vunpack.c.l.b16 %v3613_v62  ;;  %v6173_v14 = vld [vmem:[%s6606_s15 + $0xa8] sm:$0xf] }
 0x241   : > { %v5998_v16 = vpop.eup %5997  ;;  %v4537_v9 = vsel %vm7895_vm12, %v4536_v4, %v4532_v19  ;;  %vm7921_vm15 = vcmp.eq.f32.partialorder %v4548_v29, 8.507059e+37  ;;  %v5750_v41 = vrot.slane %v7799_v63, 9  ;;  %v4563_v52 = vand.u32 2147483647, %v7901_v7 }
 0x242   : > { %v4948_v44 = vmul.f32 %v4537_v9, %v7765_v2  ;;  %v4540_v61 = vmul.f32 %v5998_v16, %v7884_v3  ;;  %v7926_v25 = vadd.f32 %v7560_v30, %v4276_v11  ;;  %v3265_v8 = vadd.f32 %v3198_v15, %v2935_v48 }
 0x243   : > { %v3623_v56 = vsel %vm6376_vm2, %v3618_v38, %v3622_v60  ;;  %v4031_v20 = vrot.slane %v7854_v10, 5  ;;  %vm4559_vm0 = vweird.f32 %v7901_v7  ;;  %vm4545_vm1 = vweird.f32 %v5998_v16 }
 0x244   : > { %v6000_v2 = vpop.eup %5999  ;;  %v5012_v43 = vadd.f32 %v4980_v5, %v4948_v44  ;;  %v4541_v13 = vsub.f32 1.0, %v4540_v61  ;;  %v5801_v28 = vmul.f32 -1.442695, %v7926_v25  ;;  %v4210_v24 = vpop.f32.mrf.mxu0  ;;  %v3708_v22 = vunpack.c.l.b16 %v3623_v56  ;;  %vm4546_vm5 = vmor %vm4544_vm14, %vm4545_vm1  ;;  %v6174_v61 = vld [vmem:[%s6606_s15 + $0xac] sm:$0xf] }
 0x245   : > { %v6002_v1 = vpop.eup %6001  ;;  %v7935_v63 = vadd.f32 1.0, %v6000_v2  ;;  %v3832_v40 = vpop.f32.mrf.mxu3  ;;  %5694 = vmatmul.msk.bf16.gmra.mxu2 %vm856_vm3, %v5901_v31  ;;  %v4033_v36 = vrot.slane %v4031_v20, 4  ;;  %v4034_v10 = vrot.slane %v7881_v35, 5  ;;  %v4032_v21 = vsel %vm6618_vm6, %v5750_v41, %v4031_v20 }
 0x246   : > { %v2873_v26 = vpop.f32.mrf.mxu1  ;;  %5044 = vst [vmem:[%s7759_s13 + $0x20] sm:$0xff] %v5012_v43  ;;  %v4542_v49 = vmul.f32 %v5998_v16, %v4541_v13  ;;  %v4555_v29 = vmul.f32 %v6002_v1, %v7901_v7  ;;  %6003 = vpow2.f32 %v5801_v28  ;;  %vm4560_vm4 = vweird.f32 %v6002_v1 }
 0x247   : > { %v4565_v57 = vand.u32 2147483648, %v7901_v7  ;;  %6005 = vrcp.f32 %v7935_v63  ;;  %v5551_v59 = vrot.slane %v6173_v14, 9  ;;  %v3899_v35 = vadd.f32 %v3832_v40, %v3265_v8  ;;  %vm4561_vm8 = vmor %vm4559_vm0, %vm4560_vm4 }
 0x248   : > { %v4543_v17 = vadd.f32 %v5998_v16, %v4542_v49  ;;  %v4556_v62 = vsub.f32 1.0, %v4555_v29  ;;  %v3726_v4 = vpack.c.b16 %v3708_v22, %v3707_v55  ;;  %v3201_v48 = vpop.f32.mrf.mxu2  ;;  %v4578_v60 = vand.u32 2147483647, %v7935_v63  ;;  %v4981_v55 = vld [vmem:[%s7706_s10 + $0x28] sm:$0xff]  ;;  %v6175_v49 = vld [vmem:[%s6606_s15 + $0xb0] sm:$0x1] }
 0x249   : > { %v4580_v19 = vand.u32 2147483648, %v7935_v63  ;;  %v4035_v11 = vsel %vm6618_vm6, %v4033_v36, %v4034_v10  ;;  %v4085_v15 = vunpack.c.l.b16 %v4032_v21  ;;  %v4277_v5 = vadd.f32 %v4210_v24, %v3899_v35  ;;  %v7996_v35 = vld [vmem:[%s7070_s26 + $0xa8] sm:$0xf] }
 0x24a   : > { %v4547_v38 = vsel %vm4546_vm5, %v5998_v16, %v4543_v17  ;;  %v4557_v9 = vmul.f32 %v6002_v1, %v4556_v62  ;;  %5734 = vmatmul.msk.bf16.gmra.mxu3 %vm856_vm3, %v3726_v4  ;;  %v4086_v45 = vunpack.c.l.b16 %v4035_v11  ;;  %vm7957_vm7 = vcmp.eq.f32.partialorder %v4563_v52, 8.507059e+37  ;;  %v8002_v11 = vld [vmem:[%s7070_s26 + $0xac] sm:$0xf] }
 0x24b   : > { %v4552_v31 = vsel %vm7921_vm15, %v4551_v51, %v4547_v38  ;;  %v4566_v44 = vor.u32 1.1754944e-38, %v4565_v57  ;;  %v2696_v41 = vrot.slane %v6174_v61, 5  ;;  %v7964_v20 = vadd.f32 %v7560_v30, %v4277_v5  ;;  %v8008_v5 = vld [vmem:[%s7070_s26 + $0xb0] sm:$0x1] }
 0x24c   : > { %v6004_v8 = vpop.eup %6003  ;;  %v4949_v56 = vmul.f32 %v4552_v31, %v7821_v37  ;;  %v4558_v16 = vadd.f32 %v6002_v1, %v4557_v9  ;;  %v4213_v2 = vpop.f32.mrf.mxu0  ;;  %v4104_v43 = vpack.c.b16 %v4086_v45, %v4085_v15  ;;  %vm4574_vm9 = vweird.f32 %v7935_v63 }
 0x24d   : > { %v7966_v54 = vpop.eup %6005  ;;  %v4581_v51 = vor.u32 1.1754944e-38, %v4580_v19  ;;  %v7972_v52 = vadd.f32 1.0, %v6004_v8  ;;  %v3266_v37 = vadd.f32 %v3201_v48, %v7916_v33  ;;  %v3835_v13 = vpop.f32.mrf.mxu3  ;;  %vm7979_vm10 = vcmp.eq.f32.partialorder %v4578_v60, 8.507059e+37  ;;  %v4982_v33 = vld [vmem:[%s7706_s10 + $0x30] sm:$0xff]  ;;  %v5902_v19 = vld [vmem:[%s7070_s26 + $0xa8] sm:$0xff] }
 0x24e   : > { %v7975_v28 = vpop.f32.mrf.mxu1  ;;  %v5013_v24 = vadd.f32 %v4981_v55, %v4949_v56  ;;  %v4562_v22 = vsel %vm4561_vm8, %v6002_v1, %v4558_v16  ;;  %v4570_v40 = vmul.f32 %v7966_v54, %v7935_v63  ;;  %v2697_v36 = vsel %vm6618_vm6, %v5551_v59, %v2696_v41  ;;  %v8520_v59 = vld [vmem:[#allocation6_spill] sm:$0xff] }
 0x24f   : > { %v4567_v10 = vsel %vm7957_vm7, %v4566_v44, %v4562_v22  ;;  %6007 = vrcp.f32 %v7972_v52  ;;  %5790 = vmatmul.msk.bf16.gmra.mxu0 %vm856_vm3, %v4104_v43  ;;  %v2698_v1 = vrot.slane %v2696_v41, 4  ;;  %v2699_v29 = vrot.slane %v6175_v49, 5 }
 0x250   : > { %5045 = vst [vmem:[%s7759_s13 + $0x28] sm:$0xff] %v5013_v24  ;;  %v4950_v21 = vmul.f32 %v4567_v10, %v7851_v0  ;;  %v4571_v57 = vsub.f32 1.0, %v4570_v40  ;;  %v5802_v14 = vmul.f32 -1.442695, %v7964_v20  ;;  %v2937_v17 = vadd.f32 %v2873_v26, %v8520_v59  ;;  %v3203_v62 = vpop.f32.mrf.mxu2  ;;  %v4983_v10 = vld [vmem:[%s7706_s10 + $0x38] sm:$0xff] }
 0x251   : > { %vm4575_vm11 = vweird.f32 %v7966_v54  ;;  %v4593_v4 = vand.u32 2147483647, %v7972_v52  ;;  %v3900_v48 = vadd.f32 %v3835_v13, %v3266_v37  ;;  %v2745_v60 = vunpack.c.l.b16 %v2697_v36 }
 0x252   : > { %v5014_v0 = vadd.f32 %v4982_v33, %v4950_v21  ;;  %v4572_v15 = vmul.f32 %v7966_v54, %v4571_v57  ;;  %6009 = vpow2.f32 %v5802_v14  ;;  %v3267_v38 = vadd.f32 %v3203_v62, %v2937_v17  ;;  %vm4576_vm12 = vmor %vm4574_vm9, %vm4575_vm11 }
 0x253   : > { %v4278_v9 = vadd.f32 %v4213_v2, %v3900_v48  ;;  %v2700_v26 = vsel %vm6618_vm6, %v2698_v1, %v2699_v29  ;;  %v3625_v45 = vshrl.u32 %v7996_v35, 16  ;;  %v3628_v31 = vshll.u32 %v7996_v35, 16 }
 0x254   : > { %5046 = vst [vmem:[%s7759_s13 + $0x30] sm:$0xff] %v5014_v0  ;;  %v4573_v55 = vadd.f32 %v7966_v54, %v4572_v15  ;;  %v4595_v3 = vand.u32 2147483648, %v7972_v52  ;;  %v4215_v44 = vpop.f32.mrf.mxu0  ;;  %v2746_v61 = vunpack.c.l.b16 %v2700_v26  ;;  %v3634_v41 = vshll.u32 %v8002_v11, 16 }
 0x255   : > { %v6008_v8 = vpop.eup %6007  ;;  %v8021_v56 = vadd.f32 %v7560_v30, %v4278_v9  ;;  %v3837_v16 = vpop.f32.mrf.mxu3  ;;  %5695 = vmatmul.msk.bf16.gmra.mxu2 %vm856_vm3, %v5902_v19  ;;  %v3627_v2 = vrot.slane %v3625_v45, 4  ;;  %v3630_v43 = vrot.slane %v3628_v31, 5  ;;  %v3638_v37 = vshrl.u32 %v8002_v11, 16 }
 0x256   : > { %v8025_v13 = vpop.f32.mrf.mxu1  ;;  %v4577_v24 = vsel %vm4576_vm12, %v7966_v54, %v4573_v55  ;;  %v4585_v22 = vmul.f32 %v6008_v8, %v7972_v52  ;;  %v3901_v40 = vadd.f32 %v3837_v16, %v3267_v38  ;;  %v3644_v63 = vshll.u32 %v8008_v5, 16 }
 0x257   : > { %v4582_v36 = vsel %vm7979_vm10, %v4581_v51, %v4577_v24  ;;  %v5803_v33 = vmul.f32 -1.442695, %v8021_v56  ;;  %v2763_v1 = vpack.c.b16 %v2746_v61, %v2745_v60  ;;  %v3631_v49 = vor.u32 %v3630_v43, %v3627_v2  ;;  %v4984_v2 = vld [vmem:[%s7706_s10 + $0x40] sm:$0xff] }
 0x258   : > { %v6010_v29 = vpop.eup %6009  ;;  %v4951_v21 = vmul.f32 %v4582_v36, %v7887_v23  ;;  %v4586_v57 = vsub.f32 1.0, %v4585_v22  ;;  %v4279_v14 = vadd.f32 %v4215_v44, %v3901_v40  ;;  %v3636_v54 = vrot.slane %v3634_v41, 5  ;;  %v3206_v59 = vpop.f32.mrf.mxu2 }
 0x259   : > { %v8035_v17 = vadd.f32 1.0, %v6010_v29  ;;  %6011 = vpow2.f32 %v5803_v33  ;;  %5591 = vmatmul.msk.bf16.gmra.mxu1 %vm856_vm3, %v2763_v1  ;;  %v3632_v7 = vrot.slane %v3631_v49, 4  ;;  %v3640_v51 = vrot.slane %v3638_v37, 4 }
 0x25a   : > { %v5015_v62 = vadd.f32 %v4983_v10, %v4951_v21  ;;  %v4587_v48 = vmul.f32 %v6008_v8, %v4586_v57  ;;  %vm4590_vm13 = vweird.f32 %v6008_v8  ;;  %v8039_v60 = vadd.f32 %v7560_v30, %v4279_v14 }
 0x25b   : > { %vm4589_vm14 = vweird.f32 %v7972_v52  ;;  %6013 = vrcp.f32 %v8035_v17  ;;  %v3646_v23 = vrot.slane %v3644_v63, 5  ;;  %v3637_v38 = vsel %vm6376_vm2, %v3632_v7, %v3636_v54 }
 0x25c   : > { %5047 = vst [vmem:[%s7759_s13 + $0x38] sm:$0xff] %v5015_v62  ;;  %v4588_v19 = vadd.f32 %v6008_v8, %v4587_v48  ;;  %v5804_v0 = vmul.f32 -1.442695, %v8039_v60  ;;  %v4218_v15 = vpop.f32.mrf.mxu0  ;;  %v3641_v9 = vor.u32 %v3640_v51, %v3636_v54  ;;  %vm4591_vm15 = vmor %vm4589_vm14, %vm4590_vm13  ;;  %vm4594_vm0 = vcmp.eq.f32.partialorder %v4593_v4, 8.507059e+37 }
 0x25d   : > { %v4596_v26 = vor.u32 1.1754944e-38, %v4595_v3  ;;  %v2938_v30 = vadd.f32 %v7975_v28, %v7101_v47  ;;  %v5751_v52 = vrot.slane %v7996_v35, 9  ;;  %v3840_v45 = vpop.f32.mrf.mxu3  ;;  %v4038_v61 = vrot.slane %v8002_v11, 5 }
 0x25e   : > { %v8050_v31 = vpop.f32.mrf.mxu1  ;;  %v4592_v55 = vsel %vm4591_vm15, %v6008_v8, %v4588_v19  ;;  %6015 = vpow2.f32 %v5804_v0  ;;  %v3642_v44 = vrot.slane %v3641_v9, 4  ;;  %v3709_v43 = vunpack.c.l.b16 %v3637_v38 }
 0x25f   : > { %v6012_v41 = vpop.eup %6011  ;;  %v4597_v16 = vsel %vm4594_vm0, %v4596_v26, %v4592_v55  ;;  %v4041_v4 = vrot.slane %v8008_v5, 5  ;;  %v3268_v3 = vadd.f32 %v3206_v59, %v2938_v30  ;;  %v4039_v8 = vsel %vm6618_vm6, %v5751_v52, %v4038_v61  ;;  %v5903_v5 = vld [vmem:[%s7070_s26 + $0xb4] sm:$0xff] }
 0x260   : > { %v4952_v47 = vmul.f32 %v4597_v16, %v7926_v25  ;;  %v8056_v28 = vadd.f32 1.0, %v6012_v41  ;;  %v3647_v35 = vsel %vm6376_vm2, %v3642_v44, %v3646_v23  ;;  %v3208_v37 = vpop.f32.mrf.mxu2  ;;  %vm4604_vm1 = vweird.f32 %v8035_v17  ;;  %v8082_v23 = vld [vmem:[%s8482_s4] ss:$0 sm:$0xff] }
 0x261   : > { %v6014_v11 = vpop.eup %6013  ;;  %v3710_v24 = vunpack.c.l.b16 %v3647_v35  ;;  %v4040_v22 = vrot.slane %v4038_v61, 4  ;;  %v3902_v40 = vadd.f32 %v3840_v45, %v3268_v3  ;;  %v2939_v36 = vadd.f32 %v8025_v13, %v7119_v42  ;;  %v6177_v3 = vld [vmem:[%s6606_s15 + $0xb4] sm:$0xf]  ;;  %v8116_v35 = vld [vmem:[%s7070_s26 + $0xb8] sm:$0xf] }
 0x262   : > { %v5016_v63 = vadd.f32 %v4984_v2, %v4952_v47  ;;  %v4600_v25 = vmul.f32 %v6014_v11, %v8035_v17  ;;  %6017 = vrcp.f32 %v8056_v28  ;;  %v4608_v10 = vand.u32 2147483647, %v8035_v17 }
 0x263   : > { %v4610_v33 = vand.u32 2147483648, %v8035_v17  ;;  %v3727_v1 = vpack.c.b16 %v3710_v24, %v3709_v43  ;;  %v4087_v49 = vunpack.c.l.b16 %v4039_v8  ;;  %v4042_v57 = vsel %vm6618_vm6, %v4040_v22, %v4041_v4  ;;  %v8108_v43 = vld [vmem:[%s7070_s26 + $0xb4] sm:$0xf]  ;;  %v6178_v22 = vld [vmem:[%s6606_s15 + $0xb8] sm:$0xf] }
 0x264   : > { %v6016_v29 = vpop.eup %6015  ;;  %5048 = vst [vmem:[%s7759_s13 + $0x40] sm:$0xff] %v5016_v63  ;;  %v4601_v21 = vsub.f32 1.0, %v4600_v25  ;;  %v4280_v14 = vadd.f32 %v4218_v15, %v3902_v40  ;;  %v4220_v54 = vpop.f32.mrf.mxu0  ;;  %v3269_v59 = vadd.f32 %v3208_v37, %v2939_v36  ;;  %v4623_v7 = vand.u32 2147483647, %v8056_v28  ;;  %v4985_v37 = vld [vmem:[%s7706_s10 + $0x48] sm:$0xff] }
 0x265   : > { %v4625_v51 = vand.u32 2147483648, %v8056_v28  ;;  %v8075_v42 = vadd.f32 1.0, %v6016_v29  ;;  %5735 = vmatmul.msk.bf16.gmra.mxu3 %vm856_vm3, %v3727_v1  ;;  %v4088_v13 = vunpack.c.l.b16 %v4042_v57  ;;  %v3842_v62 = vpop.f32.mrf.mxu3  ;;  %5696 = vmatmul.msk.bf16.gmra.mxu2 %vm856_vm3, %v5903_v5  ;;  %vm4605_vm4 = vweird.f32 %v6014_v11  ;;  %v6179_v5 = vld [vmem:[%s6606_s15 + $0xbc] sm:$0x1]  ;;  %s6201_s15 = scalar_lea.hbm %s8484_s6, 512 }
 0x266   : > { %v4602_v48 = vmul.f32 %v6014_v11, %v4601_v21  ;;  %v8085_v19 = vadd.f32 %v8082_v23, %v4280_v14  ;;  %v3903_v0 = vadd.f32 %v3842_v62, %v3269_v59  ;;  %v8087_v15 = vpop.f32.mrf.mxu1  ;;  %vm8089_vm5 = vcmp.eq.f32.partialorder %v4608_v10, 8.507059e+37  ;;  %vm4606_vm8 = vmor %vm4604_vm1, %vm4605_vm4  ;;  %p6203_p1 = scmp.lt.s32.totalorder %s6201_s15, %s6197_s12 }
 0x267   : > { %v4611_v9 = vor.u32 1.1754944e-38, %v4610_v33  ;;  %vm4619_vm7 = vweird.f32 %v8056_v28  ;;  %6019 = vrcp.f32 %v8075_v42  ;;  %v4105_v52 = vpack.c.b16 %v4088_v13, %v4087_v49 }
 0x268   : > { %v6018_v26 = vpop.eup %6017  ;;  %v4603_v30 = vadd.f32 %v6014_v11, %v4602_v48  ;;  %v5805_v45 = vmul.f32 -1.442695, %v8085_v19  ;;  %v4281_v55 = vadd.f32 %v4220_v54, %v3903_v0  ;;  %v8096_v44 = vpop.f32.mrf.mxu2  ;;  %vm8102_vm10 = vcmp.eq.f32.partialorder %v4623_v7, 8.507059e+37  ;;  %p6204_p2 = por %p6203_p1, %p6202_p0 }
 0x269   : > { %v4615_v61 = vmul.f32 %v6018_v26, %v8056_v28  ;;  %vm4620_vm9 = vweird.f32 %v6018_v26  ;;  %v4626_v16 = vor.u32 1.1754944e-38, %v4625_v51  ;;  %v4638_v2 = vand.u32 2147483647, %v8075_v42  ;;  %5791 = vmatmul.msk.bf16.gmra.mxu0 %vm856_vm3, %v4105_v52 }
 0x26a   : > { %v4607_v4 = vsel %vm4606_vm8, %v6014_v11, %v4603_v30  ;;  %6021 = vpow2.f32 %v5805_v45  ;;  %v8112_v17 = vadd.f32 %v8082_v23, %v4281_v55  ;;  %v5552_v47 = vrot.slane %v6177_v3, 9  ;;  %vm4621_vm11 = vmor %vm4619_vm7, %vm4620_vm9  ;;  %v8145_v30 = vld [vmem:[%s7070_s26 + $0xbc] sm:$0x1]  ;;  %p6205_p3 = pnand %p6204_p2, %p6200_p13 }
 0x26b   : > { %v4612_v8 = vsel %vm8089_vm5, %v4611_v9, %v4607_v4  ;;  %v4616_v24 = vsub.f32 1.0, %v4615_v61  ;;  %v2703_v40 = vrot.slane %v6178_v22, 5  ;;  %v2706_v63 = vrot.slane %v6179_v5, 5 }
 0x26c   : > { %v4953_v11 = vmul.f32 %v4612_v8, %v7964_v20  ;;  %v5806_v25 = vmul.f32 -1.442695, %v8112_v17  ;;  %v8125_v36 = vpop.f32.mrf.mxu0  ;;  %v3649_v10 = vshrl.u32 %v8108_v43, 16  ;;  %v3652_v33 = vshll.u32 %v8108_v43, 16  ;;  %v4986_v8 = vld [vmem:[%s7706_s10 + $0x50] sm:$0xff] }
 0x26d   : > { %v6020_v1 = vpop.eup %6019  ;;  %v4617_v49 = vmul.f32 %v6018_v26, %v4616_v24  ;;  %v2704_v29 = vsel %vm6618_vm6, %v5552_v47, %v2703_v40  ;;  %v2705_v21 = vrot.slane %v2703_v40, 4  ;;  %v3658_v57 = vshll.u32 %v8116_v35, 16  ;;  %v8132_v14 = vpop.f32.mrf.mxu3 }
 0x26e   : > { %v5017_v20 = vadd.f32 %v4985_v37, %v4953_v11  ;;  %v4630_v54 = vmul.f32 %v6020_v1, %v8075_v42  ;;  %v4640_v59 = vand.u32 2147483648, %v8075_v42  ;;  %6023 = vpow2.f32 %v5806_v25  ;;  %v8136_v7 = vpop.f32.mrf.mxu1 }
 0x26f   : > { %v4618_v51 = vadd.f32 %v6018_v26, %v4617_v49  ;;  %v2707_v13 = vsel %vm6618_vm6, %v2705_v21, %v2706_v63  ;;  %v2747_v62 = vunpack.c.l.b16 %v2704_v29  ;;  %v3651_v48 = vrot.slane %v3649_v10, 4 }
 0x270   : > { %v6022_v0 = vpop.eup %6021  ;;  %5049 = vst [vmem:[%s7759_s13 + $0x48] sm:$0xff] %v5017_v20  ;;  %v4631_v38 = vsub.f32 1.0, %v4630_v54  ;;  %vm4635_vm12 = vweird.f32 %v6020_v1  ;;  %v2748_v9 = vunpack.c.l.b16 %v2707_v13  ;;  %v3654_v52 = vrot.slane %v3652_v33, 5  ;;  %v8147_v45 = vpop.f32.mrf.mxu2  ;;  %v4987_v54 = vld [vmem:[%s7706_s10 + $0x58] sm:$0xff] }
 0x271   : > { %v4622_v55 = vsel %vm4621_vm11, %v6018_v26, %v4618_v51  ;;  %v8149_v61 = vadd.f32 1.0, %v6022_v0  ;;  %v3660_v4 = vrot.slane %v3658_v57, 5  ;;  %v3662_v3 = vshrl.u32 %v8116_v35, 16 }
 0x272   : > { %v4627_v47 = vsel %vm8102_vm10, %v4626_v16, %v4622_v55  ;;  %v4632_v28 = vmul.f32 %v6020_v1, %v4631_v38  ;;  %v2764_v37 = vpack.c.b16 %v2748_v9, %v2747_v62  ;;  %v3655_v24 = vor.u32 %v3654_v52, %v3651_v48 }
 0x273   : > { %v4954_v22 = vmul.f32 %v4627_v47, %v8021_v56  ;;  %6025 = vrcp.f32 %v8149_v61  ;;  %v3668_v40 = vshll.u32 %v8145_v30, 16  ;;  %vm4634_vm13 = vweird.f32 %v8075_v42 }
 0x274   : > { %v6024_v5 = vpop.eup %6023  ;;  %v4633_v26 = vadd.f32 %v6020_v1, %v4632_v28  ;;  %5592 = vmatmul.msk.bf16.gmra.mxu1 %vm856_vm3, %v2764_v37  ;;  %v3656_v63 = vrot.slane %v3655_v24, 4  ;;  %v3664_v41 = vrot.slane %v3662_v3, 4  ;;  %v8160_v16 = vpop.f32.mrf.mxu0  ;;  %vm4636_vm14 = vmor %vm4634_vm13, %vm4635_vm12  ;;  %vm4639_vm15 = vcmp.eq.f32.partialorder %v4638_v2, 8.507059e+37 }
 0x275   : > { %v5018_v11 = vadd.f32 %v4986_v8, %v4954_v22  ;;  %v4641_v56 = vor.u32 1.1754944e-38, %v4640_v59  ;;  %v8165_v25 = vadd.f32 1.0, %v6024_v5  ;;  %v3847_v10 = vpop.f32.mrf.mxu3  ;;  %v4653_v49 = vand.u32 2147483647, %v8149_v61  ;;  %v8527_v22 = vld [vmem:[#allocation7_spill] sm:$0xff] }
 0x276   : > { %v4637_v33 = vsel %vm4636_vm14, %v6020_v1, %v4633_v26  ;;  %v4655_v29 = vand.u32 2147483648, %v8149_v61  ;;  %v3665_v21 = vor.u32 %v3664_v41, %v3660_v4  ;;  %v2888_v57 = vpop.f32.mrf.mxu1  ;;  %v3661_v42 = vsel %vm6376_vm2, %v3656_v63, %v3660_v4 }
 0x277   : > { %5050 = vst [vmem:[%s7759_s13 + $0x50] sm:$0xff] %v5018_v11  ;;  %v4642_v20 = vsel %vm4639_vm15, %v4641_v56, %v4637_v33  ;;  %6027 = vrcp.f32 %v8165_v25  ;;  %v3670_v2 = vrot.slane %v3668_v40, 5  ;;  %v2940_v1 = vadd.f32 %v8050_v31, %v7140_v58 }
 0x278   : > { %v4955_v59 = vmul.f32 %v4642_v20, %v8039_v60  ;;  %v3666_v51 = vrot.slane %v3665_v21, 4  ;;  %v3216_v13 = vpop.f32.mrf.mxu2  ;;  %vm4649_vm0 = vweird.f32 %v8149_v61  ;;  %v5752_v48 = vrot.slane %v8108_v43, 9 }
 0x279   : > { %v6026_v62 = vpop.eup %6025  ;;  %v4045_v0 = vrot.slane %v8116_v35, 5  ;;  %v4048_v38 = vrot.slane %v8145_v30, 5  ;;  %vm8182_vm1 = vcmp.eq.f32.partialorder %v4653_v49, 8.507059e+37  ;;  %v4656_v58 = vor.u32 1.1754944e-38, %v4655_v29 }
 0x27a   : > { %v5019_v9 = vadd.f32 %v4987_v54, %v4955_v59  ;;  %v4645_v52 = vmul.f32 %v6026_v62, %v8149_v61  ;;  %v3711_v31 = vunpack.c.l.b16 %v3661_v42  ;;  %v3671_v55 = vsel %vm6376_vm2, %v3666_v51, %v3670_v2 }
 0x27b   : > { %v4046_v4 = vsel %vm6618_vm6, %v5752_v48, %v4045_v0  ;;  %v4047_v43 = vrot.slane %v4045_v0, 4  ;;  %v3270_v35 = vadd.f32 %v8096_v44, %v2940_v1  ;;  %v4668_v3 = vand.u32 2147483647, %v8165_v25  ;;  %v4988_v1 = vld [vmem:[%s7706_s10 + $0x60] sm:$0xff] }
 0x27c   : > { %5051 = vst [vmem:[%s7759_s13 + $0x58] sm:$0xff] %v5019_v9  ;;  %v4646_v30 = vsub.f32 1.0, %v4645_v52  ;;  %v3712_v47 = vunpack.c.l.b16 %v3671_v55  ;;  %v4089_v8 = vunpack.c.l.b16 %v4046_v4  ;;  %v4228_v28 = vpop.f32.mrf.mxu0  ;;  %v2941_v40 = vadd.f32 %v8087_v15, %v8527_v22 }
 0x27d   : > { %v6028_v37 = vpop.eup %6027  ;;  %v4049_v24 = vsel %vm6618_vm6, %v4047_v43, %v4048_v38  ;;  %v3904_v34 = vadd.f32 %v8132_v14, %v3270_v35  ;;  %v2942_v5 = vadd.f32 %v8136_v7, %v7185_v53  ;;  %v3850_v44 = vpop.f32.mrf.mxu3  ;;  %vm4650_vm2 = vweird.f32 %v6026_v62 }
 0x27e   : > { %v4647_v26 = vmul.f32 %v6026_v62, %v4646_v30  ;;  %v4660_v63 = vmul.f32 %v6028_v37, %v8165_v25  ;;  %v3728_v41 = vpack.c.b16 %v3712_v47, %v3711_v31  ;;  %v2891_v11 = vpop.f32.mrf.mxu1  ;;  %v4090_v56 = vunpack.c.l.b16 %v4049_v24  ;;  %vm4651_vm6 = vmor %vm4649_vm0, %vm4650_vm2 }
 0x27f   : > { %v4282_v33 = vadd.f32 %v8125_v36, %v3904_v34  ;;  %v3271_v46 = vadd.f32 %v8147_v45, %v2941_v40  ;;  %v3272_v49 = vadd.f32 %v3216_v13, %v2942_v5  ;;  %v4670_v15 = vand.u32 2147483648, %v8165_v25 }
 0x280   : > { %v4648_v14 = vadd.f32 %v6026_v62, %v4647_v26  ;;  %v4661_v29 = vsub.f32 1.0, %v4660_v63  ;;  %5736 = vmatmul.msk.bf16.gmra.mxu3 %vm856_vm3, %v3728_v41  ;;  %v2943_v53 = vadd.f32 %v2888_v57, %v7209_v50  ;;  %v3218_v7 = vpop.f32.mrf.mxu2  ;;  %v4106_v21 = vpack.c.b16 %v4090_v56, %v4089_v8 }
 0x281   : > { %v8209_v20 = vadd.f32 %v8082_v23, %v4282_v33  ;;  %v3905_v36 = vadd.f32 %v3847_v10, %v3271_v46  ;;  %v3906_v45 = vadd.f32 %v3850_v44, %v3272_v49  ;;  %vm4665_vm4 = vweird.f32 %v6028_v37 }
 0x282   : > { %v4652_v54 = vsel %vm4651_vm6, %v6026_v62, %v4648_v14  ;;  %v4662_v42 = vmul.f32 %v6028_v37, %v4661_v29  ;;  %v3273_v2 = vadd.f32 %v3218_v7, %v2943_v53  ;;  %5792 = vmatmul.msk.bf16.gmra.mxu0 %vm856_vm3, %v4106_v21  ;;  %vm4664_vm5 = vweird.f32 %v8165_v25  ;;  %v4989_v25 = vld [vmem:[%s7706_s10 + $0x68] sm:$0xff] }
 0x283   : > { %v4657_v59 = vsel %vm8182_vm1, %v4656_v58, %v4652_v54  ;;  %v5807_v50 = vmul.f32 -1.442695, %v8209_v20  ;;  %v4283_v61 = vadd.f32 %v8160_v16, %v3905_v36  ;;  %v4284_v57 = vadd.f32 %v4228_v28, %v3906_v45  ;;  %vm4666_vm7 = vmor %vm4664_vm5, %vm4665_vm4 }
 0x284   : > { %v4956_v51 = vmul.f32 %v4657_v59, %v8085_v19  ;;  %v4663_v10 = vadd.f32 %v6028_v37, %v4662_v42  ;;  %v4230_v13 = vpop.f32.mrf.mxu0  ;;  %v4671_v62 = vor.u32 1.1754944e-38, %v4670_v15  ;;  %vm4669_vm3 = vcmp.eq.f32.partialorder %v4668_v3, 8.507059e+37 }
 0x285   : > { %6029 = vpow2.f32 %v5807_v50  ;;  %v8220_v48 = vadd.f32 %v8082_v23, %v4283_v61  ;;  %v8223_v0 = vadd.f32 %v8082_v23, %v4284_v57  ;;  %v3852_v38 = vpop.f32.mrf.mxu3  ;;  %v2944_v35 = vadd.f32 %v2891_v11, %v7230_v18 }
 0x286   : > { %v5020_v16 = vadd.f32 %v4988_v1, %v4956_v51  ;;  %v4667_v9 = vsel %vm4666_vm7, %v6028_v37, %v4663_v10  ;;  %v3907_v19 = vadd.f32 %v3852_v38, %v3273_v2  ;;  %v2893_v52 = vpop.f32.mrf.mxu1 }
 0x287   : > { %v4672_v60 = vsel %vm4669_vm3, %v4671_v62, %v4667_v9  ;;  %v5808_v58 = vmul.f32 -1.442695, %v8220_v48  ;;  %v5809_v31 = vmul.f32 -1.442695, %v8223_v0  ;;  %v2945_v41 = vadd.f32 %v2893_v52, %v7255_v27  ;;  %v4993_v62 = vld [vmem:[%s7706_s10 + $0x88] sm:$0xff] }
 0x288   : > { %5052 = vst [vmem:[%s7759_s13 + $0x60] sm:$0xff] %v5020_v16  ;;  %v4957_v55 = vmul.f32 %v4672_v60, %v8112_v17  ;;  %v4285_v4 = vadd.f32 %v4230_v13, %v3907_v19  ;;  %v3221_v43 = vpop.f32.mrf.mxu2 }
 0x289   : > { %6031 = vpow2.f32 %v5808_v58  ;;  %v3274_v8 = vadd.f32 %v3221_v43, %v2944_v35 }
 0x28a   : > { %v5021_v30 = vadd.f32 %v4989_v25, %v4957_v55  ;;  %6033 = vpow2.f32 %v5809_v31  ;;  %v8232_v3 = vadd.f32 %v8082_v23, %v4285_v4 }
 0x28b   : > { %v6030_v47 = vpop.eup %6029 }
 0x28c   : > { %5053 = vst [vmem:[%s7759_s13 + $0x68] sm:$0xff] %v5021_v30  ;;  %v4446_v28 = vadd.f32 1.0, %v6030_v47  ;;  %v5810_v37 = vmul.f32 -1.442695, %v8232_v3  ;;  %v4233_v24 = vpop.f32.mrf.mxu0 }
 0x28d   : > { %v3855_v34 = vpop.f32.mrf.mxu3 }
 0x28e   : > { %6035 = vrcp.f32 %v4446_v28  ;;  %v2896_v17 = vpop.f32.mrf.mxu1  ;;  %v3908_v40 = vadd.f32 %v3855_v34, %v3274_v8  ;;  %v4683_v11 = vand.u32 2147483647, %v4446_v28  ;;  %v4685_v56 = vand.u32 2147483648, %v4446_v28 }
 0x28f   : > { %v6032_v22 = vpop.eup %6031  ;;  %6037 = vpow2.f32 %v5810_v37  ;;  %vm4679_vm8 = vweird.f32 %v4446_v28  ;;  %v2946_v7 = vadd.f32 %v2896_v17, %v7275_v39  ;;  %v4990_v37 = vld [vmem:[%s7706_s10 + $0x70] sm:$0xff] }
 0x290   : > { %v6034_v5 = vpop.eup %6033  ;;  %v8236_v18 = vadd.f32 1.0, %v6032_v22  ;;  %v3223_v44 = vpop.f32.mrf.mxu2  ;;  %v4286_v63 = vadd.f32 %v4233_v24, %v3908_v40  ;;  %vm8252_vm9 = vcmp.eq.f32.partialorder %v4683_v11, 8.507059e+37  ;;  %v4686_v59 = vor.u32 1.1754944e-38, %v4685_v56 }
 0x291   : > { %v8238_v26 = vadd.f32 1.0, %v6034_v5  ;;  %v3275_v33 = vadd.f32 %v3223_v44, %v2945_v41 }
 0x292   : > { %6039 = vrcp.f32 %v8236_v18  ;;  %v8244_v49 = vadd.f32 %v8082_v23, %v4286_v63  ;;  %v4698_v27 = vand.u32 2147483647, %v8236_v18  ;;  %v4700_v21 = vand.u32 2147483648, %v8236_v18 }
 0x293   : > { %6041 = vrcp.f32 %v8238_v26  ;;  %vm4694_vm10 = vweird.f32 %v8236_v18  ;;  %v4713_v39 = vand.u32 2147483647, %v8238_v26  ;;  %v4715_v61 = vand.u32 2147483648, %v8238_v26 }
 0x294   : > { %v6036_v46 = vpop.eup %6035  ;;  %v4235_v14 = vpop.f32.mrf.mxu0  ;;  %v5811_v45 = vmul.f32 -1.442695, %v8244_v49  ;;  %vm8261_vm12 = vcmp.eq.f32.partialorder %v4698_v27, 8.507059e+37  ;;  %v4701_v38 = vor.u32 1.1754944e-38, %v4700_v21  ;;  %vm4709_vm13 = vweird.f32 %v8238_v26 }
 0x295   : > { %v6038_v29 = vpop.eup %6037  ;;  %v4675_v15 = vmul.f32 %v6036_v46, %v4446_v28  ;;  %v3857_v53 = vpop.f32.mrf.mxu3  ;;  %vm4680_vm11 = vweird.f32 %v6036_v46  ;;  %vm8268_vm15 = vcmp.eq.f32.partialorder %v4713_v39, 8.507059e+37  ;;  %v4716_v31 = vor.u32 1.1754944e-38, %v4715_v61 }
 0x296   : > { %v8249_v36 = vadd.f32 1.0, %v6038_v29  ;;  %v2898_v54 = vpop.f32.mrf.mxu1  ;;  %v3909_v1 = vadd.f32 %v3857_v53, %v3275_v33  ;;  %vm4681_vm14 = vmor %vm4679_vm8, %vm4680_vm11 }
 0x297   : > { %v4676_v42 = vsub.f32 1.0, %v4675_v15  ;;  %v2947_v4 = vadd.f32 %v2898_v54, %v7299_v6  ;;  %v4991_v15 = vld [vmem:[%s7706_s10 + $0x78] sm:$0xff] }
 0x298   : > { %v6040_v50 = vpop.eup %6039  ;;  %6043 = vrcp.f32 %v8249_v36  ;;  %v3226_v57 = vpop.f32.mrf.mxu2  ;;  %v4287_v52 = vadd.f32 %v4235_v14, %v3909_v1  ;;  %v4728_v44 = vand.u32 2147483647, %v8249_v36  ;;  %v4730_v29 = vand.u32 2147483648, %v8249_v36 }
 0x299   : > { %v6042_v51 = vpop.eup %6041  ;;  %v4677_v10 = vmul.f32 %v6036_v46, %v4676_v42  ;;  %v4690_v13 = vmul.f32 %v6040_v50, %v8236_v18  ;;  %6045 = vpow2.f32 %v5811_v45  ;;  %v3276_v60 = vadd.f32 %v3226_v57, %v2946_v7  ;;  %v4992_v45 = vld [vmem:[%s7706_s10 + $0x80] sm:$0xff] }
 0x29a   : > { %v4705_v16 = vmul.f32 %v6042_v51, %v8238_v26  ;;  %vm4695_vm0 = vweird.f32 %v6040_v50  ;;  %v8274_v30 = vadd.f32 %v8082_v23, %v4287_v52  ;;  %vm4710_vm1 = vweird.f32 %v6042_v51 }
 0x29b   : > { %v4678_v9 = vadd.f32 %v6036_v46, %v4677_v10  ;;  %v4691_v19 = vsub.f32 1.0, %v4690_v13  ;;  %vm4696_vm2 = vmor %vm4694_vm10, %vm4695_vm0  ;;  %vm4724_vm5 = vweird.f32 %v8249_v36  ;;  %v4731_v39 = vor.u32 1.1754944e-38, %v4730_v29 }
 0x29c   : > { %v4706_v25 = vsub.f32 1.0, %v4705_v16  ;;  %v4238_v55 = vpop.f32.mrf.mxu0  ;;  %v5812_v11 = vmul.f32 -1.442695, %v8274_v30  ;;  %vm4711_vm6 = vmor %vm4709_vm13, %vm4710_vm1  ;;  %vm4729_vm3 = vcmp.eq.f32.partialorder %v4728_v44, 8.507059e+37 }
 0x29d   : > { %v4682_v43 = vsel %vm4681_vm14, %v6036_v46, %v4678_v9  ;;  %v4692_v35 = vmul.f32 %v6040_v50, %v4691_v19  ;;  %v3860_v47 = vpop.f32.mrf.mxu3 }
 0x29e   : > { %v6044_v8 = vpop.eup %6043  ;;  %v4687_v28 = vsel %vm8252_vm9, %v4686_v59, %v4682_v43  ;;  %v4707_v24 = vmul.f32 %v6042_v51, %v4706_v25  ;;  %v3910_v34 = vadd.f32 %v3860_v47, %v3276_v60  ;;  %v2901_v17 = vpop.f32.mrf.mxu1 }
 0x29f   : > { %v6046_v22 = vpop.eup %6045  ;;  %v4958_v40 = vmul.f32 %v4687_v28, %v8209_v20  ;;  %v4693_v6 = vadd.f32 %v6040_v50, %v4692_v35  ;;  %v4720_v5 = vmul.f32 %v6044_v8, %v8249_v36  ;;  %vm4725_vm4 = vweird.f32 %v6044_v8 }
 0x2a0   : > { %v4708_v63 = vadd.f32 %v6042_v51, %v4707_v24  ;;  %v8285_v41 = vadd.f32 1.0, %v6046_v22  ;;  %v4288_v56 = vadd.f32 %v4238_v55, %v3910_v34  ;;  %v3228_v33 = vpop.f32.mrf.mxu2  ;;  %vm4726_vm7 = vmor %vm4724_vm5, %vm4725_vm4  ;;  %v2948_v36 = vadd.f32 %v2901_v17, %v7320_v32 }
 0x2a1   : > { %v5022_v20 = vadd.f32 %v4990_v37, %v4958_v40  ;;  %v4697_v46 = vsel %vm4696_vm2, %v6040_v50, %v4693_v6  ;;  %v4721_v14 = vsub.f32 1.0, %v4720_v5  ;;  %v3277_v7 = vadd.f32 %v3228_v33, %v2947_v4 }
 0x2a2   : > { %v4702_v18 = vsel %vm8261_vm12, %v4701_v38, %v4697_v46  ;;  %v4712_v53 = vsel %vm4711_vm6, %v6042_v51, %v4708_v63  ;;  %6047 = vrcp.f32 %v8285_v41  ;;  %v8303_v42 = vadd.f32 %v8082_v23, %v4288_v56  ;;  %v4994_v63 = vld [vmem:[%s7706_s10 + $0x90] sm:$0xff] }
 0x2a3   : > { %5054 = vst [vmem:[%s7759_s13 + $0x70] sm:$0xff] %v5022_v20  ;;  %v4959_v27 = vmul.f32 %v4702_v18, %v8220_v48  ;;  %v4717_v21 = vsel %vm8268_vm15, %v4716_v31, %v4712_v53  ;;  %v4722_v26 = vmul.f32 %v6044_v8, %v4721_v14  ;;  %6049 = vpow2.f32 %v5812_v11 }
 0x2a4   : > { %v4960_v54 = vmul.f32 %v4717_v21, %v8223_v0  ;;  %v4240_v2 = vpop.f32.mrf.mxu0  ;;  %v5813_v61 = vmul.f32 -1.442695, %v8303_v42  ;;  %v4745_v4 = vand.u32 2147483648, %v8285_v41  ;;  %vm4739_vm9 = vweird.f32 %v8285_v41 }
 0x2a5   : > { %v5023_v59 = vadd.f32 %v4991_v15, %v4959_v27  ;;  %v4723_v1 = vadd.f32 %v6044_v8, %v4722_v26  ;;  %v3862_v48 = vpop.f32.mrf.mxu3 }
 0x2a6   : > { %v5024_v50 = vadd.f32 %v4992_v45, %v4960_v54  ;;  %v3911_v57 = vadd.f32 %v3862_v48, %v3277_v7  ;;  %v2903_v51 = vpop.f32.mrf.mxu1  ;;  %6051 = vpow2.f32 %v5813_v61  ;;  %v4746_v17 = vor.u32 1.1754944e-38, %v4745_v4 }
 0x2a7   : > { %5055 = vst [vmem:[%s7759_s13 + $0x78] sm:$0xff] %v5023_v59  ;;  %v4727_v0 = vsel %vm4726_vm7, %v6044_v8, %v4723_v1  ;;  %v2949_v40 = vadd.f32 %v2903_v51, %v7345_v12  ;;  %v8534_v51 = vld [vmem:[#allocation8_spill] sm:$0xff] }
 0x2a8   : > { %v6048_v10 = vpop.eup %6047  ;;  %5056 = vst [vmem:[%s7759_s13 + $0x80] sm:$0xff] %v5024_v50  ;;  %v4732_v13 = vsel %vm4729_vm3, %v4731_v39, %v4727_v0  ;;  %v4289_v38 = vadd.f32 %v4240_v2, %v3911_v57  ;;  %v3231_v16 = vpop.f32.mrf.mxu2 }
 0x2a9   : > { %v4961_v9 = vmul.f32 %v4732_v13, %v8232_v3  ;;  %v4735_v19 = vmul.f32 %v6048_v10, %v8285_v41  ;;  %v6050_v52 = vpop.eup %6049  ;;  %v3278_v25 = vadd.f32 %v3231_v16, %v2948_v36  ;;  %vm4740_vm8 = vweird.f32 %v6048_v10 }
 0x2aa   : > { %v8314_v60 = vadd.f32 %v8082_v23, %v4289_v38  ;;  %v4451_v55 = vadd.f32 1.0, %v6050_v52  ;;  %v4743_v3 = vand.u32 2147483647, %v8285_v41  ;;  %vm4741_vm10 = vmor %vm4739_vm9, %vm4740_vm8 }
 0x2ab   : > { %v5025_v58 = vadd.f32 %v4993_v62, %v4961_v9  ;;  %v4736_v31 = vsub.f32 1.0, %v4735_v19  ;;  %v4995_v19 = vld [vmem:[%s7706_s10 + $0x98] sm:$0xff] }
 0x2ac   : > { %v5814_v43 = vmul.f32 -1.442695, %v8314_v60  ;;  %v4243_v35 = vpop.f32.mrf.mxu0  ;;  %6053 = vrcp.f32 %v4451_v55  ;;  %v6052_v8 = vpop.eup %6051  ;;  %vm4744_vm11 = vcmp.eq.f32.partialorder %v4743_v3, 8.507059e+37  ;;  %v4758_v7 = vand.u32 2147483647, %v4451_v55 }
 0x2ad   : > { %5057 = vst [vmem:[%s7759_s13 + $0x88] sm:$0xff] %v5025_v58  ;;  %v4737_v32 = vmul.f32 %v6048_v10, %v4736_v31  ;;  %v3865_v47 = vpop.f32.mrf.mxu3  ;;  %v8321_v34 = vadd.f32 1.0, %v6052_v8  ;;  %v4760_v45 = vand.u32 2147483648, %v4451_v55  ;;  %vm4754_vm13 = vweird.f32 %v4451_v55 }
 0x2ae   : > { %6055 = vpow2.f32 %v5814_v43  ;;  %v3912_v28 = vadd.f32 %v3865_v47, %v3278_v25  ;;  %v2906_v37 = vpop.f32.mrf.mxu1  ;;  %vm4759_vm14 = vcmp.eq.f32.partialorder %v4758_v7, 8.507059e+37  ;;  %v4997_v7 = vld [vmem:[%s7706_s10 + $0xa8] sm:$0xff] }
 0x2af   : > { %v4738_v24 = vadd.f32 %v6048_v10, %v4737_v32  ;;  %6057 = vrcp.f32 %v8321_v34  ;;  %v4761_v39 = vor.u32 1.1754944e-38, %v4760_v45  ;;  %v4773_v61 = vand.u32 2147483647, %v8321_v34 }
 0x2b0   : > { %v4290_v22 = vadd.f32 %v4243_v35, %v3912_v28  ;;  %v3233_v6 = vpop.f32.mrf.mxu2  ;;  %v4775_v57 = vand.u32 2147483648, %v8321_v34  ;;  %v2950_v0 = vadd.f32 %v2906_v37, %v8534_v51  ;;  %vm4769_vm1 = vweird.f32 %v8321_v34  ;;  %v8535_v35 = vld [vmem:[#allocation9_spill] sm:$0xff] }
 0x2b1   : > { %v4742_v5 = vsel %vm4741_vm10, %v6048_v10, %v4738_v24  ;;  %v3279_v56 = vadd.f32 %v3233_v6, %v2949_v40  ;;  %vm4774_vm6 = vcmp.eq.f32.partialorder %v4773_v61, 8.507059e+37 }
 0x2b2   : > { %v4747_v44 = vsel %vm4744_vm11, %v4746_v17, %v4742_v5  ;;  %v8327_v11 = vadd.f32 %v8082_v23, %v4290_v22  ;;  %v6054_v41 = vpop.eup %6053  ;;  %v4776_v43 = vor.u32 1.1754944e-38, %v4775_v57 }
 0x2b3   : > { %v4962_v33 = vmul.f32 %v4747_v44, %v8244_v49  ;;  %v4750_v46 = vmul.f32 %v6054_v41, %v4451_v55  ;;  %vm4755_vm12 = vweird.f32 %v6054_v41 }
 0x2b4   : > { %v6056_v20 = vpop.eup %6055  ;;  %v5815_v14 = vmul.f32 -1.442695, %v8327_v11  ;;  %v4245_v12 = vpop.f32.mrf.mxu0  ;;  %vm4756_vm15 = vmor %vm4754_vm13, %vm4755_vm12 }
 0x2b5   : > { %v5026_v29 = vadd.f32 %v4994_v63, %v4962_v33  ;;  %v8331_v18 = vadd.f32 1.0, %v6056_v20  ;;  %v3867_v15 = vpop.f32.mrf.mxu3  ;;  %v4751_v53 = vsub.f32 1.0, %v4750_v46  ;;  %v6058_v21 = vpop.eup %6057 }
 0x2b6   : > { %6059 = vpow2.f32 %v5815_v14  ;;  %v3913_v27 = vadd.f32 %v3867_v15, %v3279_v56  ;;  %v4765_v49 = vmul.f32 %v6058_v21, %v8321_v34  ;;  %v2908_v59 = vpop.f32.mrf.mxu1  ;;  %vm4770_vm0 = vweird.f32 %v6058_v21 }
 0x2b7   : > { %5058 = vst [vmem:[%s7759_s13 + $0x90] sm:$0xff] %v5026_v29  ;;  %6061 = vrcp.f32 %v8331_v18  ;;  %v4752_v26 = vmul.f32 %v6054_v41, %v4751_v53  ;;  %vm4771_vm2 = vmor %vm4769_vm1, %vm4770_vm0  ;;  %v2951_v32 = vadd.f32 %v2908_v59, %v8535_v35  ;;  %v4788_v24 = vand.u32 2147483647, %v8331_v18  ;;  %v8536_v59 = vld [vmem:[#allocation10_spill] sm:$0xff] }
 0x2b8   : > { %v4291_v54 = vadd.f32 %v4245_v12, %v3913_v27  ;;  %v3236_v2 = vpop.f32.mrf.mxu2  ;;  %v4766_v48 = vsub.f32 1.0, %v4765_v49  ;;  %v4790_v34 = vand.u32 2147483648, %v8331_v18  ;;  %vm4784_vm5 = vweird.f32 %v8331_v18 }
 0x2b9   : > { %v4753_v1 = vadd.f32 %v6054_v41, %v4752_v26  ;;  %v3280_v25 = vadd.f32 %v3236_v2, %v2950_v0  ;;  %vm4789_vm3 = vcmp.eq.f32.partialorder %v4788_v24, 8.507059e+37 }
 0x2ba   : > { %v8337_v50 = vadd.f32 %v8082_v23, %v4291_v54  ;;  %v4767_v62 = vmul.f32 %v6058_v21, %v4766_v48  ;;  %v4791_v20 = vor.u32 1.1754944e-38, %v4790_v34 }
 0x2bb   : > { %v4757_v13 = vsel %vm4756_vm15, %v6054_v41, %v4753_v1 }
 0x2bc   : > { %v6060_v10 = vpop.eup %6059  ;;  %v5816_v38 = vmul.f32 -1.442695, %v8337_v50  ;;  %v4248_v36 = vpop.f32.mrf.mxu0  ;;  %v4762_v9 = vsel %vm4759_vm14, %v4761_v39, %v4757_v13  ;;  %v4768_v55 = vadd.f32 %v6058_v21, %v4767_v62 }
 0x2bd   : > { %v6062_v16 = vpop.eup %6061  ;;  %v8344_v52 = vadd.f32 1.0, %v6060_v10  ;;  %v3870_v58 = vpop.f32.mrf.mxu3  ;;  %v4963_v31 = vmul.f32 %v4762_v9, %v8274_v30  ;;  %v4996_v30 = vld [vmem:[%s7706_s10 + $0xa0] sm:$0xff] }
 0x2be   : > { %v4780_v4 = vmul.f32 %v6062_v16, %v8331_v18  ;;  %v4772_v47 = vsel %vm4771_vm2, %v6058_v21, %v4768_v55  ;;  %v3914_v17 = vadd.f32 %v3870_v58, %v3280_v25  ;;  %vm4785_vm4 = vweird.f32 %v6062_v16  ;;  %v2911_v5 = vpop.f32.mrf.mxu1  ;;  %v8537_v55 = vld [vmem:[#allocation11_spill] sm:$0xff] }
 0x2bf   : > { %6063 = vrcp.f32 %v8344_v52  ;;  %v5027_v3 = vadd.f32 %v4995_v19, %v4963_v31  ;;  %v4777_v37 = vsel %vm4774_vm6, %v4776_v43, %v4772_v47  ;;  %vm4786_vm7 = vmor %vm4784_vm5, %vm4785_vm4  ;;  %v4803_v26 = vand.u32 2147483647, %v8344_v52  ;;  %v4998_v19 = vld [vmem:[%s7706_s10 + $0xb0] sm:$0xff] }
 0x2c0   : > { %v4781_v8 = vsub.f32 1.0, %v4780_v4  ;;  %6065 = vpow2.f32 %v5816_v38  ;;  %v3238_v28 = vpop.f32.mrf.mxu2  ;;  %v4964_v22 = vmul.f32 %v4777_v37, %v8303_v42  ;;  %v4292_v44 = vadd.f32 %v4248_v36, %v3914_v17 }
 0x2c1   : > { %5059 = vst [vmem:[%s7759_s13 + $0x98] sm:$0xff] %v5027_v3  ;;  %v3281_v6 = vadd.f32 %v3238_v28, %v2951_v32  ;;  %v4805_v2 = vand.u32 2147483648, %v8344_v52  ;;  %v2952_v1 = vadd.f32 %v2911_v5, %v8536_v59  ;;  %vm4799_vm9 = vweird.f32 %v8344_v52 }
 0x2c2   : > { %v4782_v40 = vmul.f32 %v6062_v16, %v4781_v8  ;;  %v5028_v63 = vadd.f32 %v4996_v30, %v4964_v22  ;;  %v8358_v46 = vadd.f32 %v8082_v23, %v4292_v44  ;;  %vm4804_vm11 = vcmp.eq.f32.partialorder %v4803_v26, 8.507059e+37 }
 0x2c3   : > { %v4806_v10 = vor.u32 1.1754944e-38, %v4805_v2 }
 0x2c4   : > { %v4783_v56 = vadd.f32 %v6062_v16, %v4782_v40  ;;  %v4250_v41 = vpop.f32.mrf.mxu0  ;;  %5060 = vst [vmem:[%s7759_s13 + $0xa0] sm:$0xff] %v5028_v63  ;;  %v5817_v18 = vmul.f32 -1.442695, %v8358_v46 }
 0x2c5   : > { %v6064_v33 = vpop.eup %6063  ;;  %v3872_v14 = vpop.f32.mrf.mxu3 }
 0x2c6   : > { %v6066_v42 = vpop.eup %6065  ;;  %v4787_v12 = vsel %vm4786_vm7, %v6062_v16, %v4783_v56  ;;  %v4795_v29 = vmul.f32 %v6064_v33, %v8344_v52  ;;  %v3915_v15 = vadd.f32 %v3872_v14, %v3281_v6  ;;  %vm4800_vm8 = vweird.f32 %v6064_v33  ;;  %v2913_v0 = vpop.f32.mrf.mxu1 }
 0x2c7   : > { %v4792_v53 = vsel %vm4789_vm3, %v4791_v20, %v4787_v12  ;;  %v8363_v27 = vadd.f32 1.0, %v6066_v42  ;;  %vm4801_vm10 = vmor %vm4799_vm9, %vm4800_vm8  ;;  %v2953_v4 = vadd.f32 %v2913_v0, %v8537_v55 }
 0x2c8   : > { %v4965_v21 = vmul.f32 %v4792_v53, %v8314_v60  ;;  %v4796_v45 = vsub.f32 1.0, %v4795_v29  ;;  %v4293_v49 = vadd.f32 %v4250_v41, %v3915_v15  ;;  %v3241_v54 = vpop.f32.mrf.mxu2 }
 0x2c9   : > { %6067 = vrcp.f32 %v8363_v27  ;;  %v3282_v57 = vadd.f32 %v3241_v54, %v2952_v1  ;;  %v4820_v28 = vand.u32 2147483648, %v8363_v27  ;;  %vm4814_vm13 = vweird.f32 %v8363_v27 }
 0x2ca   : > { %v5029_v48 = vadd.f32 %v4997_v7, %v4965_v21  ;;  %v4797_v39 = vmul.f32 %v6064_v33, %v4796_v45  ;;  %6069 = vpow2.f32 %v5817_v18  ;;  %v8372_v61 = vadd.f32 %v8082_v23, %v4293_v49 }
 0x2cb   : > { %v4821_v6 = vor.u32 1.1754944e-38, %v4820_v28 }
 0x2cc   : > { %5061 = vst [vmem:[%s7759_s13 + $0xa8] sm:$0xff] %v5029_v48  ;;  %v4798_v60 = vadd.f32 %v6064_v33, %v4797_v39  ;;  %v5818_v51 = vmul.f32 -1.442695, %v8372_v61  ;;  %v4253_v13 = vpop.f32.mrf.mxu0 }
 0x2cd   : > { %v3875_v62 = vpop.f32.mrf.mxu3 }
 0x2ce   : > { %v4802_v38 = vsel %vm4801_vm10, %v6064_v33, %v4798_v60  ;;  %6071 = vpow2.f32 %v5818_v51  ;;  %v3916_v36 = vadd.f32 %v3875_v62, %v3282_v57  ;;  %v4999_v33 = vld [vmem:[%s7706_s10 + $0xb8] sm:$0xff]  ;;  %v5000_v60 = vld [vmem:[%s7706_s10 + $0xc0] sm:$0xff] }
 0x2cf   : > { %v6068_v16 = vpop.eup %6067  ;;  %v4807_v9 = vsel %vm4804_vm11, %v4806_v10, %v4802_v38  ;;  %v8538_v51 = vld [vmem:[#allocation12_spill] sm:$0xff] }
 0x2d0   : > { %v6070_v25 = vpop.eup %6069  ;;  %v4966_v58 = vmul.f32 %v4807_v9, %v8327_v11  ;;  %v4810_v52 = vmul.f32 %v6068_v16, %v8363_v27  ;;  %v4294_v31 = vadd.f32 %v4253_v13, %v3916_v36  ;;  %v3243_v43 = vpop.f32.mrf.mxu2  ;;  %vm4815_vm12 = vweird.f32 %v6068_v16 }
 0x2d1   : > { %v4456_v35 = vadd.f32 1.0, %v6070_v25  ;;  %v3283_v8 = vadd.f32 %v3243_v43, %v2953_v4  ;;  %v4818_v11 = vand.u32 2147483647, %v8363_v27  ;;  %vm4816_vm14 = vmor %vm4814_vm13, %vm4815_vm12 }
 0x2d2   : > { %v5030_v32 = vadd.f32 %v4998_v19, %v4966_v58  ;;  %v4811_v3 = vsub.f32 1.0, %v4810_v52  ;;  %v8382_v47 = vadd.f32 %v8082_v23, %v4294_v31  ;;  %v5001_v31 = vld [vmem:[%s7706_s10 + $0xc8] sm:$0xff] }
 0x2d3   : > { %6073 = vrcp.f32 %v4456_v35  ;;  %vm4819_vm15 = vcmp.eq.f32.partialorder %v4818_v11, 8.507059e+37  ;;  %v4833_v27 = vand.u32 2147483647, %v4456_v35  ;;  %v4835_v18 = vand.u32 2147483648, %v4456_v35 }
 0x2d4   : > { %v6072_v37 = vpop.eup %6071  ;;  %5062 = vst [vmem:[%s7759_s13 + $0xb0] sm:$0xff] %v5030_v32  ;;  %v4812_v30 = vmul.f32 %v6068_v16, %v4811_v3  ;;  %v5819_v24 = vmul.f32 -1.442695, %v8382_v47  ;;  %v4255_v5 = vpop.f32.mrf.mxu0  ;;  %vm4829_vm1 = vweird.f32 %v4456_v35 }
 0x2d5   : > { %v4457_v34 = vadd.f32 1.0, %v6072_v37  ;;  %v3877_v17 = vpop.f32.mrf.mxu3  ;;  %vm4834_vm6 = vcmp.eq.f32.partialorder %v4833_v27, 8.507059e+37  ;;  %v4836_v2 = vor.u32 1.1754944e-38, %v4835_v18 }
 0x2d6   : > { %v4813_v22 = vadd.f32 %v6068_v16, %v4812_v30  ;;  %6075 = vpow2.f32 %v5819_v24  ;;  %v3917_v40 = vadd.f32 %v3877_v17, %v3283_v8  ;;  %v2916_v45 = vpop.f32.mrf.mxu1  ;;  %v8539_v24 = vld [vmem:[#allocation13_spill] sm:$0xff] }
 0x2d7   : > { %6077 = vrcp.f32 %v4457_v34  ;;  %v4850_v59 = vand.u32 2147483648, %v4457_v34  ;;  %v4848_v39 = vand.u32 2147483647, %v4457_v34  ;;  %v2954_v0 = vadd.f32 %v2916_v45, %v8538_v51 }
 0x2d8   : > { %v4817_v44 = vsel %vm4816_vm14, %v6068_v16, %v4813_v22  ;;  %v4295_v63 = vadd.f32 %v4255_v5, %v3917_v40  ;;  %v3246_v54 = vpop.f32.mrf.mxu2  ;;  %vm4844_vm5 = vweird.f32 %v4457_v34  ;;  %v8414_v40 = vld [vmem:[%s8482_s4] ss:$0 sm:$0xff] }
 0x2d9   : > { %v6074_v56 = vpop.eup %6073  ;;  %v4822_v41 = vsel %vm4819_vm15, %v4821_v6, %v4817_v44  ;;  %v4851_v36 = vor.u32 1.1754944e-38, %v4850_v59  ;;  %v3284_v9 = vadd.f32 %v3246_v54, %v2954_v0  ;;  %vm4849_vm3 = vcmp.eq.f32.partialorder %v4848_v39, 8.507059e+37  ;;  %v5003_v54 = vld [vmem:[%s7706_s10 + $0xd8] sm:$0xff] }
 0x2da   : > { %v4967_v20 = vmul.f32 %v4822_v41, %v8337_v50  ;;  %v4825_v14 = vmul.f32 %v6074_v56, %v4456_v35  ;;  %v8392_v42 = vadd.f32 %v8082_v23, %v4295_v63  ;;  %vm4830_vm0 = vweird.f32 %v6074_v56  ;;  %v5002_v41 = vld [vmem:[%s7706_s10 + $0xd0] sm:$0xff] }
 0x2db   : > { %vm4831_vm2 = vmor %vm4829_vm1, %vm4830_vm0 }
 0x2dc   : > { %v6076_v12 = vpop.eup %6075  ;;  %v5031_v29 = vadd.f32 %v4999_v33, %v4967_v20  ;;  %v4826_v15 = vsub.f32 1.0, %v4825_v14  ;;  %v5820_v53 = vmul.f32 -1.442695, %v8392_v42 }
 0x2dd   : > { %v6078_v7 = vpop.eup %6077  ;;  %v8395_v21 = vadd.f32 1.0, %v6076_v12 }
 0x2de   : > { %5063 = vst [vmem:[%s7759_s13 + $0xb8] sm:$0xff] %v5031_v29  ;;  %v4827_v26 = vmul.f32 %v6074_v56, %v4826_v15  ;;  %v4840_v49 = vmul.f32 %v6078_v7, %v4457_v34  ;;  %6079 = vpow2.f32 %v5820_v53  ;;  %vm4845_vm4 = vweird.f32 %v6078_v7  ;;  %v2918_v55 = vpop.f32.mrf.mxu1 }
 0x2df   : > { %6081 = vrcp.f32 %v8395_v21  ;;  %vm4846_vm7 = vmor %vm4844_vm5, %vm4845_vm4  ;;  %v4865_v32 = vand.u32 2147483648, %v8395_v21  ;;  %v4863_v37 = vand.u32 2147483647, %v8395_v21  ;;  %v2955_v34 = vadd.f32 %v2918_v55, %v8539_v24 }
 0x2e0   : > { %v4828_v23 = vadd.f32 %v6074_v56, %v4827_v26  ;;  %v4841_v50 = vsub.f32 1.0, %v4840_v49  ;;  %v3248_v30 = vpop.f32.mrf.mxu2  ;;  %vm4859_vm9 = vweird.f32 %v8395_v21 }
 0x2e1   : > { %v4866_v22 = vor.u32 1.1754944e-38, %v4865_v32  ;;  %v3285_v5 = vadd.f32 %v3248_v30, %v2955_v34  ;;  %vm4864_vm11 = vcmp.eq.f32.partialorder %v4863_v37, 8.507059e+37 }
 0x2e2   : > { %v4832_v1 = vsel %vm4831_vm2, %v6074_v56, %v4828_v23  ;;  %v4842_v48 = vmul.f32 %v6078_v7, %v4841_v50 }
 0x2e3   : > { %v4837_v57 = vsel %vm4834_vm6, %v4836_v2, %v4832_v1 }
 0x2e4   : > { %v6080_v10 = vpop.eup %6079  ;;  %v4968_v13 = vmul.f32 %v4837_v57, %v8358_v46  ;;  %v4843_v62 = vadd.f32 %v6078_v7, %v4842_v48 }
 0x2e5   : > { %v6082_v38 = vpop.eup %6081  ;;  %v4459_v16 = vadd.f32 1.0, %v6080_v10 }
 0x2e6   : > { %v5032_v19 = vadd.f32 %v5000_v60, %v4968_v13  ;;  %v4847_v25 = vsel %vm4846_vm7, %v6078_v7, %v4843_v62  ;;  %v4855_v58 = vmul.f32 %v6082_v38, %v8395_v21  ;;  %v4258_v43 = vpop.f32.mrf.mxu0  ;;  %vm4860_vm8 = vweird.f32 %v6082_v38  ;;  %v8540_v60 = vld [vmem:[#allocation14_spill] sm:$0xff] }
 0x2e7   : > { %v4852_v52 = vsel %vm4849_vm3, %v4851_v36, %v4847_v25  ;;  %6083 = vrcp.f32 %v4459_v16  ;;  %vm4861_vm10 = vmor %vm4859_vm9, %vm4860_vm8  ;;  %v4880_v29 = vand.u32 2147483648, %v4459_v16  ;;  %v4878_v27 = vand.u32 2147483647, %v4459_v16 }
 0x2e8   : > { %5064 = vst [vmem:[%s7759_s13 + $0xc0] sm:$0xff] %v5032_v19  ;;  %v4969_v46 = vmul.f32 %v4852_v52, %v8372_v61  ;;  %v4856_v4 = vsub.f32 1.0, %v4855_v58  ;;  %v3880_v35 = vpop.f32.mrf.mxu3  ;;  %vm4874_vm13 = vweird.f32 %v4459_v16  ;;  %v3251_v57 = vpop.f32.mrf.mxu2 }
 0x2e9   : > { %v3918_v3 = vadd.f32 %v3880_v35, %v3284_v9  ;;  %v4881_v26 = vor.u32 1.1754944e-38, %v4880_v29  ;;  %vm4879_vm15 = vcmp.eq.f32.partialorder %v4878_v27, 8.507059e+37 }
 0x2ea   : > { %v5033_v8 = vadd.f32 %v5001_v31, %v4969_v46  ;;  %v4857_v28 = vmul.f32 %v6082_v38, %v4856_v4  ;;  %v8541_v46 = vld [vmem:[#allocation15_spill] sm:$0xff] }
 0x2eb   : > { %v4296_v11 = vadd.f32 %v4258_v43, %v3918_v3 }
 0x2ec   : > { %5065 = vst [vmem:[%s7759_s13 + $0xc8] sm:$0xff] %v5033_v8  ;;  %v4858_v17 = vadd.f32 %v6082_v38, %v4857_v28 }
 0x2ed   : > { %v6084_v61 = vpop.eup %6083  ;;  %v8417_v6 = vadd.f32 %v8414_v40, %v4296_v11  ;;  %v5004_v11 = vld [vmem:[%s7706_s10 + $0xe0] sm:$0xff] }
 0x2ee   : > { %v4862_v44 = vsel %vm4861_vm10, %v6082_v38, %v4858_v17  ;;  %v4870_v63 = vmul.f32 %v6084_v61, %v4459_v16  ;;  %vm4875_vm12 = vweird.f32 %v6084_v61  ;;  %v4260_v18 = vpop.f32.mrf.mxu0 }
 0x2ef   : > { %v4867_v56 = vsel %vm4864_vm11, %v4866_v22, %v4862_v44  ;;  %v5821_v33 = vmul.f32 -1.442695, %v8417_v6  ;;  %vm4876_vm14 = vmor %vm4874_vm13, %vm4875_vm12 }
 0x2f0   : > { %v4970_v20 = vmul.f32 %v4867_v56, %v8382_v47  ;;  %v4871_v14 = vsub.f32 1.0, %v4870_v63  ;;  %v3882_v12 = vpop.f32.mrf.mxu3  ;;  %v3253_v31 = vpop.f32.mrf.mxu2 }
 0x2f1   : > { %6085 = vpow2.f32 %v5821_v33  ;;  %v3919_v15 = vadd.f32 %v3882_v12, %v3285_v5  ;;  %v2921_v48 = vpop.f32.mrf.mxu1 }
 0x2f2   : > { %v5034_v53 = vadd.f32 %v5002_v41, %v4970_v20  ;;  %v4872_v7 = vmul.f32 %v6084_v61, %v4871_v14  ;;  %v2956_v51 = vadd.f32 %v2921_v48, %v8540_v60  ;;  %v5006_v60 = vld [vmem:[%s7706_s10 + $0xf0] sm:$0xff] }
 0x2f3   : > { %v4297_v21 = vadd.f32 %v4260_v18, %v3919_v15 }
 0x2f4   : > { %5066 = vst [vmem:[%s7759_s13 + $0xd0] sm:$0xff] %v5034_v53  ;;  %v4873_v45 = vadd.f32 %v6084_v61, %v4872_v7  ;;  %v3286_v62 = vadd.f32 %v3251_v57, %v2956_v51  ;;  %v5005_v53 = vld [vmem:[%s7706_s10 + $0xe8] sm:$0xff] }
 0x2f5   : > { %v8424_v47 = vadd.f32 %v8414_v40, %v4297_v21 }
 0x2f6   : > { %v4877_v49 = vsel %vm4876_vm14, %v6084_v61, %v4873_v45 }
 0x2f7   : > { %v6086_v23 = vpop.eup %6085  ;;  %v4882_v50 = vsel %vm4879_vm15, %v4881_v26, %v4877_v49  ;;  %v5822_v2 = vmul.f32 -1.442695, %v8424_v47 }
 0x2f8   : > { %v4971_v59 = vmul.f32 %v4882_v50, %v8392_v42  ;;  %v4460_v1 = vadd.f32 1.0, %v6086_v23 }
 0x2f9   : > { %6087 = vpow2.f32 %v5822_v2  ;;  %v2923_v36 = vpop.f32.mrf.mxu1 }
 0x2fa   : > { %v5035_v39 = vadd.f32 %v5003_v54, %v4971_v59  ;;  %6089 = vrcp.f32 %v4460_v1  ;;  %v4895_v42 = vand.u32 2147483648, %v4460_v1  ;;  %v4893_v52 = vand.u32 2147483647, %v4460_v1 }
 0x2fb   : > { %v2957_v4 = vadd.f32 %v2923_v36, %v8541_v46  ;;  %vm4889_vm1 = vweird.f32 %v4460_v1 }
 0x2fc   : > { %5067 = vst [vmem:[%s7759_s13 + $0xd8] sm:$0xff] %v5035_v39  ;;  %v4896_v32 = vor.u32 1.1754944e-38, %v4895_v42  ;;  %vm4894_vm6 = vcmp.eq.f32.partialorder %v4893_v52, 8.507059e+37  ;;  %v5007_v42 = vld [vmem:[%s7706_s10 + $0xf8] sm:$0xff] }
 0x2fd   : > { %v3287_v8 = vadd.f32 %v3253_v31, %v2957_v4 }
 0x2ff   : > { %v6088_v0 = vpop.eup %6087  ;;  %v4263_v9 = vpop.f32.mrf.mxu0 }
 0x300   : > { %v6090_v10 = vpop.eup %6089  ;;  %v4461_v13 = vadd.f32 1.0, %v6088_v0 }
 0x301   : > { %v4885_v38 = vmul.f32 %v6090_v10, %v4460_v1  ;;  %vm4890_vm0 = vweird.f32 %v6090_v10 }
 0x302   : > { %6091 = vrcp.f32 %v4461_v13  ;;  %vm4891_vm2 = vmor %vm4889_vm1, %vm4890_vm0  ;;  %v4910_v22 = vand.u32 2147483648, %v4461_v13  ;;  %v4908_v56 = vand.u32 2147483647, %v4461_v13  ;;  %vm4904_vm5 = vweird.f32 %v4461_v13 }
 0x303   : > { %v4886_v16 = vsub.f32 1.0, %v4885_v38  ;;  %v3885_v19 = vpop.f32.mrf.mxu3 }
 0x304   : > { %v3920_v25 = vadd.f32 %v3885_v19, %v3286_v62  ;;  %v4911_v14 = vor.u32 1.1754944e-38, %v4910_v22  ;;  %vm4909_vm3 = vcmp.eq.f32.partialorder %v4908_v56, 8.507059e+37 }
 0x305   : > { %v4887_v58 = vmul.f32 %v6090_v10, %v4886_v16 }
 0x306   : > { %v4298_v55 = vadd.f32 %v4263_v9, %v3920_v25 }
 0x307   : > { %v4888_v43 = vadd.f32 %v6090_v10, %v4887_v58  ;;  %v4265_v41 = vpop.f32.mrf.mxu0 }
 0x308   : > { %v6092_v35 = vpop.eup %6091  ;;  %v4334_v3 = vadd.f32 %v8414_v40, %v4298_v55 }
 0x309   : > { %v4892_v28 = vsel %vm4891_vm2, %v6090_v10, %v4888_v43  ;;  %v4900_v37 = vmul.f32 %v6092_v35, %v4461_v13  ;;  %vm4905_vm4 = vweird.f32 %v6092_v35 }
 0x30a   : > { %v4897_v30 = vsel %vm4894_vm6, %v4896_v32, %v4892_v28  ;;  %v5823_v24 = vmul.f32 -1.442695, %v4334_v3  ;;  %vm4906_vm7 = vmor %vm4904_vm5, %vm4905_vm4 }
 0x30b   : > { %v4972_v34 = vmul.f32 %v4897_v30, %v8417_v6  ;;  %v4901_v17 = vsub.f32 1.0, %v4900_v37  ;;  %v3887_v61 = vpop.f32.mrf.mxu3 }
 0x30c   : > { %6093 = vpow2.f32 %v5823_v24  ;;  %v3921_v5 = vadd.f32 %v3887_v61, %v3287_v8 }
 0x30d   : > { %v5036_v44 = vadd.f32 %v5004_v11, %v4972_v34  ;;  %v4902_v63 = vmul.f32 %v6092_v35, %v4901_v17 }
 0x30e   : > { %v4299_v33 = vadd.f32 %v4265_v41, %v3921_v5 }
 0x30f   : > { %5068 = vst [vmem:[%s7759_s13 + $0xe0] sm:$0xff] %v5036_v44  ;;  %v4903_v20 = vadd.f32 %v6092_v35, %v4902_v63 }
 0x310   : > { %v4335_v6 = vadd.f32 %v8414_v40, %v4299_v33 }
 0x311   : > { %v4907_v12 = vsel %vm4906_vm7, %v6092_v35, %v4903_v20 }
 0x312   : > { %v6094_v29 = vpop.eup %6093  ;;  %v4912_v15 = vsel %vm4909_vm3, %v4911_v14, %v4907_v12  ;;  %v5824_v7 = vmul.f32 -1.442695, %v4335_v6 }
 0x313   : > { %v4973_v27 = vmul.f32 %v4912_v15, %v8424_v47  ;;  %v4462_v18 = vadd.f32 1.0, %v6094_v29 }
 0x314   : > { %6095 = vpow2.f32 %v5824_v7 }
 0x315   : > { %v5037_v21 = vadd.f32 %v5005_v53, %v4973_v27  ;;  %6097 = vrcp.f32 %v4462_v18  ;;  %v4925_v50 = vand.u32 2147483648, %v4462_v18  ;;  %v4923_v2 = vand.u32 2147483647, %v4462_v18 }
 0x316   : > { %vm4919_vm9 = vweird.f32 %v4462_v18 }
 0x317   : > { %5069 = vst [vmem:[%s7759_s13 + $0xe8] sm:$0xff] %v5037_v21  ;;  %v4926_v1 = vor.u32 1.1754944e-38, %v4925_v50  ;;  %vm4924_vm11 = vcmp.eq.f32.partialorder %v4923_v2, 8.507059e+37 }
 0x31a   : > { %v6096_v45 = vpop.eup %6095 }
 0x31b   : > { %v6098_v26 = vpop.eup %6097  ;;  %v4463_v49 = vadd.f32 1.0, %v6096_v45 }
 0x31c   : > { %v4915_v23 = vmul.f32 %v6098_v26, %v4462_v18  ;;  %vm4920_vm8 = vweird.f32 %v6098_v26 }
 0x31d   : > { %6099 = vrcp.f32 %v4463_v49  ;;  %vm4921_vm10 = vmor %vm4919_vm9, %vm4920_vm8  ;;  %v4940_v10 = vand.u32 2147483648, %v4463_v49  ;;  %v4938_v38 = vand.u32 2147483647, %v4463_v49  ;;  %vm4934_vm13 = vweird.f32 %v4463_v49 }
 0x31e   : > { %v4916_v40 = vsub.f32 1.0, %v4915_v23 }
 0x31f   : > { %v4941_v16 = vor.u32 1.1754944e-38, %v4940_v10  ;;  %vm4939_vm15 = vcmp.eq.f32.partialorder %v4938_v38, 8.507059e+37 }
 0x320   : > { %v4917_v54 = vmul.f32 %v6098_v26, %v4916_v40 }
 0x322   : > { %v4918_v59 = vadd.f32 %v6098_v26, %v4917_v54 }
 0x323   : > { %v6100_v47 = vpop.eup %6099 }
 0x324   : > { %v4922_v48 = vsel %vm4921_vm10, %v6098_v26, %v4918_v59  ;;  %v4930_v39 = vmul.f32 %v6100_v47, %v4463_v49  ;;  %vm4935_vm12 = vweird.f32 %v6100_v47 }
 0x325   : > { %v4927_v57 = vsel %vm4924_vm11, %v4926_v1, %v4922_v48  ;;  %vm4936_vm14 = vmor %vm4934_vm13, %vm4935_vm12 }
 0x326   : > { %v4974_v51 = vmul.f32 %v4927_v57, %v4334_v3  ;;  %v4931_v0 = vsub.f32 1.0, %v4930_v39 }
 0x328   : > { %v5038_v13 = vadd.f32 %v5006_v60, %v4974_v51  ;;  %v4932_v62 = vmul.f32 %v6100_v47, %v4931_v0 }
 0x32a   : > { %5070 = vst [vmem:[%s7759_s13 + $0xf0] sm:$0xff] %v5038_v13  ;;  %v4933_v36 = vadd.f32 %v6100_v47, %v4932_v62 }
 0x32c   : > { %v4937_v9 = vsel %vm4936_vm14, %v6100_v47, %v4933_v36 }
 0x32d   : > { %v4942_v19 = vsel %vm4939_vm15, %v4941_v16, %v4937_v9 }
 0x32e   : > { %v4975_v25 = vmul.f32 %v4942_v19, %v4335_v6 }
 0x330   : > { %v5039_v58 = vadd.f32 %v5007_v42, %v4975_v25 }
 0x332   : > { %5071 = vst [vmem:[%s7759_s13 + $0xf8] sm:$0xff] %v5039_v58 }
 0x333   : > { %6208 = shalt.err (!%p6205_p3)
}
 0x334   : > { %s6245_s29 = smov 128   ;;  %s6246_s13 = smov 8  }
 0x335   : > { %5931 = dma.vmem_to_hbm [thread:$0]  (%p6320_p5), %s5087_s25, 4096, %s5089_s28, %s5073_s11, %s6245_s29, %s6245_s29, %s6246_s13  }
 0x336 PF: > { %p5937_p4 = scmp.ge.s32.totalorder %s6243_s24, 2  ;;  %s5103_s20 = sand.u32 1, %s6231_s21  }
 0x337   : > { %s5104_s26 = scalar_lea.sflag [#allocation3], %s5103_s20 }
 0x338   : > { %p5934_p7 = pnand %p5937_p4, %p6324_p6 }
 0x33a   : > { %p5935_p8 = pneg %p5934_p7 }
 0x33c   : > { %6226 = dma.done.wait (%p5935_p8), %s5104_s26, 4096  }
 0x33d   : > { %6228 = vsyncadd (%p5935_p8), %s5104_s26, 4294963200  ;;  %p16_p9 = scmp.ge.s32.totalorder %s6307_s27, 4   ;;  %s8542_s21 = smov %s6235_s22 }
 0x33e   : > { %s8543_s22 = smov %s6239_s23  ;;  %s8544_s23 = smov %s6318_s30 }
 0x33f   : > { %s8545_s24 = smov %s6307_s27  ;;  %18 = sbr.rel (!%p16_p9) target bundleno = 3 (0x3), region = 96 }
 0x344   :  { %5110 = vsyncpa [#allocation3], 1 }
 0x345   :  { %5112 = vsyncpa [#allocation3 + $0x1], 1 }

</bundles_post_ra>
